<compile_context>
chip_gen: v7x
topology: tpu7x:2x2x1
jax: 0.10.0
libtpu: 0.0.40
codegen_flags: <defaults>
</compile_context>

<pallas_src>
import functools
import math

import jax
import jax.numpy as jnp
from jax import lax
from jax.experimental import pallas as pl
from jax.experimental.pallas import tpu as pltpu


def _round_up(x, m):
    return ((x + m - 1) // m) * m


# ----------------------------------------------------------------------------
# Pallas kernel: direct convolution on one image block
#   out[ho, wo, :] = LeakyReLU( sum_taps x[ho+qi, wo+qj, :] @ W_tap  + shift )
# ----------------------------------------------------------------------------
def _conv_tap_kernel(x_ref, w_ref, shift_ref, o_ref, *, kq, negative_slope):
    # x_ref     : (Rp, Wpp, Cp)     bf16  space-to-depth padded input (one image)
    # w_ref     : (kq*kq, Cp, Np)   bf16  per-tap weight matrices (scale folded in)
    # shift_ref : (1, Np)           f32   conv-bias / folded-BN shift (zero padded)
    # o_ref     : (Ho, Wo, Np)      bf16  lane-dense output (Np = channels -> 128k)
    ho_n, wo_n, n_pad = o_ref.shape
    shift = shift_ref[...]                                    # hoisted out of loop

    def row_body(ho, carry):
        acc = jnp.zeros((wo_n, n_pad), jnp.float32)
        for qi in range(kq):                                  # unrolled taps
            row = x_ref[ho + qi]                              # (Wpp, Cp) contiguous
            for qj in range(kq):
                xs = row[qj:qj + wo_n, :]                     # (Wo, Cp) unit-stride
                acc = acc + jnp.dot(xs, w_ref[qi * kq + qj],
                                    preferred_element_type=jnp.float32)
        y = acc + shift
        if negative_slope is not None:
            y = jnp.where(y >= 0.0, y, jnp.float32(negative_slope) * y)
        o_ref[ho] = y.astype(o_ref.dtype)
        return carry

    lax.fori_loop(0, ho_n, row_body, 0)


def _conv_pallas(xp, w_taps, shift, ho, wo, kq, negative_slope):
    n, rp, wpp, cp = xp.shape
    taps, _, n_pad = w_taps.shape
    kernel = functools.partial(_conv_tap_kernel, kq=kq,
                               negative_slope=negative_slope)
    flops = 2 * n * ho * wo * taps * cp * n_pad
    bytes_accessed = (xp.size * 2 + w_taps.size * 2 + shift.size * 4
                      + n * ho * wo * n_pad * 2)
    return pl.pallas_call(
        kernel,
        out_shape=jax.ShapeDtypeStruct((n, ho, wo, n_pad), jnp.bfloat16),
        grid=(n,),
        in_specs=[
            # one image per grid step; batch dim squeezed out of the kernel ref
            pl.BlockSpec((pl.Squeezed(), rp, wpp, cp), lambda b: (b, 0, 0, 0)),
            pl.BlockSpec((taps, cp, n_pad), lambda b: (0, 0, 0)),
            pl.BlockSpec((1, n_pad), lambda b: (0, 0)),
        ],
        out_specs=pl.BlockSpec((pl.Squeezed(), ho, wo, n_pad),
                               lambda b: (b, 0, 0, 0)),
        compiler_params=pltpu.CompilerParams(
            dimension_semantics=("parallel",),          # megacore over batch
            vmem_limit_bytes=32 * 1024 * 1024,          # fits v5e/v6e/v7x budgets
        ),
        cost_estimate=pl.CostEstimate(flops=flops, transcendentals=0,
                                      bytes_accessed=bytes_accessed),
    )(xp, w_taps, shift)


def conv_layer_apply(x_nhwc, lp):
    """One Conv2d(+BN+LeakyReLU) layer: cheap JAX-side padding / space-to-depth
    (1x input bytes, NOT 25x im2col), then the fused Pallas conv kernel."""
    n, h, w, c = x_nhwc.shape
    s, k, kq, pad = lp["stride"], lp["k"], lp["kq"], lp["pad"]
    ho = (h + 2 * pad - k) // s + 1
    wo = (w + 2 * pad - k) // s + 1
    hp = s * (ho + kq - 1)            # >= h + 2*pad for k=5, pad=2, s in {1,2}
    wp = s * (wo + kq - 1)
    assert hp >= h + 2 * pad and wp >= w + 2 * pad
    xp = jnp.pad(x_nhwc, ((0, 0), (pad, hp - h - pad), (pad, wp - w - pad), (0, 0)))
    if s > 1:
        # fold the stride into channels (space-to-depth) so the kernel only ever
        # does contiguous slices; channel order = (phase_i, phase_j, c)
        xp = xp.reshape(n, hp // s, s, wp // s, s, c)
        xp = xp.transpose(0, 1, 3, 2, 4, 5).reshape(n, hp // s, wp // s, s * s * c)
    y = _conv_pallas(xp, lp["w_taps"], lp["shift"], ho, wo, kq, lp["act"])
    return y[..., :lp["cout"]]        # slice off lane padding


# ----------------------------------------------------------------------------
# Pallas kernel: merged Linear heads  (binary | category) in one lane-dense call
# ----------------------------------------------------------------------------
def _linear_bias_kernel(x_ref, w_ref, b_ref, o_ref):
    acc = jnp.dot(x_ref[...], w_ref[...], preferred_element_type=jnp.float32)
    o_ref[...] = (acc + b_ref[...]).astype(o_ref.dtype)


def heads_apply(features_bf16, head):
    m, f = features_bf16.shape
    n_pad = head["w"].shape[1]
    logits = pl.pallas_call(
        _linear_bias_kernel,
        out_shape=jax.ShapeDtypeStruct((m, n_pad), jnp.float32),
        in_specs=[pl.BlockSpec(memory_space=pltpu.MemorySpace.VMEM)] * 3,
        out_specs=pl.BlockSpec(memory_space=pltpu.MemorySpace.VMEM),
        compiler_params=pltpu.CompilerParams(vmem_limit_bytes=32 * 1024 * 1024),
        cost_estimate=pl.CostEstimate(
            flops=2 * m * f * n_pad, transcendentals=0,
            bytes_accessed=features_bf16.size * 2 + head["w"].size * 2 + m * n_pad * 4),
    )(features_bf16, head["w"], head["b"])
    e = head["embedding_num"]
    return logits[:, :e], logits[:, e:2 * e]


# ----------------------------------------------------------------------------
# Parameter construction (deterministic, synthetic) and kernel-side preparation
# ----------------------------------------------------------------------------
def make_params(key, input_nc, embedding_num, ndf, image_size):
    kw = 5
    eps = 1e-5
    layer_cfg = [
        # (in_c, out_c, stride, has_bias, has_bn, act)
        (input_nc,  ndf,     2, True,  False, 0.2),
        (ndf,       ndf * 2, 2, False, True,  0.2),
        (ndf * 2,   ndf * 4, 2, False, True,  0.2),
        (ndf * 4,   ndf * 8, 1, False, True,  0.2),
        (ndf * 8,   1,       1, True,  False, None),
    ]
    params = []
    for (cin, cout, stride, has_bias, has_bn, act) in layer_cfg:
        key, kw_, kb_, kg_, kbb_, km_, kv_ = jax.random.split(key, 7)
        fan_in = cin * kw * kw
        bound = 1.0 / math.sqrt(fan_in)
        w = jax.random.uniform(kw_, (cout, cin, kw, kw), jnp.float32, -bound, bound)
        if has_bn:
            # eval-mode BatchNorm folded into per-channel scale/shift
            gamma = 1.0 + 0.1 * jax.random.normal(kg_, (cout,), jnp.float32)
            beta = 0.1 * jax.random.normal(kbb_, (cout,), jnp.float32)
            rmean = 0.05 * jax.random.normal(km_, (cout,), jnp.float32)
            rvar = 1.0 + 0.1 * jnp.abs(jax.random.normal(kv_, (cout,), jnp.float32))
            scale = gamma / jnp.sqrt(rvar + eps)
            shift = beta - rmean * scale
        else:
            bias = (jax.random.uniform(kb_, (cout,), jnp.float32, -bound, bound)
                    if has_bias else jnp.zeros((cout,), jnp.float32))
            scale = jnp.ones((cout,), jnp.float32)
            shift = bias
        params.append(dict(w=w, scale=scale, shift=shift, stride=stride, act=act))

    # final spatial size after three stride-2 convs (k=5, p=2 -> ceil(H/2))
    s = image_size
    for _ in range(3):
        s = math.ceil(s / 2)
    final_features = 1 * s * s

    heads = {}
    for name in ("binary", "category"):
        key, kw_, kb_ = jax.random.split(key, 3)
        bound = 1.0 / math.sqrt(final_features)
        heads[name] = dict(
            w=jax.random.uniform(kw_, (final_features, embedding_num), jnp.float32,
                                 -bound, bound),
            b=jax.random.uniform(kb_, (embedding_num,), jnp.float32, -bound, bound),
        )
    return params, heads


def prepare_for_kernel(conv_params, heads, embedding_num):
    """One-time constant transforms: fold scale into weights, rearrange weights
    into per-tap (Cp, Np) matrices for the space-to-depth conv, pad channels to
    128 lanes, cast dot inputs to bf16, merge the two heads."""
    layers = []
    for p in conv_params:
        w = p["w"] * p["scale"][:, None, None, None]      # fold BN scale / bias scale
        cout, cin, kh, kw2 = w.shape
        s = p["stride"]
        kq = -(-kh // s)                                  # ceil(k / s)
        n_pad = _round_up(max(cout, 128), 128)
        wk = jnp.zeros((kq * s, kq * s, cin, n_pad), jnp.float32)
        wk = wk.at[:kh, :kw2, :, :cout].set(jnp.transpose(w, (2, 3, 1, 0)))
        wk = wk.reshape(kq, s, kq, s, cin, n_pad).transpose(0, 2, 1, 3, 4, 5)
        w_taps = wk.reshape(kq * kq, s * s * cin, n_pad).astype(jnp.bfloat16)
        shift = jnp.zeros((1, n_pad), jnp.float32).at[0, :cout].set(p["shift"])
        layers.append(dict(w_taps=w_taps, shift=shift, stride=s, k=kh, kq=kq,
                           pad=2, cout=cout, act=p["act"]))

    wb, bb = heads["binary"]["w"], heads["binary"]["b"]
    wc, bc = heads["category"]["w"], heads["category"]["b"]
    f = wb.shape[0]
    n_pad = _round_up(max(2 * embedding_num, 128), 128)
    w_merged = jnp.zeros((f, n_pad), jnp.float32)
    w_merged = w_merged.at[:, :embedding_num].set(wb)
    w_merged = w_merged.at[:, embedding_num:2 * embedding_num].set(wc)
    b_merged = jnp.zeros((1, n_pad), jnp.float32)
    b_merged = b_merged.at[0, :embedding_num].set(bb)
    b_merged = b_merged.at[0, embedding_num:2 * embedding_num].set(bc)
    head = dict(w=w_merged.astype(jnp.bfloat16), b=b_merged,
                embedding_num=embedding_num)
    return layers, head


# ----------------------------------------------------------------------------
# Forward pass (matches Discriminator.forward)
# ----------------------------------------------------------------------------
def discriminator_forward(x_nchw, conv_layers, head):
    x = jnp.transpose(x_nchw, (0, 2, 3, 1)).astype(jnp.bfloat16)   # NCHW -> NHWC
    for lp in conv_layers:
        x = conv_layer_apply(x, lp)
    n = x.shape[0]
    # final conv has 1 output channel, so NHWC flatten == PyTorch NCHW flatten
    features = x.reshape(n, -1)
    return heads_apply(features, head)


# ----------------------------------------------------------------------------
# Pure-JAX reference with the same bf16-input / f32-accumulate arithmetic
# (isolates correctness of the Pallas space-to-depth conv + head kernels)
# ----------------------------------------------------------------------------
def reference_forward(x_nchw, conv_params, heads):
    x = jnp.transpose(x_nchw, (0, 2, 3, 1)).astype(jnp.bfloat16)
    for p in conv_params:
        w = p["w"] * p["scale"][:, None, None, None]
        w_hwio = jnp.transpose(w, (2, 3, 1, 0)).astype(jnp.bfloat16)
        y = lax.conv_general_dilated(
            x, w_hwio, (p["stride"], p["stride"]), ((2, 2), (2, 2)),
            dimension_numbers=("NHWC", "HWIO", "NHWC"),
            preferred_element_type=jnp.float32)
        y = y + p["shift"][None, None, None, :]
        if p["act"] is not None:
            y = jnp.where(y >= 0, y, p["act"] * y)
        x = y.astype(jnp.bfloat16)
    feats = x.reshape(x.shape[0], -1).astype(jnp.float32)
    wb = heads["binary"]["w"].astype(jnp.bfloat16).astype(jnp.float32)
    wc = heads["category"]["w"].astype(jnp.bfloat16).astype(jnp.float32)
    b = feats @ wb + heads["binary"]["b"]
    c = feats @ wc + heads["category"]["b"]
    return b, c


if __name__ == "__main__":
    # Small, module-consistent shapes
    batch = 2
    input_nc = 4
    image_size = 16
    ndf = 8
    embedding_num = 4

    key = jax.random.PRNGKey(0)
    key, kx, kp = jax.random.split(key, 3)
    x = jax.random.normal(kx, (batch, input_nc, image_size, image_size), jnp.float32)

    conv_params, heads = make_params(kp, input_nc, embedding_num, ndf, image_size)
    layers, head = prepare_for_kernel(conv_params, heads, embedding_num)

    fwd = jax.jit(lambda inp: discriminator_forward(inp, layers, head))
    binary_logits, category_logits = fwd(x)
    jax.block_until_ready(binary_logits)
    jax.block_until_ready(category_logits)

    ref_b, ref_c = reference_forward(x, conv_params, heads)
    assert binary_logits.shape == (batch, embedding_num)
    assert category_logits.shape == (batch, embedding_num)
    assert jnp.allclose(binary_logits, ref_b, rtol=1e-2, atol=1e-2), (
        float(jnp.max(jnp.abs(binary_logits - ref_b))))
    assert jnp.allclose(category_logits, ref_c, rtol=1e-2, atol=1e-2), (
        float(jnp.max(jnp.abs(category_logits - ref_c))))

    print("KERNEL_OK")
</pallas_src>

<mosaic_0001>
module attributes {stable_mosaic.version = 11 : i64} {
  func.func @_conv_tap_kernel(%arg0: i32, %arg1: memref<1x10x10x16xbf16, #tpu.memory_space<vmem>>, %arg2: memref<9x16x128xbf16, #tpu.memory_space<vmem>>, %arg3: memref<1x128xf32, #tpu.memory_space<vmem>>, %arg4: memref<1x8x8x128xbf16, #tpu.memory_space<vmem>>) attributes {dimension_semantics = [#tpu.dimension_semantics<parallel>], iteration_bounds = array<i64: 2>, scalar_prefetch = 0 : i64, scratch_operands = 0 : i64, tpu.core_type = #tpu.core_type<tc>, window_params = [{transform_indices = @transform_0, window_bounds = array<i64: 1, 10, 10, 16>}, {pipeline_mode = #tpu.pipeline_mode<synchronous>, transform_indices = @transform_1, window_bounds = array<i64: 9, 16, 128>}, {pipeline_mode = #tpu.pipeline_mode<synchronous>, transform_indices = @transform_2, window_bounds = array<i64: 1, 128>}, {transform_indices = @transform_3, window_bounds = array<i64: 1, 8, 8, 128>}]} {
    %c0 = arith.constant 0 : index
    %c0_0 = arith.constant 0 : index
    %0 = vector.load %arg3[%c0, %c0_0] : memref<1x128xf32, #tpu.memory_space<vmem>>, vector<1x128xf32>
    %c0_i32 = arith.constant 0 : i32
    %c8_i32 = arith.constant 8 : i32
    %1 = arith.addi %c0_i32, %c8_i32 : i32
    %c1_i32 = arith.constant 1 : i32
    scf.for %arg5 = %c0_i32 to %1 step %c1_i32  : i32 {
      %cst = arith.constant 0.000000e+00 : f32
      %2 = vector.broadcast %cst : f32 to vector<8x128xf32>
      %c0_i32_2 = arith.constant 0 : i32
      %3 = arith.addi %arg5, %c0_i32_2 : i32
      %c0_3 = arith.constant 0 : index
      %4 = arith.index_cast %3 : i32 to index
      %c0_4 = arith.constant 0 : index
      %c0_5 = arith.constant 0 : index
      %5 = vector.load %arg1[%c0_3, %4, %c0_4, %c0_5] : memref<1x10x10x16xbf16, #tpu.memory_space<vmem>>, vector<1x1x10x16xbf16>
      %6 = vector.shape_cast %5 : vector<1x1x10x16xbf16> to vector<10x16xbf16>
      %7 = vector.extract_strided_slice %6 {offsets = [0, 0], sizes = [8, 16], strides = [1, 1]} : vector<10x16xbf16> to vector<8x16xbf16>
      %c0_6 = arith.constant 0 : index
      %c0_7 = arith.constant 0 : index
      %c0_8 = arith.constant 0 : index
      %8 = vector.load %arg2[%c0_6, %c0_7, %c0_8] : memref<9x16x128xbf16, #tpu.memory_space<vmem>>, vector<1x16x128xbf16>
      %9 = vector.shape_cast %8 : vector<1x16x128xbf16> to vector<16x128xbf16>
      %cst_9 = arith.constant dense<0.000000e+00> : vector<8x128xf32>
      %10 = tpu.matmul %7, %9, %cst_9 {dimension_numbers = #tpu.dot_dimension_numbers<[1], [0], [0], [1], [0, 0, 1, 1], [], []>} : vector<8x16xbf16>, vector<16x128xbf16>, vector<8x128xf32> -> vector<8x128xf32>
      %11 = arith.addf %2, %10 : vector<8x128xf32>
      %12 = vector.extract_strided_slice %6 {offsets = [1, 0], sizes = [8, 16], strides = [1, 1]} : vector<10x16xbf16> to vector<8x16xbf16>
      %c1 = arith.constant 1 : index
      %c0_10 = arith.constant 0 : index
      %c0_11 = arith.constant 0 : index
      %13 = vector.load %arg2[%c1, %c0_10, %c0_11] : memref<9x16x128xbf16, #tpu.memory_space<vmem>>, vector<1x16x128xbf16>
      %14 = vector.shape_cast %13 : vector<1x16x128xbf16> to vector<16x128xbf16>
      %cst_12 = arith.constant dense<0.000000e+00> : vector<8x128xf32>
      %15 = tpu.matmul %12, %14, %cst_12 {dimension_numbers = #tpu.dot_dimension_numbers<[1], [0], [0], [1], [0, 0, 1, 1], [], []>} : vector<8x16xbf16>, vector<16x128xbf16>, vector<8x128xf32> -> vector<8x128xf32>
      %16 = arith.addf %11, %15 : vector<8x128xf32>
      %17 = vector.extract_strided_slice %6 {offsets = [2, 0], sizes = [8, 16], strides = [1, 1]} : vector<10x16xbf16> to vector<8x16xbf16>
      %c2 = arith.constant 2 : index
      %c0_13 = arith.constant 0 : index
      %c0_14 = arith.constant 0 : index
      %18 = vector.load %arg2[%c2, %c0_13, %c0_14] : memref<9x16x128xbf16, #tpu.memory_space<vmem>>, vector<1x16x128xbf16>
      %19 = vector.shape_cast %18 : vector<1x16x128xbf16> to vector<16x128xbf16>
      %cst_15 = arith.constant dense<0.000000e+00> : vector<8x128xf32>
      %20 = tpu.matmul %17, %19, %cst_15 {dimension_numbers = #tpu.dot_dimension_numbers<[1], [0], [0], [1], [0, 0, 1, 1], [], []>} : vector<8x16xbf16>, vector<16x128xbf16>, vector<8x128xf32> -> vector<8x128xf32>
      %21 = arith.addf %16, %20 : vector<8x128xf32>
      %c1_i32_16 = arith.constant 1 : i32
      %22 = arith.addi %arg5, %c1_i32_16 : i32
      %c0_17 = arith.constant 0 : index
      %23 = arith.index_cast %22 : i32 to index
      %c0_18 = arith.constant 0 : index
      %c0_19 = arith.constant 0 : index
      %24 = vector.load %arg1[%c0_17, %23, %c0_18, %c0_19] : memref<1x10x10x16xbf16, #tpu.memory_space<vmem>>, vector<1x1x10x16xbf16>
      %25 = vector.shape_cast %24 : vector<1x1x10x16xbf16> to vector<10x16xbf16>
      %26 = vector.extract_strided_slice %25 {offsets = [0, 0], sizes = [8, 16], strides = [1, 1]} : vector<10x16xbf16> to vector<8x16xbf16>
      %c3 = arith.constant 3 : index
      %c0_20 = arith.constant 0 : index
      %c0_21 = arith.constant 0 : index
      %27 = vector.load %arg2[%c3, %c0_20, %c0_21] : memref<9x16x128xbf16, #tpu.memory_space<vmem>>, vector<1x16x128xbf16>
      %28 = vector.shape_cast %27 : vector<1x16x128xbf16> to vector<16x128xbf16>
      %cst_22 = arith.constant dense<0.000000e+00> : vector<8x128xf32>
      %29 = tpu.matmul %26, %28, %cst_22 {dimension_numbers = #tpu.dot_dimension_numbers<[1], [0], [0], [1], [0, 0, 1, 1], [], []>} : vector<8x16xbf16>, vector<16x128xbf16>, vector<8x128xf32> -> vector<8x128xf32>
      %30 = arith.addf %21, %29 : vector<8x128xf32>
      %31 = vector.extract_strided_slice %25 {offsets = [1, 0], sizes = [8, 16], strides = [1, 1]} : vector<10x16xbf16> to vector<8x16xbf16>
      %c4 = arith.constant 4 : index
      %c0_23 = arith.constant 0 : index
      %c0_24 = arith.constant 0 : index
      %32 = vector.load %arg2[%c4, %c0_23, %c0_24] : memref<9x16x128xbf16, #tpu.memory_space<vmem>>, vector<1x16x128xbf16>
      %33 = vector.shape_cast %32 : vector<1x16x128xbf16> to vector<16x128xbf16>
      %cst_25 = arith.constant dense<0.000000e+00> : vector<8x128xf32>
      %34 = tpu.matmul %31, %33, %cst_25 {dimension_numbers = #tpu.dot_dimension_numbers<[1], [0], [0], [1], [0, 0, 1, 1], [], []>} : vector<8x16xbf16>, vector<16x128xbf16>, vector<8x128xf32> -> vector<8x128xf32>
      %35 = arith.addf %30, %34 : vector<8x128xf32>
      %36 = vector.extract_strided_slice %25 {offsets = [2, 0], sizes = [8, 16], strides = [1, 1]} : vector<10x16xbf16> to vector<8x16xbf16>
      %c5 = arith.constant 5 : index
      %c0_26 = arith.constant 0 : index
      %c0_27 = arith.constant 0 : index
      %37 = vector.load %arg2[%c5, %c0_26, %c0_27] : memref<9x16x128xbf16, #tpu.memory_space<vmem>>, vector<1x16x128xbf16>
      %38 = vector.shape_cast %37 : vector<1x16x128xbf16> to vector<16x128xbf16>
      %cst_28 = arith.constant dense<0.000000e+00> : vector<8x128xf32>
      %39 = tpu.matmul %36, %38, %cst_28 {dimension_numbers = #tpu.dot_dimension_numbers<[1], [0], [0], [1], [0, 0, 1, 1], [], []>} : vector<8x16xbf16>, vector<16x128xbf16>, vector<8x128xf32> -> vector<8x128xf32>
      %40 = arith.addf %35, %39 : vector<8x128xf32>
      %c2_i32 = arith.constant 2 : i32
      %41 = arith.addi %arg5, %c2_i32 : i32
      %c0_29 = arith.constant 0 : index
      %42 = arith.index_cast %41 : i32 to index
      %c0_30 = arith.constant 0 : index
      %c0_31 = arith.constant 0 : index
      %43 = vector.load %arg1[%c0_29, %42, %c0_30, %c0_31] : memref<1x10x10x16xbf16, #tpu.memory_space<vmem>>, vector<1x1x10x16xbf16>
      %44 = vector.shape_cast %43 : vector<1x1x10x16xbf16> to vector<10x16xbf16>
      %45 = vector.extract_strided_slice %44 {offsets = [0, 0], sizes = [8, 16], strides = [1, 1]} : vector<10x16xbf16> to vector<8x16xbf16>
      %c6 = arith.constant 6 : index
      %c0_32 = arith.constant 0 : index
      %c0_33 = arith.constant 0 : index
      %46 = vector.load %arg2[%c6, %c0_32, %c0_33] : memref<9x16x128xbf16, #tpu.memory_space<vmem>>, vector<1x16x128xbf16>
      %47 = vector.shape_cast %46 : vector<1x16x128xbf16> to vector<16x128xbf16>
      %cst_34 = arith.constant dense<0.000000e+00> : vector<8x128xf32>
      %48 = tpu.matmul %45, %47, %cst_34 {dimension_numbers = #tpu.dot_dimension_numbers<[1], [0], [0], [1], [0, 0, 1, 1], [], []>} : vector<8x16xbf16>, vector<16x128xbf16>, vector<8x128xf32> -> vector<8x128xf32>
      %49 = arith.addf %40, %48 : vector<8x128xf32>
      %50 = vector.extract_strided_slice %44 {offsets = [1, 0], sizes = [8, 16], strides = [1, 1]} : vector<10x16xbf16> to vector<8x16xbf16>
      %c7 = arith.constant 7 : index
      %c0_35 = arith.constant 0 : index
      %c0_36 = arith.constant 0 : index
      %51 = vector.load %arg2[%c7, %c0_35, %c0_36] : memref<9x16x128xbf16, #tpu.memory_space<vmem>>, vector<1x16x128xbf16>
      %52 = vector.shape_cast %51 : vector<1x16x128xbf16> to vector<16x128xbf16>
      %cst_37 = arith.constant dense<0.000000e+00> : vector<8x128xf32>
      %53 = tpu.matmul %50, %52, %cst_37 {dimension_numbers = #tpu.dot_dimension_numbers<[1], [0], [0], [1], [0, 0, 1, 1], [], []>} : vector<8x16xbf16>, vector<16x128xbf16>, vector<8x128xf32> -> vector<8x128xf32>
      %54 = arith.addf %49, %53 : vector<8x128xf32>
      %55 = vector.extract_strided_slice %44 {offsets = [2, 0], sizes = [8, 16], strides = [1, 1]} : vector<10x16xbf16> to vector<8x16xbf16>
      %c8 = arith.constant 8 : index
      %c0_38 = arith.constant 0 : index
      %c0_39 = arith.constant 0 : index
      %56 = vector.load %arg2[%c8, %c0_38, %c0_39] : memref<9x16x128xbf16, #tpu.memory_space<vmem>>, vector<1x16x128xbf16>
      %57 = vector.shape_cast %56 : vector<1x16x128xbf16> to vector<16x128xbf16>
      %cst_40 = arith.constant dense<0.000000e+00> : vector<8x128xf32>
      %58 = tpu.matmul %55, %57, %cst_40 {dimension_numbers = #tpu.dot_dimension_numbers<[1], [0], [0], [1], [0, 0, 1, 1], [], []>} : vector<8x16xbf16>, vector<16x128xbf16>, vector<8x128xf32> -> vector<8x128xf32>
      %59 = arith.addf %54, %58 : vector<8x128xf32>
      %60 = vector.broadcast %0 : vector<1x128xf32> to vector<8x128xf32>
      %61 = arith.addf %59, %60 : vector<8x128xf32>
      %cst_41 = arith.constant 0.000000e+00 : f32
      %62 = vector.broadcast %cst_41 : f32 to vector<8x128xf32>
      %63 = arith.cmpf oge, %61, %62 : vector<8x128xf32>
      %cst_42 = arith.constant 2.000000e-01 : f32
      %64 = vector.broadcast %cst_42 : f32 to vector<8x128xf32>
      %65 = arith.mulf %64, %61 : vector<8x128xf32>
      %66 = arith.select %63, %61, %65 : vector<8x128xi1>, vector<8x128xf32>
      %67 = arith.truncf %66 : vector<8x128xf32> to vector<8x128xbf16>
      %c0_43 = arith.constant 0 : index
      %68 = arith.index_cast %arg5 : i32 to index
      %c0_44 = arith.constant 0 : index
      %c0_45 = arith.constant 0 : index
      %69 = vector.load %arg4[%c0_43, %68, %c0_44, %c0_45] : memref<1x8x8x128xbf16, #tpu.memory_space<vmem>>, vector<1x1x8x128xbf16>
      %70 = vector.shape_cast %69 : vector<1x1x8x128xbf16> to vector<8x128xbf16>
      %71 = vector.shape_cast %67 : vector<8x128xbf16> to vector<1x1x8x128xbf16>
      tpu.vector_store %arg4[%c0_43, %68, %c0_44, %c0_45], %71 {strides = array<i32>} : memref<1x8x8x128xbf16, #tpu.memory_space<vmem>>, vector<1x1x8x128xbf16>,
    }
    %c8_i32_1 = arith.constant 8 : i32
    return
  }
  func.func @transform_0(%arg0: i32) -> (i32, i32, i32, i32) {
    %c0_i32 = arith.constant 0 : i32
    %c0_i32_0 = arith.constant 0 : i32
    %c0_i32_1 = arith.constant 0 : i32
    %c0_i32_2 = arith.constant 0 : i32
    return %arg0, %c0_i32, %c0_i32_0, %c0_i32_1 : i32, i32, i32, i32
  }
  func.func @transform_1(%arg0: i32) -> (i32, i32, i32) {
    %c0_i32 = arith.constant 0 : i32
    %c0_i32_0 = arith.constant 0 : i32
    %c0_i32_1 = arith.constant 0 : i32
    %c0_i32_2 = arith.constant 0 : i32
    return %c0_i32, %c0_i32_0, %c0_i32_1 : i32, i32, i32
  }
  func.func @transform_2(%arg0: i32) -> (i32, i32) {
    %c0_i32 = arith.constant 0 : i32
    %c0_i32_0 = arith.constant 0 : i32
    %c0_i32_1 = arith.constant 0 : i32
    return %c0_i32, %c0_i32_0 : i32, i32
  }
  func.func @transform_3(%arg0: i32) -> (i32, i32, i32, i32) {
    %c0_i32 = arith.constant 0 : i32
    %c0_i32_0 = arith.constant 0 : i32
    %c0_i32_1 = arith.constant 0 : i32
    %c0_i32_2 = arith.constant 0 : i32
    return %arg0, %c0_i32, %c0_i32_0, %c0_i32_1 : i32, i32, i32, i32
  }
}

module attributes {stable_mosaic.version = 11 : i64} {
  func.func @_conv_tap_kernel(%arg0: i32, %arg1: memref<1x6x6x32xbf16, #tpu.memory_space<vmem>>, %arg2: memref<9x32x128xbf16, #tpu.memory_space<vmem>>, %arg3: memref<1x128xf32, #tpu.memory_space<vmem>>, %arg4: memref<1x4x4x128xbf16, #tpu.memory_space<vmem>>) attributes {dimension_semantics = [#tpu.dimension_semantics<parallel>], iteration_bounds = array<i64: 2>, scalar_prefetch = 0 : i64, scratch_operands = 0 : i64, tpu.core_type = #tpu.core_type<tc>, window_params = [{transform_indices = @transform_0, window_bounds = array<i64: 1, 6, 6, 32>}, {pipeline_mode = #tpu.pipeline_mode<synchronous>, transform_indices = @transform_1, window_bounds = array<i64: 9, 32, 128>}, {pipeline_mode = #tpu.pipeline_mode<synchronous>, transform_indices = @transform_2, window_bounds = array<i64: 1, 128>}, {transform_indices = @transform_3, window_bounds = array<i64: 1, 4, 4, 128>}]} {
    %c0 = arith.constant 0 : index
    %c0_0 = arith.constant 0 : index
    %0 = vector.load %arg3[%c0, %c0_0] : memref<1x128xf32, #tpu.memory_space<vmem>>, vector<1x128xf32>
    %c0_i32 = arith.constant 0 : i32
    %c4_i32 = arith.constant 4 : i32
    %1 = arith.addi %c0_i32, %c4_i32 : i32
    %c1_i32 = arith.constant 1 : i32
    scf.for %arg5 = %c0_i32 to %1 step %c1_i32  : i32 {
      %cst = arith.constant 0.000000e+00 : f32
      %2 = vector.broadcast %cst : f32 to vector<4x128xf32>
      %c0_i32_2 = arith.constant 0 : i32
      %3 = arith.addi %arg5, %c0_i32_2 : i32
      %c0_3 = arith.constant 0 : index
      %4 = arith.index_cast %3 : i32 to index
      %c0_4 = arith.constant 0 : index
      %c0_5 = arith.constant 0 : index
      %5 = vector.load %arg1[%c0_3, %4, %c0_4, %c0_5] : memref<1x6x6x32xbf16, #tpu.memory_space<vmem>>, vector<1x1x6x32xbf16>
      %6 = vector.shape_cast %5 : vector<1x1x6x32xbf16> to vector<6x32xbf16>
      %7 = vector.extract_strided_slice %6 {offsets = [0, 0], sizes = [4, 32], strides = [1, 1]} : vector<6x32xbf16> to vector<4x32xbf16>
      %c0_6 = arith.constant 0 : index
      %c0_7 = arith.constant 0 : index
      %c0_8 = arith.constant 0 : index
      %8 = vector.load %arg2[%c0_6, %c0_7, %c0_8] : memref<9x32x128xbf16, #tpu.memory_space<vmem>>, vector<1x32x128xbf16>
      %9 = vector.shape_cast %8 : vector<1x32x128xbf16> to vector<32x128xbf16>
      %cst_9 = arith.constant dense<0.000000e+00> : vector<4x128xf32>
      %10 = tpu.matmul %7, %9, %cst_9 {dimension_numbers = #tpu.dot_dimension_numbers<[1], [0], [0], [1], [0, 0, 1, 1], [], []>} : vector<4x32xbf16>, vector<32x128xbf16>, vector<4x128xf32> -> vector<4x128xf32>
      %11 = arith.addf %2, %10 : vector<4x128xf32>
      %12 = vector.extract_strided_slice %6 {offsets = [1, 0], sizes = [4, 32], strides = [1, 1]} : vector<6x32xbf16> to vector<4x32xbf16>
      %c1 = arith.constant 1 : index
      %c0_10 = arith.constant 0 : index
      %c0_11 = arith.constant 0 : index
      %13 = vector.load %arg2[%c1, %c0_10, %c0_11] : memref<9x32x128xbf16, #tpu.memory_space<vmem>>, vector<1x32x128xbf16>
      %14 = vector.shape_cast %13 : vector<1x32x128xbf16> to vector<32x128xbf16>
      %cst_12 = arith.constant dense<0.000000e+00> : vector<4x128xf32>
      %15 = tpu.matmul %12, %14, %cst_12 {dimension_numbers = #tpu.dot_dimension_numbers<[1], [0], [0], [1], [0, 0, 1, 1], [], []>} : vector<4x32xbf16>, vector<32x128xbf16>, vector<4x128xf32> -> vector<4x128xf32>
      %16 = arith.addf %11, %15 : vector<4x128xf32>
      %17 = vector.extract_strided_slice %6 {offsets = [2, 0], sizes = [4, 32], strides = [1, 1]} : vector<6x32xbf16> to vector<4x32xbf16>
      %c2 = arith.constant 2 : index
      %c0_13 = arith.constant 0 : index
      %c0_14 = arith.constant 0 : index
      %18 = vector.load %arg2[%c2, %c0_13, %c0_14] : memref<9x32x128xbf16, #tpu.memory_space<vmem>>, vector<1x32x128xbf16>
      %19 = vector.shape_cast %18 : vector<1x32x128xbf16> to vector<32x128xbf16>
      %cst_15 = arith.constant dense<0.000000e+00> : vector<4x128xf32>
      %20 = tpu.matmul %17, %19, %cst_15 {dimension_numbers = #tpu.dot_dimension_numbers<[1], [0], [0], [1], [0, 0, 1, 1], [], []>} : vector<4x32xbf16>, vector<32x128xbf16>, vector<4x128xf32> -> vector<4x128xf32>
      %21 = arith.addf %16, %20 : vector<4x128xf32>
      %c1_i32_16 = arith.constant 1 : i32
      %22 = arith.addi %arg5, %c1_i32_16 : i32
      %c0_17 = arith.constant 0 : index
      %23 = arith.index_cast %22 : i32 to index
      %c0_18 = arith.constant 0 : index
      %c0_19 = arith.constant 0 : index
      %24 = vector.load %arg1[%c0_17, %23, %c0_18, %c0_19] : memref<1x6x6x32xbf16, #tpu.memory_space<vmem>>, vector<1x1x6x32xbf16>
      %25 = vector.shape_cast %24 : vector<1x1x6x32xbf16> to vector<6x32xbf16>
      %26 = vector.extract_strided_slice %25 {offsets = [0, 0], sizes = [4, 32], strides = [1, 1]} : vector<6x32xbf16> to vector<4x32xbf16>
      %c3 = arith.constant 3 : index
      %c0_20 = arith.constant 0 : index
      %c0_21 = arith.constant 0 : index
      %27 = vector.load %arg2[%c3, %c0_20, %c0_21] : memref<9x32x128xbf16, #tpu.memory_space<vmem>>, vector<1x32x128xbf16>
      %28 = vector.shape_cast %27 : vector<1x32x128xbf16> to vector<32x128xbf16>
      %cst_22 = arith.constant dense<0.000000e+00> : vector<4x128xf32>
      %29 = tpu.matmul %26, %28, %cst_22 {dimension_numbers = #tpu.dot_dimension_numbers<[1], [0], [0], [1], [0, 0, 1, 1], [], []>} : vector<4x32xbf16>, vector<32x128xbf16>, vector<4x128xf32> -> vector<4x128xf32>
      %30 = arith.addf %21, %29 : vector<4x128xf32>
      %31 = vector.extract_strided_slice %25 {offsets = [1, 0], sizes = [4, 32], strides = [1, 1]} : vector<6x32xbf16> to vector<4x32xbf16>
      %c4 = arith.constant 4 : index
      %c0_23 = arith.constant 0 : index
      %c0_24 = arith.constant 0 : index
      %32 = vector.load %arg2[%c4, %c0_23, %c0_24] : memref<9x32x128xbf16, #tpu.memory_space<vmem>>, vector<1x32x128xbf16>
      %33 = vector.shape_cast %32 : vector<1x32x128xbf16> to vector<32x128xbf16>
      %cst_25 = arith.constant dense<0.000000e+00> : vector<4x128xf32>
      %34 = tpu.matmul %31, %33, %cst_25 {dimension_numbers = #tpu.dot_dimension_numbers<[1], [0], [0], [1], [0, 0, 1, 1], [], []>} : vector<4x32xbf16>, vector<32x128xbf16>, vector<4x128xf32> -> vector<4x128xf32>
      %35 = arith.addf %30, %34 : vector<4x128xf32>
      %36 = vector.extract_strided_slice %25 {offsets = [2, 0], sizes = [4, 32], strides = [1, 1]} : vector<6x32xbf16> to vector<4x32xbf16>
      %c5 = arith.constant 5 : index
      %c0_26 = arith.constant 0 : index
      %c0_27 = arith.constant 0 : index
      %37 = vector.load %arg2[%c5, %c0_26, %c0_27] : memref<9x32x128xbf16, #tpu.memory_space<vmem>>, vector<1x32x128xbf16>
      %38 = vector.shape_cast %37 : vector<1x32x128xbf16> to vector<32x128xbf16>
      %cst_28 = arith.constant dense<0.000000e+00> : vector<4x128xf32>
      %39 = tpu.matmul %36, %38, %cst_28 {dimension_numbers = #tpu.dot_dimension_numbers<[1], [0], [0], [1], [0, 0, 1, 1], [], []>} : vector<4x32xbf16>, vector<32x128xbf16>, vector<4x128xf32> -> vector<4x128xf32>
      %40 = arith.addf %35, %39 : vector<4x128xf32>
      %c2_i32 = arith.constant 2 : i32
      %41 = arith.addi %arg5, %c2_i32 : i32
      %c0_29 = arith.constant 0 : index
      %42 = arith.index_cast %41 : i32 to index
      %c0_30 = arith.constant 0 : index
      %c0_31 = arith.constant 0 : index
      %43 = vector.load %arg1[%c0_29, %42, %c0_30, %c0_31] : memref<1x6x6x32xbf16, #tpu.memory_space<vmem>>, vector<1x1x6x32xbf16>
      %44 = vector.shape_cast %43 : vector<1x1x6x32xbf16> to vector<6x32xbf16>
      %45 = vector.extract_strided_slice %44 {offsets = [0, 0], sizes = [4, 32], strides = [1, 1]} : vector<6x32xbf16> to vector<4x32xbf16>
      %c6 = arith.constant 6 : index
      %c0_32 = arith.constant 0 : index
      %c0_33 = arith.constant 0 : index
      %46 = vector.load %arg2[%c6, %c0_32, %c0_33] : memref<9x32x128xbf16, #tpu.memory_space<vmem>>, vector<1x32x128xbf16>
      %47 = vector.shape_cast %46 : vector<1x32x128xbf16> to vector<32x128xbf16>
      %cst_34 = arith.constant dense<0.000000e+00> : vector<4x128xf32>
      %48 = tpu.matmul %45, %47, %cst_34 {dimension_numbers = #tpu.dot_dimension_numbers<[1], [0], [0], [1], [0, 0, 1, 1], [], []>} : vector<4x32xbf16>, vector<32x128xbf16>, vector<4x128xf32> -> vector<4x128xf32>
      %49 = arith.addf %40, %48 : vector<4x128xf32>
      %50 = vector.extract_strided_slice %44 {offsets = [1, 0], sizes = [4, 32], strides = [1, 1]} : vector<6x32xbf16> to vector<4x32xbf16>
      %c7 = arith.constant 7 : index
      %c0_35 = arith.constant 0 : index
      %c0_36 = arith.constant 0 : index
      %51 = vector.load %arg2[%c7, %c0_35, %c0_36] : memref<9x32x128xbf16, #tpu.memory_space<vmem>>, vector<1x32x128xbf16>
      %52 = vector.shape_cast %51 : vector<1x32x128xbf16> to vector<32x128xbf16>
      %cst_37 = arith.constant dense<0.000000e+00> : vector<4x128xf32>
      %53 = tpu.matmul %50, %52, %cst_37 {dimension_numbers = #tpu.dot_dimension_numbers<[1], [0], [0], [1], [0, 0, 1, 1], [], []>} : vector<4x32xbf16>, vector<32x128xbf16>, vector<4x128xf32> -> vector<4x128xf32>
      %54 = arith.addf %49, %53 : vector<4x128xf32>
      %55 = vector.extract_strided_slice %44 {offsets = [2, 0], sizes = [4, 32], strides = [1, 1]} : vector<6x32xbf16> to vector<4x32xbf16>
      %c8 = arith.constant 8 : index
      %c0_38 = arith.constant 0 : index
      %c0_39 = arith.constant 0 : index
      %56 = vector.load %arg2[%c8, %c0_38, %c0_39] : memref<9x32x128xbf16, #tpu.memory_space<vmem>>, vector<1x32x128xbf16>
      %57 = vector.shape_cast %56 : vector<1x32x128xbf16> to vector<32x128xbf16>
      %cst_40 = arith.constant dense<0.000000e+00> : vector<4x128xf32>
      %58 = tpu.matmul %55, %57, %cst_40 {dimension_numbers = #tpu.dot_dimension_numbers<[1], [0], [0], [1], [0, 0, 1, 1], [], []>} : vector<4x32xbf16>, vector<32x128xbf16>, vector<4x128xf32> -> vector<4x128xf32>
      %59 = arith.addf %54, %58 : vector<4x128xf32>
      %60 = vector.broadcast %0 : vector<1x128xf32> to vector<4x128xf32>
      %61 = arith.addf %59, %60 : vector<4x128xf32>
      %cst_41 = arith.constant 0.000000e+00 : f32
      %62 = vector.broadcast %cst_41 : f32 to vector<4x128xf32>
      %63 = arith.cmpf oge, %61, %62 : vector<4x128xf32>
      %cst_42 = arith.constant 2.000000e-01 : f32
      %64 = vector.broadcast %cst_42 : f32 to vector<4x128xf32>
      %65 = arith.mulf %64, %61 : vector<4x128xf32>
      %66 = arith.select %63, %61, %65 : vector<4x128xi1>, vector<4x128xf32>
      %67 = arith.truncf %66 : vector<4x128xf32> to vector<4x128xbf16>
      %c0_43 = arith.constant 0 : index
      %68 = arith.index_cast %arg5 : i32 to index
      %c0_44 = arith.constant 0 : index
      %c0_45 = arith.constant 0 : index
      %69 = vector.load %arg4[%c0_43, %68, %c0_44, %c0_45] : memref<1x4x4x128xbf16, #tpu.memory_space<vmem>>, vector<1x1x4x128xbf16>
      %70 = vector.shape_cast %69 : vector<1x1x4x128xbf16> to vector<4x128xbf16>
      %71 = vector.shape_cast %67 : vector<4x128xbf16> to vector<1x1x4x128xbf16>
      tpu.vector_store %arg4[%c0_43, %68, %c0_44, %c0_45], %71 {strides = array<i32>} : memref<1x4x4x128xbf16, #tpu.memory_space<vmem>>, vector<1x1x4x128xbf16>,
    }
    %c4_i32_1 = arith.constant 4 : i32
    return
  }
  func.func @transform_0(%arg0: i32) -> (i32, i32, i32, i32) {
    %c0_i32 = arith.constant 0 : i32
    %c0_i32_0 = arith.constant 0 : i32
    %c0_i32_1 = arith.constant 0 : i32
    %c0_i32_2 = arith.constant 0 : i32
    return %arg0, %c0_i32, %c0_i32_0, %c0_i32_1 : i32, i32, i32, i32
  }
  func.func @transform_1(%arg0: i32) -> (i32, i32, i32) {
    %c0_i32 = arith.constant 0 : i32
    %c0_i32_0 = arith.constant 0 : i32
    %c0_i32_1 = arith.constant 0 : i32
    %c0_i32_2 = arith.constant 0 : i32
    return %c0_i32, %c0_i32_0, %c0_i32_1 : i32, i32, i32
  }
  func.func @transform_2(%arg0: i32) -> (i32, i32) {
    %c0_i32 = arith.constant 0 : i32
    %c0_i32_0 = arith.constant 0 : i32
    %c0_i32_1 = arith.constant 0 : i32
    return %c0_i32, %c0_i32_0 : i32, i32
  }
  func.func @transform_3(%arg0: i32) -> (i32, i32, i32, i32) {
    %c0_i32 = arith.constant 0 : i32
    %c0_i32_0 = arith.constant 0 : i32
    %c0_i32_1 = arith.constant 0 : i32
    %c0_i32_2 = arith.constant 0 : i32
    return %arg0, %c0_i32, %c0_i32_0, %c0_i32_1 : i32, i32, i32, i32
  }
}

module attributes {stable_mosaic.version = 11 : i64} {
  func.func @_conv_tap_kernel(%arg0: i32, %arg1: memref<1x6x6x32xbf16, #tpu.memory_space<vmem>>, %arg2: memref<25x32x128xbf16, #tpu.memory_space<vmem>>, %arg3: memref<1x128xf32, #tpu.memory_space<vmem>>, %arg4: memref<1x2x2x128xbf16, #tpu.memory_space<vmem>>) attributes {dimension_semantics = [#tpu.dimension_semantics<parallel>], iteration_bounds = array<i64: 2>, scalar_prefetch = 0 : i64, scratch_operands = 0 : i64, tpu.core_type = #tpu.core_type<tc>, window_params = [{transform_indices = @transform_0, window_bounds = array<i64: 1, 6, 6, 32>}, {pipeline_mode = #tpu.pipeline_mode<synchronous>, transform_indices = @transform_1, window_bounds = array<i64: 25, 32, 128>}, {pipeline_mode = #tpu.pipeline_mode<synchronous>, transform_indices = @transform_2, window_bounds = array<i64: 1, 128>}, {transform_indices = @transform_3, window_bounds = array<i64: 1, 2, 2, 128>}]} {
    %c0 = arith.constant 0 : index
    %c0_0 = arith.constant 0 : index
    %0 = vector.load %arg3[%c0, %c0_0] : memref<1x128xf32, #tpu.memory_space<vmem>>, vector<1x128xf32>
    %c0_i32 = arith.constant 0 : i32
    %c2_i32 = arith.constant 2 : i32
    %1 = arith.addi %c0_i32, %c2_i32 : i32
    %c1_i32 = arith.constant 1 : i32
    scf.for %arg5 = %c0_i32 to %1 step %c1_i32  : i32 {
      %cst = arith.constant 0.000000e+00 : f32
      %2 = vector.broadcast %cst : f32 to vector<2x128xf32>
      %c0_i32_2 = arith.constant 0 : i32
      %3 = arith.addi %arg5, %c0_i32_2 : i32
      %c0_3 = arith.constant 0 : index
      %4 = arith.index_cast %3 : i32 to index
      %c0_4 = arith.constant 0 : index
      %c0_5 = arith.constant 0 : index
      %5 = vector.load %arg1[%c0_3, %4, %c0_4, %c0_5] : memref<1x6x6x32xbf16, #tpu.memory_space<vmem>>, vector<1x1x6x32xbf16>
      %6 = vector.shape_cast %5 : vector<1x1x6x32xbf16> to vector<6x32xbf16>
      %7 = vector.extract_strided_slice %6 {offsets = [0, 0], sizes = [2, 32], strides = [1, 1]} : vector<6x32xbf16> to vector<2x32xbf16>
      %c0_6 = arith.constant 0 : index
      %c0_7 = arith.constant 0 : index
      %c0_8 = arith.constant 0 : index
      %8 = vector.load %arg2[%c0_6, %c0_7, %c0_8] : memref<25x32x128xbf16, #tpu.memory_space<vmem>>, vector<1x32x128xbf16>
      %9 = vector.shape_cast %8 : vector<1x32x128xbf16> to vector<32x128xbf16>
      %cst_9 = arith.constant dense<0.000000e+00> : vector<2x128xf32>
      %10 = tpu.matmul %7, %9, %cst_9 {dimension_numbers = #tpu.dot_dimension_numbers<[1], [0], [0], [1], [0, 0, 1, 1], [], []>} : vector<2x32xbf16>, vector<32x128xbf16>, vector<2x128xf32> -> vector<2x128xf32>
      %11 = arith.addf %2, %10 : vector<2x128xf32>
      %12 = vector.extract_strided_slice %6 {offsets = [1, 0], sizes = [2, 32], strides = [1, 1]} : vector<6x32xbf16> to vector<2x32xbf16>
      %c1 = arith.constant 1 : index
      %c0_10 = arith.constant 0 : index
      %c0_11 = arith.constant 0 : index
      %13 = vector.load %arg2[%c1, %c0_10, %c0_11] : memref<25x32x128xbf16, #tpu.memory_space<vmem>>, vector<1x32x128xbf16>
      %14 = vector.shape_cast %13 : vector<1x32x128xbf16> to vector<32x128xbf16>
      %cst_12 = arith.constant dense<0.000000e+00> : vector<2x128xf32>
      %15 = tpu.matmul %12, %14, %cst_12 {dimension_numbers = #tpu.dot_dimension_numbers<[1], [0], [0], [1], [0, 0, 1, 1], [], []>} : vector<2x32xbf16>, vector<32x128xbf16>, vector<2x128xf32> -> vector<2x128xf32>
      %16 = arith.addf %11, %15 : vector<2x128xf32>
      %17 = vector.extract_strided_slice %6 {offsets = [2, 0], sizes = [2, 32], strides = [1, 1]} : vector<6x32xbf16> to vector<2x32xbf16>
      %c2 = arith.constant 2 : index
      %c0_13 = arith.constant 0 : index
      %c0_14 = arith.constant 0 : index
      %18 = vector.load %arg2[%c2, %c0_13, %c0_14] : memref<25x32x128xbf16, #tpu.memory_space<vmem>>, vector<1x32x128xbf16>
      %19 = vector.shape_cast %18 : vector<1x32x128xbf16> to vector<32x128xbf16>
      %cst_15 = arith.constant dense<0.000000e+00> : vector<2x128xf32>
      %20 = tpu.matmul %17, %19, %cst_15 {dimension_numbers = #tpu.dot_dimension_numbers<[1], [0], [0], [1], [0, 0, 1, 1], [], []>} : vector<2x32xbf16>, vector<32x128xbf16>, vector<2x128xf32> -> vector<2x128xf32>
      %21 = arith.addf %16, %20 : vector<2x128xf32>
      %22 = vector.extract_strided_slice %6 {offsets = [3, 0], sizes = [2, 32], strides = [1, 1]} : vector<6x32xbf16> to vector<2x32xbf16>
      %c3 = arith.constant 3 : index
      %c0_16 = arith.constant 0 : index
      %c0_17 = arith.constant 0 : index
      %23 = vector.load %arg2[%c3, %c0_16, %c0_17] : memref<25x32x128xbf16, #tpu.memory_space<vmem>>, vector<1x32x128xbf16>
      %24 = vector.shape_cast %23 : vector<1x32x128xbf16> to vector<32x128xbf16>
      %cst_18 = arith.constant dense<0.000000e+00> : vector<2x128xf32>
      %25 = tpu.matmul %22, %24, %cst_18 {dimension_numbers = #tpu.dot_dimension_numbers<[1], [0], [0], [1], [0, 0, 1, 1], [], []>} : vector<2x32xbf16>, vector<32x128xbf16>, vector<2x128xf32> -> vector<2x128xf32>
      %26 = arith.addf %21, %25 : vector<2x128xf32>
      %27 = vector.extract_strided_slice %6 {offsets = [4, 0], sizes = [2, 32], strides = [1, 1]} : vector<6x32xbf16> to vector<2x32xbf16>
      %c4 = arith.constant 4 : index
      %c0_19 = arith.constant 0 : index
      %c0_20 = arith.constant 0 : index
      %28 = vector.load %arg2[%c4, %c0_19, %c0_20] : memref<25x32x128xbf16, #tpu.memory_space<vmem>>, vector<1x32x128xbf16>
      %29 = vector.shape_cast %28 : vector<1x32x128xbf16> to vector<32x128xbf16>
      %cst_21 = arith.constant dense<0.000000e+00> : vector<2x128xf32>
      %30 = tpu.matmul %27, %29, %cst_21 {dimension_numbers = #tpu.dot_dimension_numbers<[1], [0], [0], [1], [0, 0, 1, 1], [], []>} : vector<2x32xbf16>, vector<32x128xbf16>, vector<2x128xf32> -> vector<2x128xf32>
      %31 = arith.addf %26, %30 : vector<2x128xf32>
      %c1_i32_22 = arith.constant 1 : i32
      %32 = arith.addi %arg5, %c1_i32_22 : i32
      %c0_23 = arith.constant 0 : index
      %33 = arith.index_cast %32 : i32 to index
      %c0_24 = arith.constant 0 : index
      %c0_25 = arith.constant 0 : index
      %34 = vector.load %arg1[%c0_23, %33, %c0_24, %c0_25] : memref<1x6x6x32xbf16, #tpu.memory_space<vmem>>, vector<1x1x6x32xbf16>
      %35 = vector.shape_cast %34 : vector<1x1x6x32xbf16> to vector<6x32xbf16>
      %36 = vector.extract_strided_slice %35 {offsets = [0, 0], sizes = [2, 32], strides = [1, 1]} : vector<6x32xbf16> to vector<2x32xbf16>
      %c5 = arith.constant 5 : index
      %c0_26 = arith.constant 0 : index
      %c0_27 = arith.constant 0 : index
      %37 = vector.load %arg2[%c5, %c0_26, %c0_27] : memref<25x32x128xbf16, #tpu.memory_space<vmem>>, vector<1x32x128xbf16>
      %38 = vector.shape_cast %37 : vector<1x32x128xbf16> to vector<32x128xbf16>
      %cst_28 = arith.constant dense<0.000000e+00> : vector<2x128xf32>
      %39 = tpu.matmul %36, %38, %cst_28 {dimension_numbers = #tpu.dot_dimension_numbers<[1], [0], [0], [1], [0, 0, 1, 1], [], []>} : vector<2x32xbf16>, vector<32x128xbf16>, vector<2x128xf32> -> vector<2x128xf32>
      %40 = arith.addf %31, %39 : vector<2x128xf32>
      %41 = vector.extract_strided_slice %35 {offsets = [1, 0], sizes = [2, 32], strides = [1, 1]} : vector<6x32xbf16> to vector<2x32xbf16>
      %c6 = arith.constant 6 : index
      %c0_29 = arith.constant 0 : index
      %c0_30 = arith.constant 0 : index
      %42 = vector.load %arg2[%c6, %c0_29, %c0_30] : memref<25x32x128xbf16, #tpu.memory_space<vmem>>, vector<1x32x128xbf16>
      %43 = vector.shape_cast %42 : vector<1x32x128xbf16> to vector<32x128xbf16>
      %cst_31 = arith.constant dense<0.000000e+00> : vector<2x128xf32>
      %44 = tpu.matmul %41, %43, %cst_31 {dimension_numbers = #tpu.dot_dimension_numbers<[1], [0], [0], [1], [0, 0, 1, 1], [], []>} : vector<2x32xbf16>, vector<32x128xbf16>, vector<2x128xf32> -> vector<2x128xf32>
      %45 = arith.addf %40, %44 : vector<2x128xf32>
      %46 = vector.extract_strided_slice %35 {offsets = [2, 0], sizes = [2, 32], strides = [1, 1]} : vector<6x32xbf16> to vector<2x32xbf16>
      %c7 = arith.constant 7 : index
      %c0_32 = arith.constant 0 : index
      %c0_33 = arith.constant 0 : index
      %47 = vector.load %arg2[%c7, %c0_32, %c0_33] : memref<25x32x128xbf16, #tpu.memory_space<vmem>>, vector<1x32x128xbf16>
      %48 = vector.shape_cast %47 : vector<1x32x128xbf16> to vector<32x128xbf16>
      %cst_34 = arith.constant dense<0.000000e+00> : vector<2x128xf32>
      %49 = tpu.matmul %46, %48, %cst_34 {dimension_numbers = #tpu.dot_dimension_numbers<[1], [0], [0], [1], [0, 0, 1, 1], [], []>} : vector<2x32xbf16>, vector<32x128xbf16>, vector<2x128xf32> -> vector<2x128xf32>
      %50 = arith.addf %45, %49 : vector<2x128xf32>
      %51 = vector.extract_strided_slice %35 {offsets = [3, 0], sizes = [2, 32], strides = [1, 1]} : vector<6x32xbf16> to vector<2x32xbf16>
      %c8 = arith.constant 8 : index
      %c0_35 = arith.constant 0 : index
      %c0_36 = arith.constant 0 : index
      %52 = vector.load %arg2[%c8, %c0_35, %c0_36] : memref<25x32x128xbf16, #tpu.memory_space<vmem>>, vector<1x32x128xbf16>
      %53 = vector.shape_cast %52 : vector<1x32x128xbf16> to vector<32x128xbf16>
      %cst_37 = arith.constant dense<0.000000e+00> : vector<2x128xf32>
      %54 = tpu.matmul %51, %53, %cst_37 {dimension_numbers = #tpu.dot_dimension_numbers<[1], [0], [0], [1], [0, 0, 1, 1], [], []>} : vector<2x32xbf16>, vector<32x128xbf16>, vector<2x128xf32> -> vector<2x128xf32>
      %55 = arith.addf %50, %54 : vector<2x128xf32>
      %56 = vector.extract_strided_slice %35 {offsets = [4, 0], sizes = [2, 32], strides = [1, 1]} : vector<6x32xbf16> to vector<2x32xbf16>
      %c9 = arith.constant 9 : index
      %c0_38 = arith.constant 0 : index
      %c0_39 = arith.constant 0 : index
      %57 = vector.load %arg2[%c9, %c0_38, %c0_39] : memref<25x32x128xbf16, #tpu.memory_space<vmem>>, vector<1x32x128xbf16>
      %58 = vector.shape_cast %57 : vector<1x32x128xbf16> to vector<32x128xbf16>
      %cst_40 = arith.constant dense<0.000000e+00> : vector<2x128xf32>
      %59 = tpu.matmul %56, %58, %cst_40 {dimension_numbers = #tpu.dot_dimension_numbers<[1], [0], [0], [1], [0, 0, 1, 1], [], []>} : vector<2x32xbf16>, vector<32x128xbf16>, vector<2x128xf32> -> vector<2x128xf32>
      %60 = arith.addf %55, %59 : vector<2x128xf32>
      %c2_i32_41 = arith.constant 2 : i32
      %61 = arith.addi %arg5, %c2_i32_41 : i32
      %c0_42 = arith.constant 0 : index
      %62 = arith.index_cast %61 : i32 to index
      %c0_43 = arith.constant 0 : index
      %c0_44 = arith.constant 0 : index
      %63 = vector.load %arg1[%c0_42, %62, %c0_43, %c0_44] : memref<1x6x6x32xbf16, #tpu.memory_space<vmem>>, vector<1x1x6x32xbf16>
      %64 = vector.shape_cast %63 : vector<1x1x6x32xbf16> to vector<6x32xbf16>
      %65 = vector.extract_strided_slice %64 {offsets = [0, 0], sizes = [2, 32], strides = [1, 1]} : vector<6x32xbf16> to vector<2x32xbf16>
      %c10 = arith.constant 10 : index
      %c0_45 = arith.constant 0 : index
      %c0_46 = arith.constant 0 : index
      %66 = vector.load %arg2[%c10, %c0_45, %c0_46] : memref<25x32x128xbf16, #tpu.memory_space<vmem>>, vector<1x32x128xbf16>
      %67 = vector.shape_cast %66 : vector<1x32x128xbf16> to vector<32x128xbf16>
      %cst_47 = arith.constant dense<0.000000e+00> : vector<2x128xf32>
      %68 = tpu.matmul %65, %67, %cst_47 {dimension_numbers = #tpu.dot_dimension_numbers<[1], [0], [0], [1], [0, 0, 1, 1], [], []>} : vector<2x32xbf16>, vector<32x128xbf16>, vector<2x128xf32> -> vector<2x128xf32>
      %69 = arith.addf %60, %68 : vector<2x128xf32>
      %70 = vector.extract_strided_slice %64 {offsets = [1, 0], sizes = [2, 32], strides = [1, 1]} : vector<6x32xbf16> to vector<2x32xbf16>
      %c11 = arith.constant 11 : index
      %c0_48 = arith.constant 0 : index
      %c0_49 = arith.constant 0 : index
      %71 = vector.load %arg2[%c11, %c0_48, %c0_49] : memref<25x32x128xbf16, #tpu.memory_space<vmem>>, vector<1x32x128xbf16>
      %72 = vector.shape_cast %71 : vector<1x32x128xbf16> to vector<32x128xbf16>
      %cst_50 = arith.constant dense<0.000000e+00> : vector<2x128xf32>
      %73 = tpu.matmul %70, %72, %cst_50 {dimension_numbers = #tpu.dot_dimension_numbers<[1], [0], [0], [1], [0, 0, 1, 1], [], []>} : vector<2x32xbf16>, vector<32x128xbf16>, vector<2x128xf32> -> vector<2x128xf32>
      %74 = arith.addf %69, %73 : vector<2x128xf32>
      %75 = vector.extract_strided_slice %64 {offsets = [2, 0], sizes = [2, 32], strides = [1, 1]} : vector<6x32xbf16> to vector<2x32xbf16>
      %c12 = arith.constant 12 : index
      %c0_51 = arith.constant 0 : index
      %c0_52 = arith.constant 0 : index
      %76 = vector.load %arg2[%c12, %c0_51, %c0_52] : memref<25x32x128xbf16, #tpu.memory_space<vmem>>, vector<1x32x128xbf16>
      %77 = vector.shape_cast %76 : vector<1x32x128xbf16> to vector<32x128xbf16>
      %cst_53 = arith.constant dense<0.000000e+00> : vector<2x128xf32>
      %78 = tpu.matmul %75, %77, %cst_53 {dimension_numbers = #tpu.dot_dimension_numbers<[1], [0], [0], [1], [0, 0, 1, 1], [], []>} : vector<2x32xbf16>, vector<32x128xbf16>, vector<2x128xf32> -> vector<2x128xf32>
      %79 = arith.addf %74, %78 : vector<2x128xf32>
      %80 = vector.extract_strided_slice %64 {offsets = [3, 0], sizes = [2, 32], strides = [1, 1]} : vector<6x32xbf16> to vector<2x32xbf16>
      %c13 = arith.constant 13 : index
      %c0_54 = arith.constant 0 : index
      %c0_55 = arith.constant 0 : index
      %81 = vector.load %arg2[%c13, %c0_54, %c0_55] : memref<25x32x128xbf16, #tpu.memory_space<vmem>>, vector<1x32x128xbf16>
      %82 = vector.shape_cast %81 : vector<1x32x128xbf16> to vector<32x128xbf16>
      %cst_56 = arith.constant dense<0.000000e+00> : vector<2x128xf32>
      %83 = tpu.matmul %80, %82, %cst_56 {dimension_numbers = #tpu.dot_dimension_numbers<[1], [0], [0], [1], [0, 0, 1, 1], [], []>} : vector<2x32xbf16>, vector<32x128xbf16>, vector<2x128xf32> -> vector<2x128xf32>
      %84 = arith.addf %79, %83 : vector<2x128xf32>
      %85 = vector.extract_strided_slice %64 {offsets = [4, 0], sizes = [2, 32], strides = [1, 1]} : vector<6x32xbf16> to vector<2x32xbf16>
      %c14 = arith.constant 14 : index
      %c0_57 = arith.constant 0 : index
      %c0_58 = arith.constant 0 : index
      %86 = vector.load %arg2[%c14, %c0_57, %c0_58] : memref<25x32x128xbf16, #tpu.memory_space<vmem>>, vector<1x32x128xbf16>
      %87 = vector.shape_cast %86 : vector<1x32x128xbf16> to vector<32x128xbf16>
      %cst_59 = arith.constant dense<0.000000e+00> : vector<2x128xf32>
      %88 = tpu.matmul %85, %87, %cst_59 {dimension_numbers = #tpu.dot_dimension_numbers<[1], [0], [0], [1], [0, 0, 1, 1], [], []>} : vector<2x32xbf16>, vector<32x128xbf16>, vector<2x128xf32> -> vector<2x128xf32>
      %89 = arith.addf %84, %88 : vector<2x128xf32>
      %c3_i32 = arith.constant 3 : i32
      %90 = arith.addi %arg5, %c3_i32 : i32
      %c0_60 = arith.constant 0 : index
      %91 = arith.index_cast %90 : i32 to index
      %c0_61 = arith.constant 0 : index
      %c0_62 = arith.constant 0 : index
      %92 = vector.load %arg1[%c0_60, %91, %c0_61, %c0_62] : memref<1x6x6x32xbf16, #tpu.memory_space<vmem>>, vector<1x1x6x32xbf16>
      %93 = vector.shape_cast %92 : vector<1x1x6x32xbf16> to vector<6x32xbf16>
      %94 = vector.extract_strided_slice %93 {offsets = [0, 0], sizes = [2, 32], strides = [1, 1]} : vector<6x32xbf16> to vector<2x32xbf16>
      %c15 = arith.constant 15 : index
      %c0_63 = arith.constant 0 : index
      %c0_64 = arith.constant 0 : index
      %95 = vector.load %arg2[%c15, %c0_63, %c0_64] : memref<25x32x128xbf16, #tpu.memory_space<vmem>>, vector<1x32x128xbf16>
      %96 = vector.shape_cast %95 : vector<1x32x128xbf16> to vector<32x128xbf16>
      %cst_65 = arith.constant dense<0.000000e+00> : vector<2x128xf32>
      %97 = tpu.matmul %94, %96, %cst_65 {dimension_numbers = #tpu.dot_dimension_numbers<[1], [0], [0], [1], [0, 0, 1, 1], [], []>} : vector<2x32xbf16>, vector<32x128xbf16>, vector<2x128xf32> -> vector<2x128xf32>
      %98 = arith.addf %89, %97 : vector<2x128xf32>
      %99 = vector.extract_strided_slice %93 {offsets = [1, 0], sizes = [2, 32], strides = [1, 1]} : vector<6x32xbf16> to vector<2x32xbf16>
      %c16 = arith.constant 16 : index
      %c0_66 = arith.constant 0 : index
      %c0_67 = arith.constant 0 : index
      %100 = vector.load %arg2[%c16, %c0_66, %c0_67] : memref<25x32x128xbf16, #tpu.memory_space<vmem>>, vector<1x32x128xbf16>
      %101 = vector.shape_cast %100 : vector<1x32x128xbf16> to vector<32x128xbf16>
      %cst_68 = arith.constant dense<0.000000e+00> : vector<2x128xf32>
      %102 = tpu.matmul %99, %101, %cst_68 {dimension_numbers = #tpu.dot_dimension_numbers<[1], [0], [0], [1], [0, 0, 1, 1], [], []>} : vector<2x32xbf16>, vector<32x128xbf16>, vector<2x128xf32> -> vector<2x128xf32>
      %103 = arith.addf %98, %102 : vector<2x128xf32>
      %104 = vector.extract_strided_slice %93 {offsets = [2, 0], sizes = [2, 32], strides = [1, 1]} : vector<6x32xbf16> to vector<2x32xbf16>
      %c17 = arith.constant 17 : index
      %c0_69 = arith.constant 0 : index
      %c0_70 = arith.constant 0 : index
      %105 = vector.load %arg2[%c17, %c0_69, %c0_70] : memref<25x32x128xbf16, #tpu.memory_space<vmem>>, vector<1x32x128xbf16>
      %106 = vector.shape_cast %105 : vector<1x32x128xbf16> to vector<32x128xbf16>
      %cst_71 = arith.constant dense<0.000000e+00> : vector<2x128xf32>
      %107 = tpu.matmul %104, %106, %cst_71 {dimension_numbers = #tpu.dot_dimension_numbers<[1], [0], [0], [1], [0, 0, 1, 1], [], []>} : vector<2x32xbf16>, vector<32x128xbf16>, vector<2x128xf32> -> vector<2x128xf32>
      %108 = arith.addf %103, %107 : vector<2x128xf32>
      %109 = vector.extract_strided_slice %93 {offsets = [3, 0], sizes = [2, 32], strides = [1, 1]} : vector<6x32xbf16> to vector<2x32xbf16>
      %c18 = arith.constant 18 : index
      %c0_72 = arith.constant 0 : index
      %c0_73 = arith.constant 0 : index
      %110 = vector.load %arg2[%c18, %c0_72, %c0_73] : memref<25x32x128xbf16, #tpu.memory_space<vmem>>, vector<1x32x128xbf16>
      %111 = vector.shape_cast %110 : vector<1x32x128xbf16> to vector<32x128xbf16>
      %cst_74 = arith.constant dense<0.000000e+00> : vector<2x128xf32>
      %112 = tpu.matmul %109, %111, %cst_74 {dimension_numbers = #tpu.dot_dimension_numbers<[1], [0], [0], [1], [0, 0, 1, 1], [], []>} : vector<2x32xbf16>, vector<32x128xbf16>, vector<2x128xf32> -> vector<2x128xf32>
      %113 = arith.addf %108, %112 : vector<2x128xf32>
      %114 = vector.extract_strided_slice %93 {offsets = [4, 0], sizes = [2, 32], strides = [1, 1]} : vector<6x32xbf16> to vector<2x32xbf16>
      %c19 = arith.constant 19 : index
      %c0_75 = arith.constant 0 : index
      %c0_76 = arith.constant 0 : index
      %115 = vector.load %arg2[%c19, %c0_75, %c0_76] : memref<25x32x128xbf16, #tpu.memory_space<vmem>>, vector<1x32x128xbf16>
      %116 = vector.shape_cast %115 : vector<1x32x128xbf16> to vector<32x128xbf16>
      %cst_77 = arith.constant dense<0.000000e+00> : vector<2x128xf32>
      %117 = tpu.matmul %114, %116, %cst_77 {dimension_numbers = #tpu.dot_dimension_numbers<[1], [0], [0], [1], [0, 0, 1, 1], [], []>} : vector<2x32xbf16>, vector<32x128xbf16>, vector<2x128xf32> -> vector<2x128xf32>
      %118 = arith.addf %113, %117 : vector<2x128xf32>
      %c4_i32 = arith.constant 4 : i32
      %119 = arith.addi %arg5, %c4_i32 : i32
      %c0_78 = arith.constant 0 : index
      %120 = arith.index_cast %119 : i32 to index
      %c0_79 = arith.constant 0 : index
      %c0_80 = arith.constant 0 : index
      %121 = vector.load %arg1[%c0_78, %120, %c0_79, %c0_80] : memref<1x6x6x32xbf16, #tpu.memory_space<vmem>>, vector<1x1x6x32xbf16>
      %122 = vector.shape_cast %121 : vector<1x1x6x32xbf16> to vector<6x32xbf16>
      %123 = vector.extract_strided_slice %122 {offsets = [0, 0], sizes = [2, 32], strides = [1, 1]} : vector<6x32xbf16> to vector<2x32xbf16>
      %c20 = arith.constant 20 : index
      %c0_81 = arith.constant 0 : index
      %c0_82 = arith.constant 0 : index
      %124 = vector.load %arg2[%c20, %c0_81, %c0_82] : memref<25x32x128xbf16, #tpu.memory_space<vmem>>, vector<1x32x128xbf16>
      %125 = vector.shape_cast %124 : vector<1x32x128xbf16> to vector<32x128xbf16>
      %cst_83 = arith.constant dense<0.000000e+00> : vector<2x128xf32>
      %126 = tpu.matmul %123, %125, %cst_83 {dimension_numbers = #tpu.dot_dimension_numbers<[1], [0], [0], [1], [0, 0, 1, 1], [], []>} : vector<2x32xbf16>, vector<32x128xbf16>, vector<2x128xf32> -> vector<2x128xf32>
      %127 = arith.addf %118, %126 : vector<2x128xf32>
      %128 = vector.extract_strided_slice %122 {offsets = [1, 0], sizes = [2, 32], strides = [1, 1]} : vector<6x32xbf16> to vector<2x32xbf16>
      %c21 = arith.constant 21 : index
      %c0_84 = arith.constant 0 : index
      %c0_85 = arith.constant 0 : index
      %129 = vector.load %arg2[%c21, %c0_84, %c0_85] : memref<25x32x128xbf16, #tpu.memory_space<vmem>>, vector<1x32x128xbf16>
      %130 = vector.shape_cast %129 : vector<1x32x128xbf16> to vector<32x128xbf16>
      %cst_86 = arith.constant dense<0.000000e+00> : vector<2x128xf32>
      %131 = tpu.matmul %128, %130, %cst_86 {dimension_numbers = #tpu.dot_dimension_numbers<[1], [0], [0], [1], [0, 0, 1, 1], [], []>} : vector<2x32xbf16>, vector<32x128xbf16>, vector<2x128xf32> -> vector<2x128xf32>
      %132 = arith.addf %127, %131 : vector<2x128xf32>
      %133 = vector.extract_strided_slice %122 {offsets = [2, 0], sizes = [2, 32], strides = [1, 1]} : vector<6x32xbf16> to vector<2x32xbf16>
      %c22 = arith.constant 22 : index
      %c0_87 = arith.constant 0 : index
      %c0_88 = arith.constant 0 : index
      %134 = vector.load %arg2[%c22, %c0_87, %c0_88] : memref<25x32x128xbf16, #tpu.memory_space<vmem>>, vector<1x32x128xbf16>
      %135 = vector.shape_cast %134 : vector<1x32x128xbf16> to vector<32x128xbf16>
      %cst_89 = arith.constant dense<0.000000e+00> : vector<2x128xf32>
      %136 = tpu.matmul %133, %135, %cst_89 {dimension_numbers = #tpu.dot_dimension_numbers<[1], [0], [0], [1], [0, 0, 1, 1], [], []>} : vector<2x32xbf16>, vector<32x128xbf16>, vector<2x128xf32> -> vector<2x128xf32>
      %137 = arith.addf %132, %136 : vector<2x128xf32>
      %138 = vector.extract_strided_slice %122 {offsets = [3, 0], sizes = [2, 32], strides = [1, 1]} : vector<6x32xbf16> to vector<2x32xbf16>
      %c23 = arith.constant 23 : index
      %c0_90 = arith.constant 0 : index
      %c0_91 = arith.constant 0 : index
      %139 = vector.load %arg2[%c23, %c0_90, %c0_91] : memref<25x32x128xbf16, #tpu.memory_space<vmem>>, vector<1x32x128xbf16>
      %140 = vector.shape_cast %139 : vector<1x32x128xbf16> to vector<32x128xbf16>
      %cst_92 = arith.constant dense<0.000000e+00> : vector<2x128xf32>
      %141 = tpu.matmul %138, %140, %cst_92 {dimension_numbers = #tpu.dot_dimension_numbers<[1], [0], [0], [1], [0, 0, 1, 1], [], []>} : vector<2x32xbf16>, vector<32x128xbf16>, vector<2x128xf32> -> vector<2x128xf32>
      %142 = arith.addf %137, %141 : vector<2x128xf32>
      %143 = vector.extract_strided_slice %122 {offsets = [4, 0], sizes = [2, 32], strides = [1, 1]} : vector<6x32xbf16> to vector<2x32xbf16>
      %c24 = arith.constant 24 : index
      %c0_93 = arith.constant 0 : index
      %c0_94 = arith.constant 0 : index
      %144 = vector.load %arg2[%c24, %c0_93, %c0_94] : memref<25x32x128xbf16, #tpu.memory_space<vmem>>, vector<1x32x128xbf16>
      %145 = vector.shape_cast %144 : vector<1x32x128xbf16> to vector<32x128xbf16>
      %cst_95 = arith.constant dense<0.000000e+00> : vector<2x128xf32>
      %146 = tpu.matmul %143, %145, %cst_95 {dimension_numbers = #tpu.dot_dimension_numbers<[1], [0], [0], [1], [0, 0, 1, 1], [], []>} : vector<2x32xbf16>, vector<32x128xbf16>, vector<2x128xf32> -> vector<2x128xf32>
      %147 = arith.addf %142, %146 : vector<2x128xf32>
      %148 = vector.broadcast %0 : vector<1x128xf32> to vector<2x128xf32>
      %149 = arith.addf %147, %148 : vector<2x128xf32>
      %cst_96 = arith.constant 0.000000e+00 : f32
      %150 = vector.broadcast %cst_96 : f32 to vector<2x128xf32>
      %151 = arith.cmpf oge, %149, %150 : vector<2x128xf32>
      %cst_97 = arith.constant 2.000000e-01 : f32
      %152 = vector.broadcast %cst_97 : f32 to vector<2x128xf32>
      %153 = arith.mulf %152, %149 : vector<2x128xf32>
      %154 = arith.select %151, %149, %153 : vector<2x128xi1>, vector<2x128xf32>
      %155 = arith.truncf %154 : vector<2x128xf32> to vector<2x128xbf16>
      %c0_98 = arith.constant 0 : index
      %156 = arith.index_cast %arg5 : i32 to index
      %c0_99 = arith.constant 0 : index
      %c0_100 = arith.constant 0 : index
      %157 = vector.load %arg4[%c0_98, %156, %c0_99, %c0_100] : memref<1x2x2x128xbf16, #tpu.memory_space<vmem>>, vector<1x1x2x128xbf16>
      %158 = vector.shape_cast %157 : vector<1x1x2x128xbf16> to vector<2x128xbf16>
      %159 = vector.shape_cast %155 : vector<2x128xbf16> to vector<1x1x2x128xbf16>
      tpu.vector_store %arg4[%c0_98, %156, %c0_99, %c0_100], %159 {strides = array<i32>} : memref<1x2x2x128xbf16, #tpu.memory_space<vmem>>, vector<1x1x2x128xbf16>,
    }
    %c2_i32_1 = arith.constant 2 : i32
    return
  }
  func.func @transform_0(%arg0: i32) -> (i32, i32, i32, i32) {
    %c0_i32 = arith.constant 0 : i32
    %c0_i32_0 = arith.constant 0 : i32
    %c0_i32_1 = arith.constant 0 : i32
    %c0_i32_2 = arith.constant 0 : i32
    return %arg0, %c0_i32, %c0_i32_0, %c0_i32_1 : i32, i32, i32, i32
  }
  func.func @transform_1(%arg0: i32) -> (i32, i32, i32) {
    %c0_i32 = arith.constant 0 : i32
    %c0_i32_0 = arith.constant 0 : i32
    %c0_i32_1 = arith.constant 0 : i32
    %c0_i32_2 = arith.constant 0 : i32
    return %c0_i32, %c0_i32_0, %c0_i32_1 : i32, i32, i32
  }
  func.func @transform_2(%arg0: i32) -> (i32, i32) {
    %c0_i32 = arith.constant 0 : i32
    %c0_i32_0 = arith.constant 0 : i32
    %c0_i32_1 = arith.constant 0 : i32
    return %c0_i32, %c0_i32_0 : i32, i32
  }
  func.func @transform_3(%arg0: i32) -> (i32, i32, i32, i32) {
    %c0_i32 = arith.constant 0 : i32
    %c0_i32_0 = arith.constant 0 : i32
    %c0_i32_1 = arith.constant 0 : i32
    %c0_i32_2 = arith.constant 0 : i32
    return %arg0, %c0_i32, %c0_i32_0, %c0_i32_1 : i32, i32, i32, i32
  }
}

module attributes {stable_mosaic.version = 11 : i64} {
  func.func @_conv_tap_kernel(%arg0: i32, %arg1: memref<1x4x4x64xbf16, #tpu.memory_space<vmem>>, %arg2: memref<9x64x128xbf16, #tpu.memory_space<vmem>>, %arg3: memref<1x128xf32, #tpu.memory_space<vmem>>, %arg4: memref<1x2x2x128xbf16, #tpu.memory_space<vmem>>) attributes {dimension_semantics = [#tpu.dimension_semantics<parallel>], iteration_bounds = array<i64: 2>, scalar_prefetch = 0 : i64, scratch_operands = 0 : i64, tpu.core_type = #tpu.core_type<tc>, window_params = [{transform_indices = @transform_0, window_bounds = array<i64: 1, 4, 4, 64>}, {pipeline_mode = #tpu.pipeline_mode<synchronous>, transform_indices = @transform_1, window_bounds = array<i64: 9, 64, 128>}, {pipeline_mode = #tpu.pipeline_mode<synchronous>, transform_indices = @transform_2, window_bounds = array<i64: 1, 128>}, {transform_indices = @transform_3, window_bounds = array<i64: 1, 2, 2, 128>}]} {
    %c0 = arith.constant 0 : index
    %c0_0 = arith.constant 0 : index
    %0 = vector.load %arg3[%c0, %c0_0] : memref<1x128xf32, #tpu.memory_space<vmem>>, vector<1x128xf32>
    %c0_i32 = arith.constant 0 : i32
    %c2_i32 = arith.constant 2 : i32
    %1 = arith.addi %c0_i32, %c2_i32 : i32
    %c1_i32 = arith.constant 1 : i32
    scf.for %arg5 = %c0_i32 to %1 step %c1_i32  : i32 {
      %cst = arith.constant 0.000000e+00 : f32
      %2 = vector.broadcast %cst : f32 to vector<2x128xf32>
      %c0_i32_2 = arith.constant 0 : i32
      %3 = arith.addi %arg5, %c0_i32_2 : i32
      %c0_3 = arith.constant 0 : index
      %4 = arith.index_cast %3 : i32 to index
      %c0_4 = arith.constant 0 : index
      %c0_5 = arith.constant 0 : index
      %5 = vector.load %arg1[%c0_3, %4, %c0_4, %c0_5] : memref<1x4x4x64xbf16, #tpu.memory_space<vmem>>, vector<1x1x4x64xbf16>
      %6 = vector.shape_cast %5 : vector<1x1x4x64xbf16> to vector<4x64xbf16>
      %7 = vector.extract_strided_slice %6 {offsets = [0, 0], sizes = [2, 64], strides = [1, 1]} : vector<4x64xbf16> to vector<2x64xbf16>
      %c0_6 = arith.constant 0 : index
      %c0_7 = arith.constant 0 : index
      %c0_8 = arith.constant 0 : index
      %8 = vector.load %arg2[%c0_6, %c0_7, %c0_8] : memref<9x64x128xbf16, #tpu.memory_space<vmem>>, vector<1x64x128xbf16>
      %9 = vector.shape_cast %8 : vector<1x64x128xbf16> to vector<64x128xbf16>
      %cst_9 = arith.constant dense<0.000000e+00> : vector<2x128xf32>
      %10 = tpu.matmul %7, %9, %cst_9 {dimension_numbers = #tpu.dot_dimension_numbers<[1], [0], [0], [1], [0, 0, 1, 1], [], []>} : vector<2x64xbf16>, vector<64x128xbf16>, vector<2x128xf32> -> vector<2x128xf32>
      %11 = arith.addf %2, %10 : vector<2x128xf32>
      %12 = vector.extract_strided_slice %6 {offsets = [1, 0], sizes = [2, 64], strides = [1, 1]} : vector<4x64xbf16> to vector<2x64xbf16>
      %c1 = arith.constant 1 : index
      %c0_10 = arith.constant 0 : index
      %c0_11 = arith.constant 0 : index
      %13 = vector.load %arg2[%c1, %c0_10, %c0_11] : memref<9x64x128xbf16, #tpu.memory_space<vmem>>, vector<1x64x128xbf16>
      %14 = vector.shape_cast %13 : vector<1x64x128xbf16> to vector<64x128xbf16>
      %cst_12 = arith.constant dense<0.000000e+00> : vector<2x128xf32>
      %15 = tpu.matmul %12, %14, %cst_12 {dimension_numbers = #tpu.dot_dimension_numbers<[1], [0], [0], [1], [0, 0, 1, 1], [], []>} : vector<2x64xbf16>, vector<64x128xbf16>, vector<2x128xf32> -> vector<2x128xf32>
      %16 = arith.addf %11, %15 : vector<2x128xf32>
      %17 = vector.extract_strided_slice %6 {offsets = [2, 0], sizes = [2, 64], strides = [1, 1]} : vector<4x64xbf16> to vector<2x64xbf16>
      %c2 = arith.constant 2 : index
      %c0_13 = arith.constant 0 : index
      %c0_14 = arith.constant 0 : index
      %18 = vector.load %arg2[%c2, %c0_13, %c0_14] : memref<9x64x128xbf16, #tpu.memory_space<vmem>>, vector<1x64x128xbf16>
      %19 = vector.shape_cast %18 : vector<1x64x128xbf16> to vector<64x128xbf16>
      %cst_15 = arith.constant dense<0.000000e+00> : vector<2x128xf32>
      %20 = tpu.matmul %17, %19, %cst_15 {dimension_numbers = #tpu.dot_dimension_numbers<[1], [0], [0], [1], [0, 0, 1, 1], [], []>} : vector<2x64xbf16>, vector<64x128xbf16>, vector<2x128xf32> -> vector<2x128xf32>
      %21 = arith.addf %16, %20 : vector<2x128xf32>
      %c1_i32_16 = arith.constant 1 : i32
      %22 = arith.addi %arg5, %c1_i32_16 : i32
      %c0_17 = arith.constant 0 : index
      %23 = arith.index_cast %22 : i32 to index
      %c0_18 = arith.constant 0 : index
      %c0_19 = arith.constant 0 : index
      %24 = vector.load %arg1[%c0_17, %23, %c0_18, %c0_19] : memref<1x4x4x64xbf16, #tpu.memory_space<vmem>>, vector<1x1x4x64xbf16>
      %25 = vector.shape_cast %24 : vector<1x1x4x64xbf16> to vector<4x64xbf16>
      %26 = vector.extract_strided_slice %25 {offsets = [0, 0], sizes = [2, 64], strides = [1, 1]} : vector<4x64xbf16> to vector<2x64xbf16>
      %c3 = arith.constant 3 : index
      %c0_20 = arith.constant 0 : index
      %c0_21 = arith.constant 0 : index
      %27 = vector.load %arg2[%c3, %c0_20, %c0_21] : memref<9x64x128xbf16, #tpu.memory_space<vmem>>, vector<1x64x128xbf16>
      %28 = vector.shape_cast %27 : vector<1x64x128xbf16> to vector<64x128xbf16>
      %cst_22 = arith.constant dense<0.000000e+00> : vector<2x128xf32>
      %29 = tpu.matmul %26, %28, %cst_22 {dimension_numbers = #tpu.dot_dimension_numbers<[1], [0], [0], [1], [0, 0, 1, 1], [], []>} : vector<2x64xbf16>, vector<64x128xbf16>, vector<2x128xf32> -> vector<2x128xf32>
      %30 = arith.addf %21, %29 : vector<2x128xf32>
      %31 = vector.extract_strided_slice %25 {offsets = [1, 0], sizes = [2, 64], strides = [1, 1]} : vector<4x64xbf16> to vector<2x64xbf16>
      %c4 = arith.constant 4 : index
      %c0_23 = arith.constant 0 : index
      %c0_24 = arith.constant 0 : index
      %32 = vector.load %arg2[%c4, %c0_23, %c0_24] : memref<9x64x128xbf16, #tpu.memory_space<vmem>>, vector<1x64x128xbf16>
      %33 = vector.shape_cast %32 : vector<1x64x128xbf16> to vector<64x128xbf16>
      %cst_25 = arith.constant dense<0.000000e+00> : vector<2x128xf32>
      %34 = tpu.matmul %31, %33, %cst_25 {dimension_numbers = #tpu.dot_dimension_numbers<[1], [0], [0], [1], [0, 0, 1, 1], [], []>} : vector<2x64xbf16>, vector<64x128xbf16>, vector<2x128xf32> -> vector<2x128xf32>
      %35 = arith.addf %30, %34 : vector<2x128xf32>
      %36 = vector.extract_strided_slice %25 {offsets = [2, 0], sizes = [2, 64], strides = [1, 1]} : vector<4x64xbf16> to vector<2x64xbf16>
      %c5 = arith.constant 5 : index
      %c0_26 = arith.constant 0 : index
      %c0_27 = arith.constant 0 : index
      %37 = vector.load %arg2[%c5, %c0_26, %c0_27] : memref<9x64x128xbf16, #tpu.memory_space<vmem>>, vector<1x64x128xbf16>
      %38 = vector.shape_cast %37 : vector<1x64x128xbf16> to vector<64x128xbf16>
      %cst_28 = arith.constant dense<0.000000e+00> : vector<2x128xf32>
      %39 = tpu.matmul %36, %38, %cst_28 {dimension_numbers = #tpu.dot_dimension_numbers<[1], [0], [0], [1], [0, 0, 1, 1], [], []>} : vector<2x64xbf16>, vector<64x128xbf16>, vector<2x128xf32> -> vector<2x128xf32>
      %40 = arith.addf %35, %39 : vector<2x128xf32>
      %c2_i32_29 = arith.constant 2 : i32
      %41 = arith.addi %arg5, %c2_i32_29 : i32
      %c0_30 = arith.constant 0 : index
      %42 = arith.index_cast %41 : i32 to index
      %c0_31 = arith.constant 0 : index
      %c0_32 = arith.constant 0 : index
      %43 = vector.load %arg1[%c0_30, %42, %c0_31, %c0_32] : memref<1x4x4x64xbf16, #tpu.memory_space<vmem>>, vector<1x1x4x64xbf16>
      %44 = vector.shape_cast %43 : vector<1x1x4x64xbf16> to vector<4x64xbf16>
      %45 = vector.extract_strided_slice %44 {offsets = [0, 0], sizes = [2, 64], strides = [1, 1]} : vector<4x64xbf16> to vector<2x64xbf16>
      %c6 = arith.constant 6 : index
      %c0_33 = arith.constant 0 : index
      %c0_34 = arith.constant 0 : index
      %46 = vector.load %arg2[%c6, %c0_33, %c0_34] : memref<9x64x128xbf16, #tpu.memory_space<vmem>>, vector<1x64x128xbf16>
      %47 = vector.shape_cast %46 : vector<1x64x128xbf16> to vector<64x128xbf16>
      %cst_35 = arith.constant dense<0.000000e+00> : vector<2x128xf32>
      %48 = tpu.matmul %45, %47, %cst_35 {dimension_numbers = #tpu.dot_dimension_numbers<[1], [0], [0], [1], [0, 0, 1, 1], [], []>} : vector<2x64xbf16>, vector<64x128xbf16>, vector<2x128xf32> -> vector<2x128xf32>
      %49 = arith.addf %40, %48 : vector<2x128xf32>
      %50 = vector.extract_strided_slice %44 {offsets = [1, 0], sizes = [2, 64], strides = [1, 1]} : vector<4x64xbf16> to vector<2x64xbf16>
      %c7 = arith.constant 7 : index
      %c0_36 = arith.constant 0 : index
      %c0_37 = arith.constant 0 : index
      %51 = vector.load %arg2[%c7, %c0_36, %c0_37] : memref<9x64x128xbf16, #tpu.memory_space<vmem>>, vector<1x64x128xbf16>
      %52 = vector.shape_cast %51 : vector<1x64x128xbf16> to vector<64x128xbf16>
      %cst_38 = arith.constant dense<0.000000e+00> : vector<2x128xf32>
      %53 = tpu.matmul %50, %52, %cst_38 {dimension_numbers = #tpu.dot_dimension_numbers<[1], [0], [0], [1], [0, 0, 1, 1], [], []>} : vector<2x64xbf16>, vector<64x128xbf16>, vector<2x128xf32> -> vector<2x128xf32>
      %54 = arith.addf %49, %53 : vector<2x128xf32>
      %55 = vector.extract_strided_slice %44 {offsets = [2, 0], sizes = [2, 64], strides = [1, 1]} : vector<4x64xbf16> to vector<2x64xbf16>
      %c8 = arith.constant 8 : index
      %c0_39 = arith.constant 0 : index
      %c0_40 = arith.constant 0 : index
      %56 = vector.load %arg2[%c8, %c0_39, %c0_40] : memref<9x64x128xbf16, #tpu.memory_space<vmem>>, vector<1x64x128xbf16>
      %57 = vector.shape_cast %56 : vector<1x64x128xbf16> to vector<64x128xbf16>
      %cst_41 = arith.constant dense<0.000000e+00> : vector<2x128xf32>
      %58 = tpu.matmul %55, %57, %cst_41 {dimension_numbers = #tpu.dot_dimension_numbers<[1], [0], [0], [1], [0, 0, 1, 1], [], []>} : vector<2x64xbf16>, vector<64x128xbf16>, vector<2x128xf32> -> vector<2x128xf32>
      %59 = arith.addf %54, %58 : vector<2x128xf32>
      %60 = vector.broadcast %0 : vector<1x128xf32> to vector<2x128xf32>
      %61 = arith.addf %59, %60 : vector<2x128xf32>
      %cst_42 = arith.constant 0.000000e+00 : f32
      %62 = vector.broadcast %cst_42 : f32 to vector<2x128xf32>
      %63 = arith.cmpf oge, %61, %62 : vector<2x128xf32>
      %cst_43 = arith.constant 2.000000e-01 : f32
      %64 = vector.broadcast %cst_43 : f32 to vector<2x128xf32>
      %65 = arith.mulf %64, %61 : vector<2x128xf32>
      %66 = arith.select %63, %61, %65 : vector<2x128xi1>, vector<2x128xf32>
      %67 = arith.truncf %66 : vector<2x128xf32> to vector<2x128xbf16>
      %c0_44 = arith.constant 0 : index
      %68 = arith.index_cast %arg5 : i32 to index
      %c0_45 = arith.constant 0 : index
      %c0_46 = arith.constant 0 : index
      %69 = vector.load %arg4[%c0_44, %68, %c0_45, %c0_46] : memref<1x2x2x128xbf16, #tpu.memory_space<vmem>>, vector<1x1x2x128xbf16>
      %70 = vector.shape_cast %69 : vector<1x1x2x128xbf16> to vector<2x128xbf16>
      %71 = vector.shape_cast %67 : vector<2x128xbf16> to vector<1x1x2x128xbf16>
      tpu.vector_store %arg4[%c0_44, %68, %c0_45, %c0_46], %71 {strides = array<i32>} : memref<1x2x2x128xbf16, #tpu.memory_space<vmem>>, vector<1x1x2x128xbf16>,
    }
    %c2_i32_1 = arith.constant 2 : i32
    return
  }
  func.func @transform_0(%arg0: i32) -> (i32, i32, i32, i32) {
    %c0_i32 = arith.constant 0 : i32
    %c0_i32_0 = arith.constant 0 : i32
    %c0_i32_1 = arith.constant 0 : i32
    %c0_i32_2 = arith.constant 0 : i32
    return %arg0, %c0_i32, %c0_i32_0, %c0_i32_1 : i32, i32, i32, i32
  }
  func.func @transform_1(%arg0: i32) -> (i32, i32, i32) {
    %c0_i32 = arith.constant 0 : i32
    %c0_i32_0 = arith.constant 0 : i32
    %c0_i32_1 = arith.constant 0 : i32
    %c0_i32_2 = arith.constant 0 : i32
    return %c0_i32, %c0_i32_0, %c0_i32_1 : i32, i32, i32
  }
  func.func @transform_2(%arg0: i32) -> (i32, i32) {
    %c0_i32 = arith.constant 0 : i32
    %c0_i32_0 = arith.constant 0 : i32
    %c0_i32_1 = arith.constant 0 : i32
    return %c0_i32, %c0_i32_0 : i32, i32
  }
  func.func @transform_3(%arg0: i32) -> (i32, i32, i32, i32) {
    %c0_i32 = arith.constant 0 : i32
    %c0_i32_0 = arith.constant 0 : i32
    %c0_i32_1 = arith.constant 0 : i32
    %c0_i32_2 = arith.constant 0 : i32
    return %arg0, %c0_i32, %c0_i32_0, %c0_i32_1 : i32, i32, i32, i32
  }
}

module attributes {stable_mosaic.version = 11 : i64} {
  func.func @_conv_tap_kernel(%arg0: i32, %arg1: memref<1x6x6x64xbf16, #tpu.memory_space<vmem>>, %arg2: memref<25x64x128xbf16, #tpu.memory_space<vmem>>, %arg3: memref<1x128xf32, #tpu.memory_space<vmem>>, %arg4: memref<1x2x2x128xbf16, #tpu.memory_space<vmem>>) attributes {dimension_semantics = [#tpu.dimension_semantics<parallel>], iteration_bounds = array<i64: 2>, scalar_prefetch = 0 : i64, scratch_operands = 0 : i64, tpu.core_type = #tpu.core_type<tc>, window_params = [{transform_indices = @transform_0, window_bounds = array<i64: 1, 6, 6, 64>}, {pipeline_mode = #tpu.pipeline_mode<synchronous>, transform_indices = @transform_1, window_bounds = array<i64: 25, 64, 128>}, {pipeline_mode = #tpu.pipeline_mode<synchronous>, transform_indices = @transform_2, window_bounds = array<i64: 1, 128>}, {transform_indices = @transform_3, window_bounds = array<i64: 1, 2, 2, 128>}]} {
    %c0 = arith.constant 0 : index
    %c0_0 = arith.constant 0 : index
    %0 = vector.load %arg3[%c0, %c0_0] : memref<1x128xf32, #tpu.memory_space<vmem>>, vector<1x128xf32>
    %c0_i32 = arith.constant 0 : i32
    %c2_i32 = arith.constant 2 : i32
    %1 = arith.addi %c0_i32, %c2_i32 : i32
    %c1_i32 = arith.constant 1 : i32
    scf.for %arg5 = %c0_i32 to %1 step %c1_i32  : i32 {
      %cst = arith.constant 0.000000e+00 : f32
      %2 = vector.broadcast %cst : f32 to vector<2x128xf32>
      %c0_i32_2 = arith.constant 0 : i32
      %3 = arith.addi %arg5, %c0_i32_2 : i32
      %c0_3 = arith.constant 0 : index
      %4 = arith.index_cast %3 : i32 to index
      %c0_4 = arith.constant 0 : index
      %c0_5 = arith.constant 0 : index
      %5 = vector.load %arg1[%c0_3, %4, %c0_4, %c0_5] : memref<1x6x6x64xbf16, #tpu.memory_space<vmem>>, vector<1x1x6x64xbf16>
      %6 = vector.shape_cast %5 : vector<1x1x6x64xbf16> to vector<6x64xbf16>
      %7 = vector.extract_strided_slice %6 {offsets = [0, 0], sizes = [2, 64], strides = [1, 1]} : vector<6x64xbf16> to vector<2x64xbf16>
      %c0_6 = arith.constant 0 : index
      %c0_7 = arith.constant 0 : index
      %c0_8 = arith.constant 0 : index
      %8 = vector.load %arg2[%c0_6, %c0_7, %c0_8] : memref<25x64x128xbf16, #tpu.memory_space<vmem>>, vector<1x64x128xbf16>
      %9 = vector.shape_cast %8 : vector<1x64x128xbf16> to vector<64x128xbf16>
      %cst_9 = arith.constant dense<0.000000e+00> : vector<2x128xf32>
      %10 = tpu.matmul %7, %9, %cst_9 {dimension_numbers = #tpu.dot_dimension_numbers<[1], [0], [0], [1], [0, 0, 1, 1], [], []>} : vector<2x64xbf16>, vector<64x128xbf16>, vector<2x128xf32> -> vector<2x128xf32>
      %11 = arith.addf %2, %10 : vector<2x128xf32>
      %12 = vector.extract_strided_slice %6 {offsets = [1, 0], sizes = [2, 64], strides = [1, 1]} : vector<6x64xbf16> to vector<2x64xbf16>
      %c1 = arith.constant 1 : index
      %c0_10 = arith.constant 0 : index
      %c0_11 = arith.constant 0 : index
      %13 = vector.load %arg2[%c1, %c0_10, %c0_11] : memref<25x64x128xbf16, #tpu.memory_space<vmem>>, vector<1x64x128xbf16>
      %14 = vector.shape_cast %13 : vector<1x64x128xbf16> to vector<64x128xbf16>
      %cst_12 = arith.constant dense<0.000000e+00> : vector<2x128xf32>
      %15 = tpu.matmul %12, %14, %cst_12 {dimension_numbers = #tpu.dot_dimension_numbers<[1], [0], [0], [1], [0, 0, 1, 1], [], []>} : vector<2x64xbf16>, vector<64x128xbf16>, vector<2x128xf32> -> vector<2x128xf32>
      %16 = arith.addf %11, %15 : vector<2x128xf32>
      %17 = vector.extract_strided_slice %6 {offsets = [2, 0], sizes = [2, 64], strides = [1, 1]} : vector<6x64xbf16> to vector<2x64xbf16>
      %c2 = arith.constant 2 : index
      %c0_13 = arith.constant 0 : index
      %c0_14 = arith.constant 0 : index
      %18 = vector.load %arg2[%c2, %c0_13, %c0_14] : memref<25x64x128xbf16, #tpu.memory_space<vmem>>, vector<1x64x128xbf16>
      %19 = vector.shape_cast %18 : vector<1x64x128xbf16> to vector<64x128xbf16>
      %cst_15 = arith.constant dense<0.000000e+00> : vector<2x128xf32>
      %20 = tpu.matmul %17, %19, %cst_15 {dimension_numbers = #tpu.dot_dimension_numbers<[1], [0], [0], [1], [0, 0, 1, 1], [], []>} : vector<2x64xbf16>, vector<64x128xbf16>, vector<2x128xf32> -> vector<2x128xf32>
      %21 = arith.addf %16, %20 : vector<2x128xf32>
      %22 = vector.extract_strided_slice %6 {offsets = [3, 0], sizes = [2, 64], strides = [1, 1]} : vector<6x64xbf16> to vector<2x64xbf16>
      %c3 = arith.constant 3 : index
      %c0_16 = arith.constant 0 : index
      %c0_17 = arith.constant 0 : index
      %23 = vector.load %arg2[%c3, %c0_16, %c0_17] : memref<25x64x128xbf16, #tpu.memory_space<vmem>>, vector<1x64x128xbf16>
      %24 = vector.shape_cast %23 : vector<1x64x128xbf16> to vector<64x128xbf16>
      %cst_18 = arith.constant dense<0.000000e+00> : vector<2x128xf32>
      %25 = tpu.matmul %22, %24, %cst_18 {dimension_numbers = #tpu.dot_dimension_numbers<[1], [0], [0], [1], [0, 0, 1, 1], [], []>} : vector<2x64xbf16>, vector<64x128xbf16>, vector<2x128xf32> -> vector<2x128xf32>
      %26 = arith.addf %21, %25 : vector<2x128xf32>
      %27 = vector.extract_strided_slice %6 {offsets = [4, 0], sizes = [2, 64], strides = [1, 1]} : vector<6x64xbf16> to vector<2x64xbf16>
      %c4 = arith.constant 4 : index
      %c0_19 = arith.constant 0 : index
      %c0_20 = arith.constant 0 : index
      %28 = vector.load %arg2[%c4, %c0_19, %c0_20] : memref<25x64x128xbf16, #tpu.memory_space<vmem>>, vector<1x64x128xbf16>
      %29 = vector.shape_cast %28 : vector<1x64x128xbf16> to vector<64x128xbf16>
      %cst_21 = arith.constant dense<0.000000e+00> : vector<2x128xf32>
      %30 = tpu.matmul %27, %29, %cst_21 {dimension_numbers = #tpu.dot_dimension_numbers<[1], [0], [0], [1], [0, 0, 1, 1], [], []>} : vector<2x64xbf16>, vector<64x128xbf16>, vector<2x128xf32> -> vector<2x128xf32>
      %31 = arith.addf %26, %30 : vector<2x128xf32>
      %c1_i32_22 = arith.constant 1 : i32
      %32 = arith.addi %arg5, %c1_i32_22 : i32
      %c0_23 = arith.constant 0 : index
      %33 = arith.index_cast %32 : i32 to index
      %c0_24 = arith.constant 0 : index
      %c0_25 = arith.constant 0 : index
      %34 = vector.load %arg1[%c0_23, %33, %c0_24, %c0_25] : memref<1x6x6x64xbf16, #tpu.memory_space<vmem>>, vector<1x1x6x64xbf16>
      %35 = vector.shape_cast %34 : vector<1x1x6x64xbf16> to vector<6x64xbf16>
      %36 = vector.extract_strided_slice %35 {offsets = [0, 0], sizes = [2, 64], strides = [1, 1]} : vector<6x64xbf16> to vector<2x64xbf16>
      %c5 = arith.constant 5 : index
      %c0_26 = arith.constant 0 : index
      %c0_27 = arith.constant 0 : index
      %37 = vector.load %arg2[%c5, %c0_26, %c0_27] : memref<25x64x128xbf16, #tpu.memory_space<vmem>>, vector<1x64x128xbf16>
      %38 = vector.shape_cast %37 : vector<1x64x128xbf16> to vector<64x128xbf16>
      %cst_28 = arith.constant dense<0.000000e+00> : vector<2x128xf32>
      %39 = tpu.matmul %36, %38, %cst_28 {dimension_numbers = #tpu.dot_dimension_numbers<[1], [0], [0], [1], [0, 0, 1, 1], [], []>} : vector<2x64xbf16>, vector<64x128xbf16>, vector<2x128xf32> -> vector<2x128xf32>
      %40 = arith.addf %31, %39 : vector<2x128xf32>
      %41 = vector.extract_strided_slice %35 {offsets = [1, 0], sizes = [2, 64], strides = [1, 1]} : vector<6x64xbf16> to vector<2x64xbf16>
      %c6 = arith.constant 6 : index
      %c0_29 = arith.constant 0 : index
      %c0_30 = arith.constant 0 : index
      %42 = vector.load %arg2[%c6, %c0_29, %c0_30] : memref<25x64x128xbf16, #tpu.memory_space<vmem>>, vector<1x64x128xbf16>
      %43 = vector.shape_cast %42 : vector<1x64x128xbf16> to vector<64x128xbf16>
      %cst_31 = arith.constant dense<0.000000e+00> : vector<2x128xf32>
      %44 = tpu.matmul %41, %43, %cst_31 {dimension_numbers = #tpu.dot_dimension_numbers<[1], [0], [0], [1], [0, 0, 1, 1], [], []>} : vector<2x64xbf16>, vector<64x128xbf16>, vector<2x128xf32> -> vector<2x128xf32>
      %45 = arith.addf %40, %44 : vector<2x128xf32>
      %46 = vector.extract_strided_slice %35 {offsets = [2, 0], sizes = [2, 64], strides = [1, 1]} : vector<6x64xbf16> to vector<2x64xbf16>
      %c7 = arith.constant 7 : index
      %c0_32 = arith.constant 0 : index
      %c0_33 = arith.constant 0 : index
      %47 = vector.load %arg2[%c7, %c0_32, %c0_33] : memref<25x64x128xbf16, #tpu.memory_space<vmem>>, vector<1x64x128xbf16>
      %48 = vector.shape_cast %47 : vector<1x64x128xbf16> to vector<64x128xbf16>
      %cst_34 = arith.constant dense<0.000000e+00> : vector<2x128xf32>
      %49 = tpu.matmul %46, %48, %cst_34 {dimension_numbers = #tpu.dot_dimension_numbers<[1], [0], [0], [1], [0, 0, 1, 1], [], []>} : vector<2x64xbf16>, vector<64x128xbf16>, vector<2x128xf32> -> vector<2x128xf32>
      %50 = arith.addf %45, %49 : vector<2x128xf32>
      %51 = vector.extract_strided_slice %35 {offsets = [3, 0], sizes = [2, 64], strides = [1, 1]} : vector<6x64xbf16> to vector<2x64xbf16>
      %c8 = arith.constant 8 : index
      %c0_35 = arith.constant 0 : index
      %c0_36 = arith.constant 0 : index
      %52 = vector.load %arg2[%c8, %c0_35, %c0_36] : memref<25x64x128xbf16, #tpu.memory_space<vmem>>, vector<1x64x128xbf16>
      %53 = vector.shape_cast %52 : vector<1x64x128xbf16> to vector<64x128xbf16>
      %cst_37 = arith.constant dense<0.000000e+00> : vector<2x128xf32>
      %54 = tpu.matmul %51, %53, %cst_37 {dimension_numbers = #tpu.dot_dimension_numbers<[1], [0], [0], [1], [0, 0, 1, 1], [], []>} : vector<2x64xbf16>, vector<64x128xbf16>, vector<2x128xf32> -> vector<2x128xf32>
      %55 = arith.addf %50, %54 : vector<2x128xf32>
      %56 = vector.extract_strided_slice %35 {offsets = [4, 0], sizes = [2, 64], strides = [1, 1]} : vector<6x64xbf16> to vector<2x64xbf16>
      %c9 = arith.constant 9 : index
      %c0_38 = arith.constant 0 : index
      %c0_39 = arith.constant 0 : index
      %57 = vector.load %arg2[%c9, %c0_38, %c0_39] : memref<25x64x128xbf16, #tpu.memory_space<vmem>>, vector<1x64x128xbf16>
      %58 = vector.shape_cast %57 : vector<1x64x128xbf16> to vector<64x128xbf16>
      %cst_40 = arith.constant dense<0.000000e+00> : vector<2x128xf32>
      %59 = tpu.matmul %56, %58, %cst_40 {dimension_numbers = #tpu.dot_dimension_numbers<[1], [0], [0], [1], [0, 0, 1, 1], [], []>} : vector<2x64xbf16>, vector<64x128xbf16>, vector<2x128xf32> -> vector<2x128xf32>
      %60 = arith.addf %55, %59 : vector<2x128xf32>
      %c2_i32_41 = arith.constant 2 : i32
      %61 = arith.addi %arg5, %c2_i32_41 : i32
      %c0_42 = arith.constant 0 : index
      %62 = arith.index_cast %61 : i32 to index
      %c0_43 = arith.constant 0 : index
      %c0_44 = arith.constant 0 : index
      %63 = vector.load %arg1[%c0_42, %62, %c0_43, %c0_44] : memref<1x6x6x64xbf16, #tpu.memory_space<vmem>>, vector<1x1x6x64xbf16>
      %64 = vector.shape_cast %63 : vector<1x1x6x64xbf16> to vector<6x64xbf16>
      %65 = vector.extract_strided_slice %64 {offsets = [0, 0], sizes = [2, 64], strides = [1, 1]} : vector<6x64xbf16> to vector<2x64xbf16>
      %c10 = arith.constant 10 : index
      %c0_45 = arith.constant 0 : index
      %c0_46 = arith.constant 0 : index
      %66 = vector.load %arg2[%c10, %c0_45, %c0_46] : memref<25x64x128xbf16, #tpu.memory_space<vmem>>, vector<1x64x128xbf16>
      %67 = vector.shape_cast %66 : vector<1x64x128xbf16> to vector<64x128xbf16>
      %cst_47 = arith.constant dense<0.000000e+00> : vector<2x128xf32>
      %68 = tpu.matmul %65, %67, %cst_47 {dimension_numbers = #tpu.dot_dimension_numbers<[1], [0], [0], [1], [0, 0, 1, 1], [], []>} : vector<2x64xbf16>, vector<64x128xbf16>, vector<2x128xf32> -> vector<2x128xf32>
      %69 = arith.addf %60, %68 : vector<2x128xf32>
      %70 = vector.extract_strided_slice %64 {offsets = [1, 0], sizes = [2, 64], strides = [1, 1]} : vector<6x64xbf16> to vector<2x64xbf16>
      %c11 = arith.constant 11 : index
      %c0_48 = arith.constant 0 : index
      %c0_49 = arith.constant 0 : index
      %71 = vector.load %arg2[%c11, %c0_48, %c0_49] : memref<25x64x128xbf16, #tpu.memory_space<vmem>>, vector<1x64x128xbf16>
      %72 = vector.shape_cast %71 : vector<1x64x128xbf16> to vector<64x128xbf16>
      %cst_50 = arith.constant dense<0.000000e+00> : vector<2x128xf32>
      %73 = tpu.matmul %70, %72, %cst_50 {dimension_numbers = #tpu.dot_dimension_numbers<[1], [0], [0], [1], [0, 0, 1, 1], [], []>} : vector<2x64xbf16>, vector<64x128xbf16>, vector<2x128xf32> -> vector<2x128xf32>
      %74 = arith.addf %69, %73 : vector<2x128xf32>
      %75 = vector.extract_strided_slice %64 {offsets = [2, 0], sizes = [2, 64], strides = [1, 1]} : vector<6x64xbf16> to vector<2x64xbf16>
      %c12 = arith.constant 12 : index
      %c0_51 = arith.constant 0 : index
      %c0_52 = arith.constant 0 : index
      %76 = vector.load %arg2[%c12, %c0_51, %c0_52] : memref<25x64x128xbf16, #tpu.memory_space<vmem>>, vector<1x64x128xbf16>
      %77 = vector.shape_cast %76 : vector<1x64x128xbf16> to vector<64x128xbf16>
      %cst_53 = arith.constant dense<0.000000e+00> : vector<2x128xf32>
      %78 = tpu.matmul %75, %77, %cst_53 {dimension_numbers = #tpu.dot_dimension_numbers<[1], [0], [0], [1], [0, 0, 1, 1], [], []>} : vector<2x64xbf16>, vector<64x128xbf16>, vector<2x128xf32> -> vector<2x128xf32>
      %79 = arith.addf %74, %78 : vector<2x128xf32>
      %80 = vector.extract_strided_slice %64 {offsets = [3, 0], sizes = [2, 64], strides = [1, 1]} : vector<6x64xbf16> to vector<2x64xbf16>
      %c13 = arith.constant 13 : index
      %c0_54 = arith.constant 0 : index
      %c0_55 = arith.constant 0 : index
      %81 = vector.load %arg2[%c13, %c0_54, %c0_55] : memref<25x64x128xbf16, #tpu.memory_space<vmem>>, vector<1x64x128xbf16>
      %82 = vector.shape_cast %81 : vector<1x64x128xbf16> to vector<64x128xbf16>
      %cst_56 = arith.constant dense<0.000000e+00> : vector<2x128xf32>
      %83 = tpu.matmul %80, %82, %cst_56 {dimension_numbers = #tpu.dot_dimension_numbers<[1], [0], [0], [1], [0, 0, 1, 1], [], []>} : vector<2x64xbf16>, vector<64x128xbf16>, vector<2x128xf32> -> vector<2x128xf32>
      %84 = arith.addf %79, %83 : vector<2x128xf32>
      %85 = vector.extract_strided_slice %64 {offsets = [4, 0], sizes = [2, 64], strides = [1, 1]} : vector<6x64xbf16> to vector<2x64xbf16>
      %c14 = arith.constant 14 : index
      %c0_57 = arith.constant 0 : index
      %c0_58 = arith.constant 0 : index
      %86 = vector.load %arg2[%c14, %c0_57, %c0_58] : memref<25x64x128xbf16, #tpu.memory_space<vmem>>, vector<1x64x128xbf16>
      %87 = vector.shape_cast %86 : vector<1x64x128xbf16> to vector<64x128xbf16>
      %cst_59 = arith.constant dense<0.000000e+00> : vector<2x128xf32>
      %88 = tpu.matmul %85, %87, %cst_59 {dimension_numbers = #tpu.dot_dimension_numbers<[1], [0], [0], [1], [0, 0, 1, 1], [], []>} : vector<2x64xbf16>, vector<64x128xbf16>, vector<2x128xf32> -> vector<2x128xf32>
      %89 = arith.addf %84, %88 : vector<2x128xf32>
      %c3_i32 = arith.constant 3 : i32
      %90 = arith.addi %arg5, %c3_i32 : i32
      %c0_60 = arith.constant 0 : index
      %91 = arith.index_cast %90 : i32 to index
      %c0_61 = arith.constant 0 : index
      %c0_62 = arith.constant 0 : index
      %92 = vector.load %arg1[%c0_60, %91, %c0_61, %c0_62] : memref<1x6x6x64xbf16, #tpu.memory_space<vmem>>, vector<1x1x6x64xbf16>
      %93 = vector.shape_cast %92 : vector<1x1x6x64xbf16> to vector<6x64xbf16>
      %94 = vector.extract_strided_slice %93 {offsets = [0, 0], sizes = [2, 64], strides = [1, 1]} : vector<6x64xbf16> to vector<2x64xbf16>
      %c15 = arith.constant 15 : index
      %c0_63 = arith.constant 0 : index
      %c0_64 = arith.constant 0 : index
      %95 = vector.load %arg2[%c15, %c0_63, %c0_64] : memref<25x64x128xbf16, #tpu.memory_space<vmem>>, vector<1x64x128xbf16>
      %96 = vector.shape_cast %95 : vector<1x64x128xbf16> to vector<64x128xbf16>
      %cst_65 = arith.constant dense<0.000000e+00> : vector<2x128xf32>
      %97 = tpu.matmul %94, %96, %cst_65 {dimension_numbers = #tpu.dot_dimension_numbers<[1], [0], [0], [1], [0, 0, 1, 1], [], []>} : vector<2x64xbf16>, vector<64x128xbf16>, vector<2x128xf32> -> vector<2x128xf32>
      %98 = arith.addf %89, %97 : vector<2x128xf32>
      %99 = vector.extract_strided_slice %93 {offsets = [1, 0], sizes = [2, 64], strides = [1, 1]} : vector<6x64xbf16> to vector<2x64xbf16>
      %c16 = arith.constant 16 : index
      %c0_66 = arith.constant 0 : index
      %c0_67 = arith.constant 0 : index
      %100 = vector.load %arg2[%c16, %c0_66, %c0_67] : memref<25x64x128xbf16, #tpu.memory_space<vmem>>, vector<1x64x128xbf16>
      %101 = vector.shape_cast %100 : vector<1x64x128xbf16> to vector<64x128xbf16>
      %cst_68 = arith.constant dense<0.000000e+00> : vector<2x128xf32>
      %102 = tpu.matmul %99, %101, %cst_68 {dimension_numbers = #tpu.dot_dimension_numbers<[1], [0], [0], [1], [0, 0, 1, 1], [], []>} : vector<2x64xbf16>, vector<64x128xbf16>, vector<2x128xf32> -> vector<2x128xf32>
      %103 = arith.addf %98, %102 : vector<2x128xf32>
      %104 = vector.extract_strided_slice %93 {offsets = [2, 0], sizes = [2, 64], strides = [1, 1]} : vector<6x64xbf16> to vector<2x64xbf16>
      %c17 = arith.constant 17 : index
      %c0_69 = arith.constant 0 : index
      %c0_70 = arith.constant 0 : index
      %105 = vector.load %arg2[%c17, %c0_69, %c0_70] : memref<25x64x128xbf16, #tpu.memory_space<vmem>>, vector<1x64x128xbf16>
      %106 = vector.shape_cast %105 : vector<1x64x128xbf16> to vector<64x128xbf16>
      %cst_71 = arith.constant dense<0.000000e+00> : vector<2x128xf32>
      %107 = tpu.matmul %104, %106, %cst_71 {dimension_numbers = #tpu.dot_dimension_numbers<[1], [0], [0], [1], [0, 0, 1, 1], [], []>} : vector<2x64xbf16>, vector<64x128xbf16>, vector<2x128xf32> -> vector<2x128xf32>
      %108 = arith.addf %103, %107 : vector<2x128xf32>
      %109 = vector.extract_strided_slice %93 {offsets = [3, 0], sizes = [2, 64], strides = [1, 1]} : vector<6x64xbf16> to vector<2x64xbf16>
      %c18 = arith.constant 18 : index
      %c0_72 = arith.constant 0 : index
      %c0_73 = arith.constant 0 : index
      %110 = vector.load %arg2[%c18, %c0_72, %c0_73] : memref<25x64x128xbf16, #tpu.memory_space<vmem>>, vector<1x64x128xbf16>
      %111 = vector.shape_cast %110 : vector<1x64x128xbf16> to vector<64x128xbf16>
      %cst_74 = arith.constant dense<0.000000e+00> : vector<2x128xf32>
      %112 = tpu.matmul %109, %111, %cst_74 {dimension_numbers = #tpu.dot_dimension_numbers<[1], [0], [0], [1], [0, 0, 1, 1], [], []>} : vector<2x64xbf16>, vector<64x128xbf16>, vector<2x128xf32> -> vector<2x128xf32>
      %113 = arith.addf %108, %112 : vector<2x128xf32>
      %114 = vector.extract_strided_slice %93 {offsets = [4, 0], sizes = [2, 64], strides = [1, 1]} : vector<6x64xbf16> to vector<2x64xbf16>
      %c19 = arith.constant 19 : index
      %c0_75 = arith.constant 0 : index
      %c0_76 = arith.constant 0 : index
      %115 = vector.load %arg2[%c19, %c0_75, %c0_76] : memref<25x64x128xbf16, #tpu.memory_space<vmem>>, vector<1x64x128xbf16>
      %116 = vector.shape_cast %115 : vector<1x64x128xbf16> to vector<64x128xbf16>
      %cst_77 = arith.constant dense<0.000000e+00> : vector<2x128xf32>
      %117 = tpu.matmul %114, %116, %cst_77 {dimension_numbers = #tpu.dot_dimension_numbers<[1], [0], [0], [1], [0, 0, 1, 1], [], []>} : vector<2x64xbf16>, vector<64x128xbf16>, vector<2x128xf32> -> vector<2x128xf32>
      %118 = arith.addf %113, %117 : vector<2x128xf32>
      %c4_i32 = arith.constant 4 : i32
      %119 = arith.addi %arg5, %c4_i32 : i32
      %c0_78 = arith.constant 0 : index
      %120 = arith.index_cast %119 : i32 to index
      %c0_79 = arith.constant 0 : index
      %c0_80 = arith.constant 0 : index
      %121 = vector.load %arg1[%c0_78, %120, %c0_79, %c0_80] : memref<1x6x6x64xbf16, #tpu.memory_space<vmem>>, vector<1x1x6x64xbf16>
      %122 = vector.shape_cast %121 : vector<1x1x6x64xbf16> to vector<6x64xbf16>
      %123 = vector.extract_strided_slice %122 {offsets = [0, 0], sizes = [2, 64], strides = [1, 1]} : vector<6x64xbf16> to vector<2x64xbf16>
      %c20 = arith.constant 20 : index
      %c0_81 = arith.constant 0 : index
      %c0_82 = arith.constant 0 : index
      %124 = vector.load %arg2[%c20, %c0_81, %c0_82] : memref<25x64x128xbf16, #tpu.memory_space<vmem>>, vector<1x64x128xbf16>
      %125 = vector.shape_cast %124 : vector<1x64x128xbf16> to vector<64x128xbf16>
      %cst_83 = arith.constant dense<0.000000e+00> : vector<2x128xf32>
      %126 = tpu.matmul %123, %125, %cst_83 {dimension_numbers = #tpu.dot_dimension_numbers<[1], [0], [0], [1], [0, 0, 1, 1], [], []>} : vector<2x64xbf16>, vector<64x128xbf16>, vector<2x128xf32> -> vector<2x128xf32>
      %127 = arith.addf %118, %126 : vector<2x128xf32>
      %128 = vector.extract_strided_slice %122 {offsets = [1, 0], sizes = [2, 64], strides = [1, 1]} : vector<6x64xbf16> to vector<2x64xbf16>
      %c21 = arith.constant 21 : index
      %c0_84 = arith.constant 0 : index
      %c0_85 = arith.constant 0 : index
      %129 = vector.load %arg2[%c21, %c0_84, %c0_85] : memref<25x64x128xbf16, #tpu.memory_space<vmem>>, vector<1x64x128xbf16>
      %130 = vector.shape_cast %129 : vector<1x64x128xbf16> to vector<64x128xbf16>
      %cst_86 = arith.constant dense<0.000000e+00> : vector<2x128xf32>
      %131 = tpu.matmul %128, %130, %cst_86 {dimension_numbers = #tpu.dot_dimension_numbers<[1], [0], [0], [1], [0, 0, 1, 1], [], []>} : vector<2x64xbf16>, vector<64x128xbf16>, vector<2x128xf32> -> vector<2x128xf32>
      %132 = arith.addf %127, %131 : vector<2x128xf32>
      %133 = vector.extract_strided_slice %122 {offsets = [2, 0], sizes = [2, 64], strides = [1, 1]} : vector<6x64xbf16> to vector<2x64xbf16>
      %c22 = arith.constant 22 : index
      %c0_87 = arith.constant 0 : index
      %c0_88 = arith.constant 0 : index
      %134 = vector.load %arg2[%c22, %c0_87, %c0_88] : memref<25x64x128xbf16, #tpu.memory_space<vmem>>, vector<1x64x128xbf16>
      %135 = vector.shape_cast %134 : vector<1x64x128xbf16> to vector<64x128xbf16>
      %cst_89 = arith.constant dense<0.000000e+00> : vector<2x128xf32>
      %136 = tpu.matmul %133, %135, %cst_89 {dimension_numbers = #tpu.dot_dimension_numbers<[1], [0], [0], [1], [0, 0, 1, 1], [], []>} : vector<2x64xbf16>, vector<64x128xbf16>, vector<2x128xf32> -> vector<2x128xf32>
      %137 = arith.addf %132, %136 : vector<2x128xf32>
      %138 = vector.extract_strided_slice %122 {offsets = [3, 0], sizes = [2, 64], strides = [1, 1]} : vector<6x64xbf16> to vector<2x64xbf16>
      %c23 = arith.constant 23 : index
      %c0_90 = arith.constant 0 : index
      %c0_91 = arith.constant 0 : index
      %139 = vector.load %arg2[%c23, %c0_90, %c0_91] : memref<25x64x128xbf16, #tpu.memory_space<vmem>>, vector<1x64x128xbf16>
      %140 = vector.shape_cast %139 : vector<1x64x128xbf16> to vector<64x128xbf16>
      %cst_92 = arith.constant dense<0.000000e+00> : vector<2x128xf32>
      %141 = tpu.matmul %138, %140, %cst_92 {dimension_numbers = #tpu.dot_dimension_numbers<[1], [0], [0], [1], [0, 0, 1, 1], [], []>} : vector<2x64xbf16>, vector<64x128xbf16>, vector<2x128xf32> -> vector<2x128xf32>
      %142 = arith.addf %137, %141 : vector<2x128xf32>
      %143 = vector.extract_strided_slice %122 {offsets = [4, 0], sizes = [2, 64], strides = [1, 1]} : vector<6x64xbf16> to vector<2x64xbf16>
      %c24 = arith.constant 24 : index
      %c0_93 = arith.constant 0 : index
      %c0_94 = arith.constant 0 : index
      %144 = vector.load %arg2[%c24, %c0_93, %c0_94] : memref<25x64x128xbf16, #tpu.memory_space<vmem>>, vector<1x64x128xbf16>
      %145 = vector.shape_cast %144 : vector<1x64x128xbf16> to vector<64x128xbf16>
      %cst_95 = arith.constant dense<0.000000e+00> : vector<2x128xf32>
      %146 = tpu.matmul %143, %145, %cst_95 {dimension_numbers = #tpu.dot_dimension_numbers<[1], [0], [0], [1], [0, 0, 1, 1], [], []>} : vector<2x64xbf16>, vector<64x128xbf16>, vector<2x128xf32> -> vector<2x128xf32>
      %147 = arith.addf %142, %146 : vector<2x128xf32>
      %148 = vector.broadcast %0 : vector<1x128xf32> to vector<2x128xf32>
      %149 = arith.addf %147, %148 : vector<2x128xf32>
      %150 = arith.truncf %149 : vector<2x128xf32> to vector<2x128xbf16>
      %c0_96 = arith.constant 0 : index
      %151 = arith.index_cast %arg5 : i32 to index
      %c0_97 = arith.constant 0 : index
      %c0_98 = arith.constant 0 : index
      %152 = vector.load %arg4[%c0_96, %151, %c0_97, %c0_98] : memref<1x2x2x128xbf16, #tpu.memory_space<vmem>>, vector<1x1x2x128xbf16>
      %153 = vector.shape_cast %152 : vector<1x1x2x128xbf16> to vector<2x128xbf16>
      %154 = vector.shape_cast %150 : vector<2x128xbf16> to vector<1x1x2x128xbf16>
      tpu.vector_store %arg4[%c0_96, %151, %c0_97, %c0_98], %154 {strides = array<i32>} : memref<1x2x2x128xbf16, #tpu.memory_space<vmem>>, vector<1x1x2x128xbf16>,
    }
    %c2_i32_1 = arith.constant 2 : i32
    return
  }
  func.func @transform_0(%arg0: i32) -> (i32, i32, i32, i32) {
    %c0_i32 = arith.constant 0 : i32
    %c0_i32_0 = arith.constant 0 : i32
    %c0_i32_1 = arith.constant 0 : i32
    %c0_i32_2 = arith.constant 0 : i32
    return %arg0, %c0_i32, %c0_i32_0, %c0_i32_1 : i32, i32, i32, i32
  }
  func.func @transform_1(%arg0: i32) -> (i32, i32, i32) {
    %c0_i32 = arith.constant 0 : i32
    %c0_i32_0 = arith.constant 0 : i32
    %c0_i32_1 = arith.constant 0 : i32
    %c0_i32_2 = arith.constant 0 : i32
    return %c0_i32, %c0_i32_0, %c0_i32_1 : i32, i32, i32
  }
  func.func @transform_2(%arg0: i32) -> (i32, i32) {
    %c0_i32 = arith.constant 0 : i32
    %c0_i32_0 = arith.constant 0 : i32
    %c0_i32_1 = arith.constant 0 : i32
    return %c0_i32, %c0_i32_0 : i32, i32
  }
  func.func @transform_3(%arg0: i32) -> (i32, i32, i32, i32) {
    %c0_i32 = arith.constant 0 : i32
    %c0_i32_0 = arith.constant 0 : i32
    %c0_i32_1 = arith.constant 0 : i32
    %c0_i32_2 = arith.constant 0 : i32
    return %arg0, %c0_i32, %c0_i32_0, %c0_i32_1 : i32, i32, i32, i32
  }
}

module attributes {stable_mosaic.version = 11 : i64} {
  func.func @_linear_bias_kernel(%arg0: memref<2x4xbf16, #tpu.memory_space<vmem>>, %arg1: memref<4x128xbf16, #tpu.memory_space<vmem>>, %arg2: memref<1x128xf32, #tpu.memory_space<vmem>>, %arg3: memref<2x128xf32, #tpu.memory_space<vmem>>) attributes {dimension_semantics = [], scalar_prefetch = 0 : i64, scratch_operands = 0 : i64, tpu.core_type = #tpu.core_type<tc>} {
    %c0 = arith.constant 0 : index
    %c0_0 = arith.constant 0 : index
    %0 = vector.load %arg0[%c0, %c0_0] : memref<2x4xbf16, #tpu.memory_space<vmem>>, vector<2x4xbf16>
    %c0_1 = arith.constant 0 : index
    %c0_2 = arith.constant 0 : index
    %1 = vector.load %arg1[%c0_1, %c0_2] : memref<4x128xbf16, #tpu.memory_space<vmem>>, vector<4x128xbf16>
    %cst = arith.constant dense<0.000000e+00> : vector<2x128xf32>
    %2 = tpu.matmul %0, %1, %cst {dimension_numbers = #tpu.dot_dimension_numbers<[1], [0], [0], [1], [0, 0, 1, 1], [], []>} : vector<2x4xbf16>, vector<4x128xbf16>, vector<2x128xf32> -> vector<2x128xf32>
    %c0_3 = arith.constant 0 : index
    %c0_4 = arith.constant 0 : index
    %3 = vector.load %arg2[%c0_3, %c0_4] : memref<1x128xf32, #tpu.memory_space<vmem>>, vector<1x128xf32>
    %4 = vector.broadcast %3 : vector<1x128xf32> to vector<2x128xf32>
    %5 = arith.addf %2, %4 : vector<2x128xf32>
    %c0_5 = arith.constant 0 : index
    %c0_6 = arith.constant 0 : index
    %6 = vector.load %arg3[%c0_5, %c0_6] : memref<2x128xf32, #tpu.memory_space<vmem>>, vector<2x128xf32>
    tpu.vector_store %arg3[%c0_5, %c0_6], %5 {strides = array<i32>} : memref<2x128xf32, #tpu.memory_space<vmem>>, vector<2x128xf32>,
    return
  }
}

</mosaic_0001>

<bundles_post_ra>
// kernel: _lambda_.6
= control target key start
LH: loop header
LB: loop body
LE: loop exit
PB: predicated region body
PF: predicated region fallthrough
CT: control target
= control target key end

     0   :  { %s994_s12 = smov 0   ;;  %s1096_s0 = inlined_call_operand.vmem [shape: bf16[2,10,10,16], index: 0, kind: input, shape index: {}]   ;;  %s1097_s1 = inlined_call_operand.vmem [shape: bf16[9,16,128], index: 1, kind: input, shape index: {}]   ;;  %s1098_s2 = inlined_call_operand.vmem [shape: f32[1,128], index: 2, kind: input, shape index: {}]   ;;  %s1099_s3 = inlined_call_operand.vmem [shape: bf16[2,8,8,128], index: 3, kind: output, shape index: {}]  }
   0x1 LB: > { %s794_s13 = sadd.s32 4294967295, %s966_s12   ;;  %p798_p0 = scmp.ge.s32.totalorder %s966_s12, 1  ;;  %s966_s12 = sphi %s994_s12, %s13_s12  }
   0x2   : > { %p137_p1 = scmp.lt.s32.totalorder %s966_s12, 3 }
   0x4   : > { %p138_p2 = pnand %p798_p0, %p137_p1 }
   0x5   : > { %p161_p3 = scmp.lt.s32.totalorder (!%p138_p2), %s794_s13, 1  ;;  %v1005_v0 = vld [vmem:[%s1098_s2] ss:$0 sm:$0xff] (!%p138_p2)  ;;  %s1017_s24 = smov (!%p138_p2), 0  }
   0x6   : > { %141 = sbr.rel (%p138_p2) target bundleno = 282 (0x11a), region = 32 }
   0xd   : > { %s1101_s13 = smov (!%p161_p3, %s794_s13), 1 }
   0xe   : > { %s925_s16 = smul.u32 80, %s1101_s13  ;;  %s851_s17 = sshll.u32 %s1101_s13, 5 }
   0xf   : > { %s1010_s20 = scalar_lea.vmem %s1099_s3, %s851_s17 }
  0x10   : > { %s1015_s23 = scalar_lea.vmem %s1096_s0, %s925_s16 }
  0x11 LB: >> { %v944_v1 = vld [vmem:[%s1097_s1 + $0x8] sm:$0xff]   ;;  %v972_v2 = vmov 0.0   ;;  %v945_v3 = vld [vmem:[%s1097_s1] sm:$0xff]   ;;  %vm973_vm0 = vmmov 0   ;;  %s852_s29 = sshll.u32 %s970_s24, 3  ;;  %vm207_vm1 = vcmask 130048   ;;  %s970_s24 = sphi %s1017_s24, %s178_s24  }
  0x12   : >> { %871 = vmatprep.subr.bf16.mxu0 %v972_v2  ;;  %877 = vmatprep.subr.bf16.mxu1 %v972_v2  ;;  %s181_s30 = scalar_lea.vmem %s1015_s23, %s852_s29  ;;  %v948_v6 = vld [vmem:[%s1097_s1 + $0x18] sm:$0xff]   ;;  %v947_v11 = vld [vmem:[%s1097_s1 + $0x10] sm:$0xff]   ;;  %v951_v15 = vld [vmem:[%s1097_s1 + $0x28] sm:$0xff]   ;;  %s848_s19 = sshll.u32 %s970_s24, 2 }
  0x13   : >> { %872 = vmatpush3.bf16.msra.mxu0 %v944_v1  ;;  %873 = vmatprep.mubr.msk.bf16.mxu0 %vm973_vm0, %v972_v2  ;;  %v182_v4 = vld [vmem:[%s181_s30] sm:$0xf]  ;;  %v183_v5 = vld [vmem:[%s181_s30 + $0x4] sm:$0x1]  ;;  %v816_v12 = vld [vmem:[%s181_s30 + $0x8] sm:$0xf]  ;;  %s722_s21 = scalar_lea.vmem %s1010_s20, %s848_s19 }
  0x14   : >> { %878 = vmatpush3.bf16.msra.mxu1 %v945_v3  ;;  %879 = vmatprep.mubr.msk.bf16.mxu1 %vm973_vm0, %v972_v2  ;;  %v806_v7 = vcombine.low %v182_v4, %v183_v5  ;;  %v817_v13 = vld [vmem:[%s181_s30 + $0xc] sm:$0x1]  ;;  %v832_v16 = vld [vmem:[%s181_s30 + $0x10] sm:$0xf]  ;;  %v833_v17 = vld [vmem:[%s181_s30 + $0x14] sm:$0x1] }
  0x15   : >> { %883 = vmatprep.subr.bf16.mxu0 %v972_v2  ;;  %889 = vmatprep.subr.bf16.mxu1 %v972_v2  ;;  %v824_v18 = vcombine.low %v816_v12, %v817_v13  ;;  %v840_v19 = vcombine.low %v832_v16, %v833_v17  ;;  %v949_v22 = vld [vmem:[%s1097_s1 + $0x20] sm:$0xff]   ;;  %v953_v25 = vld [vmem:[%s1097_s1 + $0x38] sm:$0xff]   ;;  %v952_v31 = vld [vmem:[%s1097_s1 + $0x30] sm:$0xff]   ;;  %s178_s24 = sadd.s32 1, %s970_s24  }
  0x16   : >> { %v195_v8 = vshrl.u32 %v806_v7, 16  ;;  %v197_v9 = vshll.u32 %v806_v7, 16  ;;  %v303_v20 = vrot.slane %v806_v7, 1  ;;  %v955_v33 = vld [vmem:[%s1097_s1 + $0x40] sm:$0xff]   ;;  %p175_p4 = scmp.ge.s32.totalorder %s178_s24, 8  }
  0x17   : >> { %880 = vmatmul.mubr.msk.bf16.vlgmr.msra.gmra.mrb[0].mxu1 %vm207_vm1, %v182_v4  ;;  %v424_v21 = vshll.u32 %v824_v18, 16  ;;  %v481_v23 = vrot.slane %v824_v18, 1  ;;  %v602_v24 = vshll.u32 %v840_v19, 16  ;;  %v422_v26 = vshrl.u32 %v824_v18, 16 }
  0x18   : >> { %890 = vmatpush3.bf16.msra.mxu1 %v948_v6  ;;  %891 = vmatprep.mubr.msk.bf16.mxu1 %vm973_vm0, %v972_v2  ;;  %v199_v10 = vrot.slane %v197_v9, 1  ;;  %v600_v28 = vshrl.u32 %v840_v19, 16  ;;  %v659_v34 = vrot.slane %v840_v19, 1 }
  0x19   : >> { %901 = vmatprep.subr.bf16.mxu1 %v972_v2  ;;  %v426_v27 = vrot.slane %v424_v21, 1  ;;  %v604_v29 = vrot.slane %v602_v24, 1 }
  0x1a   : >> { %v200_v14 = vor.u32 %v199_v10, %v195_v8 }
  0x1b   : >> { %v427_v30 = vor.u32 %v426_v27, %v422_v26  ;;  %v605_v32 = vor.u32 %v604_v29, %v600_v28 }
  0x1c   : >> { %874 = vmatmul.mubr.msk.bf16.vlgmr.msra.gmra.mrb[0].mxu0 %vm207_vm1, %v200_v14 }
  0x1d   : >> { %884 = vmatpush3.bf16.msra.mxu0 %v947_v11  ;;  %885 = vmatprep.mubr.msk.bf16.mxu0 %vm973_vm0, %v972_v2 }
  0x1e   : >> { %895 = vmatprep.subr.bf16.mxu0 %v972_v2 }
  0x1f   : >> { %892 = vmatmul.mubr.msk.bf16.vlgmr.msra.gmra.mrb[4].mxu1 %vm207_vm1, %v816_v12 }
  0x20   : >> { %902 = vmatpush3.bf16.msra.mxu1 %v951_v15  ;;  %903 = vmatprep.mubr.msk.bf16.mxu1 %vm973_vm0, %v972_v2 }
  0x21   : >> { %913 = vmatprep.subr.bf16.mxu1 %v972_v2 }
  0x24   : >> { %886 = vmatmul.mubr.msk.bf16.vlgmr.msra.gmra.mrb[4].mxu0 %vm207_vm1, %v303_v20 }
  0x25   : >> { %896 = vmatpush3.bf16.msra.mxu0 %v949_v22  ;;  %897 = vmatprep.mubr.msk.bf16.mxu0 %vm973_vm0, %v972_v2 }
  0x26   : >> { %907 = vmatprep.subr.bf16.mxu0 %v972_v2 }
  0x27   : >> { %904 = vmatmul.mubr.msk.bf16.vlgmr.msra.gmra.mrb[8].mxu1 %vm207_vm1, %v481_v23 }
  0x28   : >> { %914 = vmatpush3.bf16.msra.mxu1 %v953_v25  ;;  %915 = vmatprep.mubr.msk.bf16.mxu1 %vm973_vm0, %v972_v2 }
  0x2c   : >> { %898 = vmatmul.mubr.msk.bf16.vlgmr.msra.gmra.mrb[8].mxu0 %vm207_vm1, %v427_v30 }
  0x2d   : >> { %908 = vmatpush3.bf16.msra.mxu0 %v952_v31  ;;  %909 = vmatprep.mubr.msk.bf16.mxu0 %vm973_vm0, %v972_v2 }
  0x2e   : >> { %919 = vmatprep.subr.bf16.mxu0 %v972_v2 }
  0x2f   : >> { %916 = vmatmul.mubr.msk.bf16.vlgmr.msra.gmra.mrb[12].mxu1 %vm207_vm1, %v605_v32 }
  0x34   : >> { %910 = vmatmul.mubr.msk.bf16.vlgmr.msra.gmra.mrb[12].mxu0 %vm207_vm1, %v832_v16 }
  0x35   : >> { %920 = vmatpush3.bf16.msra.mxu0 %v955_v33  ;;  %921 = vmatprep.mubr.msk.bf16.mxu0 %vm973_vm0, %v972_v2 }
  0x3c   : >> { %922 = vmatmul.mubr.msk.bf16.vlgmr.msra.gmra.mrb[16].mxu0 %vm207_vm1, %v659_v34 }
  0xea   : >> { %v294_v35 = vpop.f32.mrb[0].mxu1 }
  0xeb   : >> { %v881_v36 = vpop.f32.mrb[1].mxu1 }
  0xec   : >> { %v297_v37 = vpop.f32.mrb[2].mxu1 }
  0xed   : >> { %v882_v38 = vpop.f32.mrb[3].mxu1 }
  0xef   : >> { %v245_v39 = vpop.f32.mrb[0].mxu0 }
  0xf0   : >> { %v295_v40 = vadd.f32 %v294_v35, %v245_v39  ;;  %v875_v41 = vpop.f32.mrb[1].mxu0 }
  0xf1   : >> { %v248_v42 = vpop.f32.mrb[2].mxu0 }
  0xf2   : >> { %v406_v43 = vpop.f32.mrb[4].mxu1  ;;  %v876_v44 = vpop.f32.mrb[3].mxu0 }
  0xf3   : >> { %v893_v45 = vpop.f32.mrb[5].mxu1 }
  0xf4   : >> { %v409_v46 = vpop.f32.mrb[6].mxu1 }
  0xf5   : >> { %v894_v47 = vpop.f32.mrb[7].mxu1 }
  0xf7   : >> { %v347_v48 = vpop.f32.mrb[4].mxu0 }
  0xf8   : >> { %v353_v49 = vadd.f32 %v347_v48, %v295_v40  ;;  %v887_v50 = vpop.f32.mrb[5].mxu0 }
  0xf9   : >> { %v350_v51 = vpop.f32.mrb[6].mxu0 }
  0xfa   : >> { %v525_v52 = vpop.f32.mrb[8].mxu1  ;;  %v412_v53 = vadd.f32 %v406_v43, %v353_v49  ;;  %v888_v54 = vpop.f32.mrb[7].mxu0 }
  0xfb   : >> { %v905_v55 = vpop.f32.mrb[9].mxu1 }
  0xfc   : >> { %v528_v56 = vpop.f32.mrb[10].mxu1 }
  0xfd   : >> { %v906_v57 = vpop.f32.mrb[11].mxu1 }
  0xff   : >> { %v471_v58 = vpop.f32.mrb[8].mxu0 }
 0x100   : >> { %v477_v59 = vadd.f32 %v471_v58, %v412_v53  ;;  %v899_v60 = vpop.f32.mrb[9].mxu0 }
 0x101   : >> { %v474_v61 = vpop.f32.mrb[10].mxu0 }
 0x102   : >> { %v649_v62 = vpop.f32.mrb[12].mxu1  ;;  %v531_v63 = vadd.f32 %v525_v52, %v477_v59  ;;  %v900_v1 = vpop.f32.mrb[11].mxu0 }
 0x103   : >> { %v917_v2 = vpop.f32.mrb[13].mxu1 }
 0x104   : >> { %v652_v3 = vpop.f32.mrb[14].mxu1 }
 0x105   : >> { %v918_v4 = vpop.f32.mrb[15].mxu1 }
 0x107   : >> { %v584_v5 = vpop.f32.mrb[12].mxu0 }
 0x108   : >> { %v590_v6 = vadd.f32 %v584_v5, %v531_v63  ;;  %v911_v7 = vpop.f32.mrb[13].mxu0 }
 0x109   : >> { %v587_v8 = vpop.f32.mrb[14].mxu0 }
 0x10a   : >> { %v655_v9 = vadd.f32 %v649_v62, %v590_v6  ;;  %v912_v10 = vpop.f32.mrb[15].mxu0 }
 0x10f   : >> { %v703_v11 = vpop.f32.mrb[16].mxu0 }
 0x110   : >> { %v709_v12 = vadd.f32 %v703_v11, %v655_v9  ;;  %v923_v13 = vpop.f32.mrb[17].mxu0 }
 0x111   : >> { %v706_v14 = vpop.f32.mrb[18].mxu0 }
 0x112   : >> { %v716_v15 = vadd.f32 %v1005_v0, %v709_v12  ;;  %v924_v16 = vpop.f32.mrb[19].mxu0 }
 0x113   : > { %177 = sbr.rel (!%p175_p4) target bundleno = 17 (0x11), region = 81 }
 0x114   : >> { %vm717_vm2 = vcmp.ge.f32.partialorder %v716_v15, 0.0  ;;  %v718_v17 = vmul.f32 0.2, %v716_v15 }
 0x116   : >> { %v719_v18 = vsel %vm717_vm2, %v716_v15, %v718_v17 }
 0x117   : >> { %v720_v19 = vpack.c.bf16 %v719_v18, %v719_v18 }
 0x119   : >> { %723 = vst [vmem:[%s722_s21] sm:$0xf] %v720_v19 }
 0x11a PF: > { %s13_s12 = sadd.s32 1, %s966_s12  }
 0x11b   : > { %p10_p5 = scmp.ge.s32.totalorder %s13_s12, 4  }
 0x11d   :  { %12 = sbr.rel (!%p10_p5) target bundleno = 1 (0x1), region = 92 }

// kernel: _lambda_.7
= control target key start
LH: loop header
LB: loop body
LE: loop exit
PB: predicated region body
PF: predicated region fallthrough
CT: control target
= control target key end

     0   :  { %s1111_s12 = smov 0   ;;  %s1254_s0 = inlined_call_operand.vmem [shape: bf16[2,6,6,32], index: 0, kind: input, shape index: {}]   ;;  %s1255_s1 = inlined_call_operand.vmem [shape: bf16[9,32,128], index: 1, kind: input, shape index: {}]   ;;  %s1256_s2 = inlined_call_operand.vmem [shape: f32[1,128], index: 2, kind: input, shape index: {}]   ;;  %s1257_s3 = inlined_call_operand.vmem [shape: bf16[2,4,4,128], index: 3, kind: output, shape index: {}]  }
   0x1 LB: > { %s854_s13 = sadd.s32 4294967295, %s1083_s12   ;;  %p858_p0 = scmp.ge.s32.totalorder %s1083_s12, 1  ;;  %s1083_s12 = sphi %s1111_s12, %s13_s12  }
   0x2   : > { %p137_p1 = scmp.lt.s32.totalorder %s1083_s12, 3 }
   0x4   : > { %p138_p2 = pnand %p858_p0, %p137_p1 }
   0x5   : > { %p161_p3 = scmp.lt.s32.totalorder (!%p138_p2), %s854_s13, 1  ;;  %v1122_v0 = vld [vmem:[%s1256_s2] ss:$0 sm:$0xff] (!%p138_p2)  ;;  %s1134_s24 = smov (!%p138_p2), 0  }
   0x6   : > { %141 = sbr.rel (%p138_p2) target bundleno = 283 (0x11b), region = 32 }
   0xd   : > { %s1259_s13 = smov (!%p161_p3, %s854_s13), 1 }
   0xe   : > { %s1033_s16 = smul.u32 24, %s1259_s13  ;;  %s933_s17 = sshll.u32 %s1259_s13, 3 }
   0xf   : > { %s1127_s20 = scalar_lea.vmem %s1257_s3, %s933_s17 }
  0x10   : > { %s1132_s23 = scalar_lea.vmem %s1254_s0, %s1033_s16 }
  0x11 LB: >> { %v1052_v1 = vld [vmem:[%s1255_s1 + $0x10] sm:$0xff]   ;;  %v1089_v2 = vmov 0.0   ;;  %v1053_v3 = vld [vmem:[%s1255_s1] sm:$0xff]   ;;  %v1054_v4 = vld [vmem:[%s1255_s1 + $0x18] sm:$0xff]   ;;  %vm1090_vm0 = vmmov 0   ;;  %s862_s4 = sshll.u32 %s1087_s24, 2  ;;  %s1087_s24 = sphi %s1134_s24, %s178_s24  }
  0x12   : >> { %961 = vmatprep.subr.bf16.mxu0 %v1089_v2  ;;  %969 = vmatprep.subr.bf16.mxu1 %v1089_v2  ;;  %v1055_v5 = vld [vmem:[%s1255_s1 + $0x8] sm:$0xff]   ;;  %s1158_s7 = scalar_lea.vmem %s1132_s23, %s862_s4  ;;  %vm213_vm1 = vcmask 261120   ;;  %v1058_v10 = vld [vmem:[%s1255_s1 + $0x30] sm:$0xff]   ;;  %v1057_v12 = vld [vmem:[%s1255_s1 + $0x20] sm:$0xff]   ;;  %s930_s14 = sshll.u32 %s1087_s24, 1 }
  0x13   : >> { %962 = vmatpush3.bf16.msra.mxu0 %v1052_v1  ;;  %965 = vmatprep.mubr.msk.bf16.mxu0 %vm1090_vm0, %v1089_v2  ;;  %v181_v6 = vld [vmem:[%s1158_s7] sm:$0x7]  ;;  %v882_v13 = vld [vmem:[%s1158_s7 + $0x4] sm:$0x7]  ;;  %v1060_v15 = vld [vmem:[%s1255_s1 + $0x38] sm:$0xff]   ;;  %s782_s15 = scalar_lea.vmem %s1127_s20, %s930_s14  ;;  %s178_s24 = sadd.s32 1, %s1087_s24  }
  0x14   : >> { %970 = vmatpush3.bf16.msra.mxu1 %v1053_v3  ;;  %963 = vmatprep.subr.bf16.mxu0 %v1089_v2  ;;  %v867_v7 = vcombine.low %v181_v6, %v181_v6  ;;  %v894_v16 = vcombine.low %v882_v13, %v882_v13  ;;  %v1059_v17 = vld [vmem:[%s1255_s1 + $0x28] sm:$0xff]   ;;  %v1063_v18 = vld [vmem:[%s1255_s1 + $0x50] sm:$0xff]   ;;  %v1061_v22 = vld [vmem:[%s1255_s1 + $0x40] sm:$0xff]   ;;  %p175_p4 = scmp.ge.s32.totalorder %s178_s24, 4  }
  0x15   : >> { %971 = vmatprep.subr.bf16.mxu1 %v1089_v2  ;;  %973 = vmatprep.mubr.msk.bf16.mxu1 %vm1090_vm0, %v1089_v2  ;;  %v906_v21 = vld [vmem:[%s1158_s7 + $0x8] sm:$0x7]  ;;  %v1065_v24 = vld [vmem:[%s1255_s1 + $0x58] sm:$0xff]   ;;  %v1067_v30 = vld [vmem:[%s1255_s1 + $0x70] sm:$0xff]  }
  0x16   : >> { %v195_v8 = vshrl.u32 %v867_v7, 16  ;;  %v197_v9 = vshll.u32 %v867_v7, 16  ;;  %v317_v19 = vrot.slane %v867_v7, 1  ;;  %v450_v20 = vshll.u32 %v894_v16, 16  ;;  %v1064_v28 = vld [vmem:[%s1255_s1 + $0x48] sm:$0xff]   ;;  %v1066_v32 = vld [vmem:[%s1255_s1 + $0x60] sm:$0xff]  }
  0x17   : >> { %964 = vmatpush3.bf16.msra.mxu0 %v1054_v4  ;;  %v918_v23 = vcombine.low %v906_v21, %v906_v21  ;;  %v448_v25 = vshrl.u32 %v894_v16, 16  ;;  %v515_v27 = vrot.slane %v894_v16, 1  ;;  %v1069_v35 = vld [vmem:[%s1255_s1 + $0x78] sm:$0xff]   ;;  %v1068_v36 = vld [vmem:[%s1255_s1 + $0x68] sm:$0xff]   ;;  %v1071_v38 = vld [vmem:[%s1255_s1 + $0x80] sm:$0xff]  }
  0x18   : >> { %972 = vmatpush3.bf16.msra.mxu1 %v1055_v5  ;;  %977 = vmatprep.subr.bf16.mxu0 %v1089_v2  ;;  %v199_v11 = vrot.slane %v197_v9, 1  ;;  %v452_v26 = vrot.slane %v450_v20, 1  ;;  %v1072_v39 = vld [vmem:[%s1255_s1 + $0x88] sm:$0xff]  }
  0x19   : >> { %985 = vmatprep.subr.bf16.mxu1 %v1089_v2  ;;  %v648_v29 = vshll.u32 %v918_v23, 16  ;;  %v646_v33 = vshrl.u32 %v918_v23, 16  ;;  %v713_v40 = vrot.slane %v918_v23, 1 }
  0x1a   : >> { %v200_v14 = vor.u32 %v199_v11, %v195_v8  ;;  %v453_v31 = vor.u32 %v452_v26, %v448_v25 }
  0x1b   : >> { %974 = vmatmul.mubr.msk.bf16.vlgmr.msra.gmra.mrb[0].mxu1 %vm213_vm1, %v181_v6  ;;  %v650_v34 = vrot.slane %v648_v29, 1 }
  0x1c   : >> { %986 = vmatpush3.bf16.msra.mxu1 %v1058_v10  ;;  %989 = vmatprep.mubr.msk.bf16.mxu1 %vm1090_vm0, %v1089_v2 }
  0x1d   : >> { %987 = vmatprep.subr.bf16.mxu1 %v1089_v2  ;;  %966 = vmatmul.mubr.msk.bf16.vlgmr.msra.gmra.mrb[0].mxu0 %vm213_vm1, %v200_v14  ;;  %v651_v37 = vor.u32 %v650_v34, %v646_v33 }
  0x1e   : >> { %978 = vmatpush3.bf16.msra.mxu0 %v1057_v12  ;;  %981 = vmatprep.mubr.msk.bf16.mxu0 %vm1090_vm0, %v1089_v2 }
  0x1f   : >> { %979 = vmatprep.subr.bf16.mxu0 %v1089_v2 }
  0x20   : >> { %988 = vmatpush3.bf16.msra.mxu1 %v1060_v15 }
  0x21   : >> { %1001 = vmatprep.subr.bf16.mxu1 %v1089_v2 }
  0x22   : >> { %980 = vmatpush3.bf16.msra.mxu0 %v1059_v17 }
  0x23   : >> { %990 = vmatmul.mubr.msk.bf16.vlgmr.msra.gmra.mrb[4].mxu1 %vm213_vm1, %v882_v13  ;;  %993 = vmatprep.subr.bf16.mxu0 %v1089_v2 }
  0x24   : >> { %1002 = vmatpush3.bf16.msra.mxu1 %v1063_v18  ;;  %1005 = vmatprep.mubr.msk.bf16.mxu1 %vm1090_vm0, %v1089_v2 }
  0x25   : >> { %1003 = vmatprep.subr.bf16.mxu1 %v1089_v2  ;;  %982 = vmatmul.mubr.msk.bf16.vlgmr.msra.gmra.mrb[4].mxu0 %vm213_vm1, %v317_v19 }
  0x26   : >> { %994 = vmatpush3.bf16.msra.mxu0 %v1061_v22  ;;  %997 = vmatprep.mubr.msk.bf16.mxu0 %vm1090_vm0, %v1089_v2 }
  0x27   : >> { %995 = vmatprep.subr.bf16.mxu0 %v1089_v2 }
  0x28   : >> { %1004 = vmatpush3.bf16.msra.mxu1 %v1065_v24 }
  0x29   : >> { %1017 = vmatprep.subr.bf16.mxu1 %v1089_v2 }
  0x2a   : >> { %996 = vmatpush3.bf16.msra.mxu0 %v1064_v28 }
  0x2b   : >> { %1006 = vmatmul.mubr.msk.bf16.vlgmr.msra.gmra.mrb[8].mxu1 %vm213_vm1, %v515_v27  ;;  %1009 = vmatprep.subr.bf16.mxu0 %v1089_v2 }
  0x2c   : >> { %1018 = vmatpush3.bf16.msra.mxu1 %v1067_v30  ;;  %1021 = vmatprep.mubr.msk.bf16.mxu1 %vm1090_vm0, %v1089_v2 }
  0x2d   : >> { %1019 = vmatprep.subr.bf16.mxu1 %v1089_v2  ;;  %998 = vmatmul.mubr.msk.bf16.vlgmr.msra.gmra.mrb[8].mxu0 %vm213_vm1, %v453_v31 }
  0x2e   : >> { %1010 = vmatpush3.bf16.msra.mxu0 %v1066_v32  ;;  %1013 = vmatprep.mubr.msk.bf16.mxu0 %vm1090_vm0, %v1089_v2 }
  0x2f   : >> { %1011 = vmatprep.subr.bf16.mxu0 %v1089_v2 }
  0x30   : >> { %1020 = vmatpush3.bf16.msra.mxu1 %v1069_v35 }
  0x32   : >> { %1012 = vmatpush3.bf16.msra.mxu0 %v1068_v36 }
  0x33   : >> { %1022 = vmatmul.mubr.msk.bf16.vlgmr.msra.gmra.mrb[12].mxu1 %vm213_vm1, %v651_v37  ;;  %1025 = vmatprep.subr.bf16.mxu0 %v1089_v2 }
  0x35   : >> { %1014 = vmatmul.mubr.msk.bf16.vlgmr.msra.gmra.mrb[12].mxu0 %vm213_vm1, %v906_v21 }
  0x36   : >> { %1026 = vmatpush3.bf16.msra.mxu0 %v1071_v38  ;;  %1029 = vmatprep.mubr.msk.bf16.mxu0 %vm1090_vm0, %v1089_v2 }
  0x37   : >> { %1027 = vmatprep.subr.bf16.mxu0 %v1089_v2 }
  0x3a   : >> { %1028 = vmatpush3.bf16.msra.mxu0 %v1072_v39 }
  0x3d   : >> { %1030 = vmatmul.mubr.msk.bf16.vlgmr.msra.gmra.mrb[16].mxu0 %vm213_vm1, %v713_v40 }
  0xee   : >> { %v306_v41 = vpop.f32.mrb[0].mxu1 }
  0xef   : >> { %v975_v42 = vpop.f32.mrb[1].mxu1 }
  0xf0   : >> { %v309_v43 = vpop.f32.mrb[2].mxu1  ;;  %v251_v44 = vpop.f32.mrb[0].mxu0 }
  0xf1   : >> { %v976_v45 = vpop.f32.mrb[3].mxu1  ;;  %v307_v46 = vadd.f32 %v306_v41, %v251_v44  ;;  %v967_v47 = vpop.f32.mrb[1].mxu0 }
  0xf2   : >> { %v254_v48 = vpop.f32.mrb[2].mxu0 }
  0xf3   : >> { %v968_v49 = vpop.f32.mrb[3].mxu0 }
  0xf6   : >> { %v432_v50 = vpop.f32.mrb[4].mxu1 }
  0xf7   : >> { %v991_v51 = vpop.f32.mrb[5].mxu1 }
  0xf8   : >> { %v435_v52 = vpop.f32.mrb[6].mxu1  ;;  %v367_v53 = vpop.f32.mrb[4].mxu0 }
  0xf9   : >> { %v992_v54 = vpop.f32.mrb[7].mxu1  ;;  %v373_v55 = vadd.f32 %v367_v53, %v307_v46  ;;  %v983_v56 = vpop.f32.mrb[5].mxu0 }
  0xfa   : >> { %v370_v57 = vpop.f32.mrb[6].mxu0 }
  0xfb   : >> { %v438_v58 = vadd.f32 %v432_v50, %v373_v55  ;;  %v984_v59 = vpop.f32.mrb[7].mxu0 }
  0xfe   : >> { %v565_v60 = vpop.f32.mrb[8].mxu1 }
  0xff   : >> { %v1007_v61 = vpop.f32.mrb[9].mxu1 }
 0x100   : >> { %v568_v62 = vpop.f32.mrb[10].mxu1  ;;  %v503_v63 = vpop.f32.mrb[8].mxu0 }
 0x101   : >> { %v1008_v1 = vpop.f32.mrb[11].mxu1  ;;  %v509_v2 = vadd.f32 %v503_v63, %v438_v58  ;;  %v999_v3 = vpop.f32.mrb[9].mxu0 }
 0x102   : >> { %v506_v4 = vpop.f32.mrb[10].mxu0 }
 0x103   : >> { %v571_v5 = vadd.f32 %v565_v60, %v509_v2  ;;  %v1000_v6 = vpop.f32.mrb[11].mxu0 }
 0x106   : >> { %v701_v7 = vpop.f32.mrb[12].mxu1 }
 0x107   : >> { %v1023_v8 = vpop.f32.mrb[13].mxu1 }
 0x108   : >> { %v704_v9 = vpop.f32.mrb[14].mxu1  ;;  %v630_v10 = vpop.f32.mrb[12].mxu0 }
 0x109   : >> { %v1024_v11 = vpop.f32.mrb[15].mxu1  ;;  %v636_v12 = vadd.f32 %v630_v10, %v571_v5  ;;  %v1015_v13 = vpop.f32.mrb[13].mxu0 }
 0x10a   : >> { %v633_v14 = vpop.f32.mrb[14].mxu0 }
 0x10b   : >> { %v707_v15 = vadd.f32 %v701_v7, %v636_v12  ;;  %v1016_v16 = vpop.f32.mrb[15].mxu0 }
 0x110   : >> { %v763_v17 = vpop.f32.mrb[16].mxu0 }
 0x111   : >> { %v769_v18 = vadd.f32 %v763_v17, %v707_v15  ;;  %v1031_v19 = vpop.f32.mrb[17].mxu0 }
 0x112   : >> { %v766_v20 = vpop.f32.mrb[18].mxu0 }
 0x113   : >> { %v776_v21 = vadd.f32 %v1122_v0, %v769_v18  ;;  %v1032_v22 = vpop.f32.mrb[19].mxu0 }
 0x114   : > { %177 = sbr.rel (!%p175_p4) target bundleno = 17 (0x11), region = 81 }
 0x115   : >> { %vm777_vm2 = vcmp.ge.f32.partialorder %v776_v21, 0.0  ;;  %v778_v23 = vmul.f32 0.2, %v776_v21 }
 0x117   : >> { %v779_v24 = vsel %vm777_vm2, %v776_v21, %v778_v23 }
 0x118   : >> { %v780_v25 = vpack.c.bf16 %v779_v24, %v779_v24 }
 0x11a   : >> { %783 = vst [vmem:[%s782_s15] sm:$0x3] %v780_v25 }
 0x11b PF: > { %s13_s12 = sadd.s32 1, %s1083_s12  }
 0x11c   : > { %p10_p5 = scmp.ge.s32.totalorder %s13_s12, 4  }
 0x11e   :  { %12 = sbr.rel (!%p10_p5) target bundleno = 1 (0x1), region = 92 }

// kernel: _lambda_.8
= control target key start
LH: loop header
LB: loop body
LE: loop exit
PB: predicated region body
PF: predicated region fallthrough
CT: control target
= control target key end

     0   :  { %s1380_s12 = smov 0   ;;  %s1600_s0 = inlined_call_operand.vmem [shape: bf16[2,4,4,64], index: 0, kind: input, shape index: {}]   ;;  %s1601_s1 = inlined_call_operand.vmem [shape: bf16[9,64,128], index: 1, kind: input, shape index: {}]   ;;  %s1602_s2 = inlined_call_operand.vmem [shape: f32[1,128], index: 2, kind: input, shape index: {}]   ;;  %s1603_s3 = inlined_call_operand.vmem [shape: bf16[2,2,2,128], index: 3, kind: output, shape index: {}]  }
   0x1 LB: > { %s1007_s13 = sadd.s32 4294967295, %s1351_s12   ;;  %p1011_p0 = scmp.ge.s32.totalorder %s1351_s12, 1  ;;  %s1351_s12 = sphi %s1380_s12, %s13_s12  }
   0x2   : > { %p137_p1 = scmp.lt.s32.totalorder %s1351_s12, 3 }
   0x4   : > { %p138_p2 = pnand %p1011_p0, %p137_p1 }
   0x5   : > { %p160_p3 = scmp.lt.s32.totalorder (!%p138_p2), %s1007_s13, 1  ;;  %v1391_v0 = vld [vmem:[%s1602_s2] ss:$0 sm:$0xff] (!%p138_p2)  ;;  %s1403_s24 = smov (!%p138_p2), 0  }
   0x6   : > { %141 = sbr.rel (%p138_p2) target bundleno = 319 (0x13f), region = 32 }
   0xd   : > { %s1605_s13 = smov (!%p160_p3, %s1007_s13), 1 }
   0xe   : > { %s1132_s16 = sshll.u32 %s1605_s13, 3  ;;  %s1014_s17 = sshll.u32 %s1605_s13, 1 }
   0xf   : > { %s1396_s20 = scalar_lea.vmem %s1600_s0, %s1132_s16  ;;  %s1401_s23 = scalar_lea.vmem %s1603_s3, %s1014_s17 }
  0x10 LB: >> { %v1305_v1 = vld [vmem:[%s1601_s1 + $0x20] sm:$0xff]   ;;  %v1357_v2 = vmov 0.0   ;;  %v1307_v4 = vld [vmem:[%s1601_s1 + $0x28] sm:$0xff]   ;;  %vm1358_vm0 = vmmov 0   ;;  %v201_v6 = vlaneseq  ;;  %v1309_v7 = vld [vmem:[%s1601_s1 + $0x30] sm:$0xff]   ;;  %s1015_s8 = sshll.u32 %s1355_s24, 1  ;;  %s938_s4 = scalar_lea.vmem %s1401_s23, %s1355_s24  ;;  %s1355_s24 = sphi %s1403_s24, %s176_s24  }
  0x11   : >> { %1178 = vmatprep.subr.bf16.mxu0 %v1357_v2  ;;  %1190 = vmatprep.subr.bf16.mxu1 %v1357_v2  ;;  %v1306_v3 = vld [vmem:[%s1601_s1] sm:$0xff]   ;;  %v1308_v5 = vld [vmem:[%s1601_s1 + $0x8] sm:$0xff]   ;;  %v1310_v8 = vld [vmem:[%s1601_s1 + $0x10] sm:$0xff]   ;;  %s1438_s11 = scalar_lea.vmem %s1396_s20, %s1015_s8  ;;  %v1359_v9 = vmov 1983009808   ;;  %vm236_vm1 = vcmask 523264  }
  0x12   : >> { %1179 = vmatpush3.bf16.msra.mxu0 %v1305_v1  ;;  %1186 = vmatprep.mubr.msk.bf16.mxu0 %vm1358_vm0, %v1357_v2  ;;  %v199_v10 = vunpack.c.l.s4 %v1359_v9  ;;  %v202_v11 = vshrl.u32 %v201_v6, 7  ;;  %v1311_v12 = vld [vmem:[%s1601_s1 + $0x38] sm:$0xff]   ;;  %v179_v15 = vld [vmem:[%s1438_s11] sm:$0x3]  ;;  %v1316_v22 = vld [vmem:[%s1601_s1 + $0x68] sm:$0xff]   ;;  %s176_s24 = sadd.s32 1, %s1355_s24  }
  0x13   : >> { %1191 = vmatpush3.bf16.msra.mxu1 %v1306_v3  ;;  %1180 = vmatprep.subr.bf16.mxu0 %v1357_v2  ;;  %v1312_v13 = vld [vmem:[%s1601_s1 + $0x18] sm:$0xff]   ;;  %v1314_v18 = vld [vmem:[%s1601_s1 + $0x60] sm:$0xff]   ;;  %v1318_v25 = vld [vmem:[%s1601_s1 + $0x70] sm:$0xff]   ;;  %p173_p4 = scmp.ge.s32.totalorder %s176_s24, 2  }
  0x14   : >> { %1192 = vmatprep.subr.bf16.mxu1 %v1357_v2  ;;  %1198 = vmatprep.mubr.msk.bf16.mxu1 %vm1358_vm0, %v1357_v2  ;;  %v200_v14 = vunpack.c.0.s8 %v199_v10  ;;  %v1313_v23 = vld [vmem:[%s1601_s1 + $0x40] sm:$0xff]   ;;  %v1315_v26 = vld [vmem:[%s1601_s1 + $0x48] sm:$0xff]   ;;  %v1320_v27 = vld [vmem:[%s1601_s1 + $0x78] sm:$0xff]  }
  0x15   : >> { %v1317_v28 = vld [vmem:[%s1601_s1 + $0x50] sm:$0xff]   ;;  %v1048_v29 = vld [vmem:[%s1438_s11 + $0x2] sm:$0x3]  ;;  %v1319_v31 = vld [vmem:[%s1601_s1 + $0x58] sm:$0xff]  }
  0x16   : >> { %1181 = vmatpush3.bf16.msra.mxu0 %v1307_v4  ;;  %v1449_v16 = vsub.s32 %v200_v14, %v202_v11  ;;  %v1322_v30 = vld [vmem:[%s1601_s1 + $0xa0] sm:$0xff]   ;;  %v1324_v33 = vld [vmem:[%s1601_s1 + $0xa8] sm:$0xff]   ;;  %v1326_v36 = vld [vmem:[%s1601_s1 + $0xb0] sm:$0xff]  }
  0x17   : >> { %1193 = vmatpush3.bf16.msra.mxu1 %v1308_v5  ;;  %1182 = vmatprep.subr.bf16.mxu0 %v1357_v2  ;;  %v1321_v34 = vld [vmem:[%s1601_s1 + $0x80] sm:$0xff]   ;;  %v1323_v37 = vld [vmem:[%s1601_s1 + $0x88] sm:$0xff]   ;;  %v1328_v39 = vld [vmem:[%s1601_s1 + $0xb8] sm:$0xff]  }
  0x18   : >> { %1194 = vmatprep.subr.bf16.mxu1 %v1357_v2  ;;  %v204_v17 = vrot.slane %v179_v15, %v1449_v16  ;;  %v522_v35 = vrot.slane %v1048_v29, %v1449_v16  ;;  %v1325_v40 = vld [vmem:[%s1601_s1 + $0x90] sm:$0xff]   ;;  %v1330_v44 = vld [vmem:[%s1601_s1 + $0xe0] sm:$0xff]   ;;  %v1327_v46 = vld [vmem:[%s1601_s1 + $0x98] sm:$0xff]  }
  0x19   : >> { %v1089_v45 = vld [vmem:[%s1438_s11 + $0x4] sm:$0x3]  ;;  %v1332_v49 = vld [vmem:[%s1601_s1 + $0xe8] sm:$0xff]   ;;  %v1334_v52 = vld [vmem:[%s1601_s1 + $0xf0] sm:$0xff]  }
  0x1a   : >> { %1183 = vmatpush3.bf16.msra.mxu0 %v1309_v7  ;;  %v206_v19 = vshrl.u32 %v204_v17, 16  ;;  %v208_v20 = vshll.u32 %v204_v17, 16  ;;  %v356_v32 = vrot.slane %v204_v17, 1  ;;  %v526_v38 = vshll.u32 %v522_v35, 16  ;;  %v1329_v50 = vld [vmem:[%s1601_s1 + $0xc0] sm:$0xff]   ;;  %v1331_v53 = vld [vmem:[%s1601_s1 + $0xc8] sm:$0xff]  }
  0x1b   : >> { %1195 = vmatpush3.bf16.msra.mxu1 %v1310_v8  ;;  %1184 = vmatprep.subr.bf16.mxu0 %v1357_v2  ;;  %v607_v41 = vrot.slane %v522_v35, 1  ;;  %v524_v42 = vshrl.u32 %v522_v35, 16  ;;  %v773_v47 = vrot.slane %v1089_v45, %v1449_v16  ;;  %v1336_v56 = vld [vmem:[%s1601_s1 + $0xf8] sm:$0xff]   ;;  %v1333_v57 = vld [vmem:[%s1601_s1 + $0xd0] sm:$0xff]   ;;  %v1337_v60 = vld [vmem:[%s1601_s1 + $0x100] sm:$0xff]  }
  0x1c   : >> { %1196 = vmatprep.subr.bf16.mxu1 %v1357_v2  ;;  %v210_v21 = vrot.slane %v208_v20, 1  ;;  %v528_v43 = vrot.slane %v526_v38, 1  ;;  %v1335_v59 = vld [vmem:[%s1601_s1 + $0xd8] sm:$0xff]   ;;  %v1338_v61 = vld [vmem:[%s1601_s1 + $0x108] sm:$0xff]   ;;  %v1339_v62 = vld [vmem:[%s1601_s1 + $0x110] sm:$0xff]  }
  0x1d   : >> { %v777_v51 = vshll.u32 %v773_v47, 16  ;;  %v775_v54 = vshrl.u32 %v773_v47, 16  ;;  %v1340_v63 = vld [vmem:[%s1601_s1 + $0x118] sm:$0xff]   ;;  %v858_v1 = vrot.slane %v773_v47, 1 }
  0x1e   : >> { %1185 = vmatpush3.bf16.msra.mxu0 %v1311_v12  ;;  %v211_v24 = vor.u32 %v210_v21, %v206_v19  ;;  %v529_v48 = vor.u32 %v528_v43, %v524_v42 }
  0x1f   : >> { %1197 = vmatpush3.bf16.msra.mxu1 %v1312_v13  ;;  %1202 = vmatprep.subr.bf16.mxu0 %v1357_v2  ;;  %v779_v55 = vrot.slane %v777_v51, 1 }
  0x20   : >> { %1214 = vmatprep.subr.bf16.mxu1 %v1357_v2 }
  0x21   : >> { %1187 = vmatmul.mubr.msk.bf16.vlgmr.msra.gmra.mrb[0].mxu0 %vm236_vm1, %v211_v24  ;;  %v780_v58 = vor.u32 %v779_v55, %v775_v54 }
  0x22   : >> { %1199 = vmatmul.mubr.msk.bf16.vlgmr.msra.gmra.mrb[0].mxu1 %vm236_vm1, %v179_v15  ;;  %1203 = vmatpush3.bf16.msra.mxu0 %v1313_v23 }
  0x23   : >> { %1215 = vmatpush3.bf16.msra.mxu1 %v1314_v18  ;;  %1222 = vmatprep.mubr.msk.bf16.mxu1 %vm1358_vm0, %v1357_v2 }
  0x24   : >> { %1216 = vmatprep.subr.bf16.mxu1 %v1357_v2  ;;  %1204 = vmatprep.subr.bf16.mxu0 %v1357_v2 }
  0x25   : >> { %1210 = vmatprep.mubr.msk.bf16.mxu0 %vm1358_vm0, %v1357_v2 }
  0x26   : >> { %1205 = vmatpush3.bf16.msra.mxu0 %v1315_v26 }
  0x27   : >> { %1217 = vmatpush3.bf16.msra.mxu1 %v1316_v22  ;;  %1206 = vmatprep.subr.bf16.mxu0 %v1357_v2 }
  0x28   : >> { %1218 = vmatprep.subr.bf16.mxu1 %v1357_v2 }
  0x2a   : >> { %1207 = vmatpush3.bf16.msra.mxu0 %v1317_v28 }
  0x2b   : >> { %1219 = vmatpush3.bf16.msra.mxu1 %v1318_v25  ;;  %1208 = vmatprep.subr.bf16.mxu0 %v1357_v2 }
  0x2c   : >> { %1220 = vmatprep.subr.bf16.mxu1 %v1357_v2 }
  0x2e   : >> { %1209 = vmatpush3.bf16.msra.mxu0 %v1319_v31 }
  0x2f   : >> { %1221 = vmatpush3.bf16.msra.mxu1 %v1320_v27  ;;  %1226 = vmatprep.subr.bf16.mxu0 %v1357_v2 }
  0x30   : >> { %1238 = vmatprep.subr.bf16.mxu1 %v1357_v2 }
  0x31   : >> { %1211 = vmatmul.mubr.msk.bf16.vlgmr.msra.gmra.mrb[4].mxu0 %vm236_vm1, %v356_v32 }
  0x32   : >> { %1223 = vmatmul.mubr.msk.bf16.vlgmr.msra.gmra.mrb[4].mxu1 %vm236_vm1, %v1048_v29  ;;  %1227 = vmatpush3.bf16.msra.mxu0 %v1321_v34 }
  0x33   : >> { %1239 = vmatpush3.bf16.msra.mxu1 %v1322_v30  ;;  %1246 = vmatprep.mubr.msk.bf16.mxu1 %vm1358_vm0, %v1357_v2 }
  0x34   : >> { %1240 = vmatprep.subr.bf16.mxu1 %v1357_v2  ;;  %1228 = vmatprep.subr.bf16.mxu0 %v1357_v2 }
  0x35   : >> { %1234 = vmatprep.mubr.msk.bf16.mxu0 %vm1358_vm0, %v1357_v2 }
  0x36   : >> { %1229 = vmatpush3.bf16.msra.mxu0 %v1323_v37 }
  0x37   : >> { %1241 = vmatpush3.bf16.msra.mxu1 %v1324_v33  ;;  %1230 = vmatprep.subr.bf16.mxu0 %v1357_v2 }
  0x38   : >> { %1242 = vmatprep.subr.bf16.mxu1 %v1357_v2 }
  0x3a   : >> { %1231 = vmatpush3.bf16.msra.mxu0 %v1325_v40 }
  0x3b   : >> { %1243 = vmatpush3.bf16.msra.mxu1 %v1326_v36  ;;  %1232 = vmatprep.subr.bf16.mxu0 %v1357_v2 }
  0x3c   : >> { %1244 = vmatprep.subr.bf16.mxu1 %v1357_v2 }
  0x3e   : >> { %1233 = vmatpush3.bf16.msra.mxu0 %v1327_v46 }
  0x3f   : >> { %1245 = vmatpush3.bf16.msra.mxu1 %v1328_v39  ;;  %1250 = vmatprep.subr.bf16.mxu0 %v1357_v2 }
  0x40   : >> { %1262 = vmatprep.subr.bf16.mxu1 %v1357_v2 }
  0x41   : >> { %1235 = vmatmul.mubr.msk.bf16.vlgmr.msra.gmra.mrb[8].mxu0 %vm236_vm1, %v529_v48 }
  0x42   : >> { %1247 = vmatmul.mubr.msk.bf16.vlgmr.msra.gmra.mrb[8].mxu1 %vm236_vm1, %v607_v41  ;;  %1251 = vmatpush3.bf16.msra.mxu0 %v1329_v50 }
  0x43   : >> { %1263 = vmatpush3.bf16.msra.mxu1 %v1330_v44  ;;  %1270 = vmatprep.mubr.msk.bf16.mxu1 %vm1358_vm0, %v1357_v2 }
  0x44   : >> { %1264 = vmatprep.subr.bf16.mxu1 %v1357_v2  ;;  %1252 = vmatprep.subr.bf16.mxu0 %v1357_v2 }
  0x45   : >> { %1258 = vmatprep.mubr.msk.bf16.mxu0 %vm1358_vm0, %v1357_v2 }
  0x46   : >> { %1253 = vmatpush3.bf16.msra.mxu0 %v1331_v53 }
  0x47   : >> { %1265 = vmatpush3.bf16.msra.mxu1 %v1332_v49  ;;  %1254 = vmatprep.subr.bf16.mxu0 %v1357_v2 }
  0x48   : >> { %1266 = vmatprep.subr.bf16.mxu1 %v1357_v2 }
  0x4a   : >> { %1255 = vmatpush3.bf16.msra.mxu0 %v1333_v57 }
  0x4b   : >> { %1267 = vmatpush3.bf16.msra.mxu1 %v1334_v52  ;;  %1256 = vmatprep.subr.bf16.mxu0 %v1357_v2 }
  0x4c   : >> { %1268 = vmatprep.subr.bf16.mxu1 %v1357_v2 }
  0x4e   : >> { %1257 = vmatpush3.bf16.msra.mxu0 %v1335_v59 }
  0x4f   : >> { %1269 = vmatpush3.bf16.msra.mxu1 %v1336_v56  ;;  %1274 = vmatprep.subr.bf16.mxu0 %v1357_v2 }
  0x51   : >> { %1259 = vmatmul.mubr.msk.bf16.vlgmr.msra.gmra.mrb[12].mxu0 %vm236_vm1, %v1089_v45 }
  0x52   : >> { %1271 = vmatmul.mubr.msk.bf16.vlgmr.msra.gmra.mrb[12].mxu1 %vm236_vm1, %v780_v58  ;;  %1275 = vmatpush3.bf16.msra.mxu0 %v1337_v60 }
  0x53   : >> { %1282 = vmatprep.mubr.msk.bf16.mxu0 %vm1358_vm0, %v1357_v2  ;;  %1276 = vmatprep.subr.bf16.mxu0 %v1357_v2 }
  0x56   : >> { %1277 = vmatpush3.bf16.msra.mxu0 %v1338_v61 }
  0x57   : >> { %1278 = vmatprep.subr.bf16.mxu0 %v1357_v2 }
  0x5a   : >> { %1279 = vmatpush3.bf16.msra.mxu0 %v1339_v62 }
  0x5b   : >> { %1280 = vmatprep.subr.bf16.mxu0 %v1357_v2 }
  0x5e   : >> { %1281 = vmatpush3.bf16.msra.mxu0 %v1340_v63 }
  0x61   : >> { %1283 = vmatmul.mubr.msk.bf16.vlgmr.msra.gmra.mrb[16].mxu0 %vm236_vm1, %v858_v1 }
  0xf4   : >> { %v274_v7 = vpop.f32.mrb[0].mxu0 }
  0xf5   : >> { %v341_v3 = vpop.f32.mrb[0].mxu1  ;;  %v1188_v8 = vpop.f32.mrb[1].mxu0 }
  0xf6   : >> { %v1200_v4 = vpop.f32.mrb[1].mxu1  ;;  %v342_v9 = vadd.f32 %v341_v3, %v274_v7  ;;  %v277_v10 = vpop.f32.mrb[2].mxu0 }
  0xf7   : >> { %v344_v5 = vpop.f32.mrb[2].mxu1  ;;  %v1189_v11 = vpop.f32.mrb[3].mxu0 }
  0xf8   : >> { %v1201_v6 = vpop.f32.mrb[3].mxu1 }
 0x104   : >> { %v418_v16 = vpop.f32.mrb[4].mxu0 }
 0x105   : >> { %v499_v12 = vpop.f32.mrb[4].mxu1  ;;  %v424_v17 = vadd.f32 %v418_v16, %v342_v9  ;;  %v1212_v2 = vpop.f32.mrb[5].mxu0 }
 0x106   : >> { %v1224_v13 = vpop.f32.mrb[5].mxu1  ;;  %v421_v18 = vpop.f32.mrb[6].mxu0 }
 0x107   : >> { %v502_v14 = vpop.f32.mrb[6].mxu1  ;;  %v505_v19 = vadd.f32 %v499_v12, %v424_v17  ;;  %v1213_v20 = vpop.f32.mrb[7].mxu0 }
 0x108   : >> { %v1225_v15 = vpop.f32.mrb[7].mxu1 }
 0x114   : >> { %v591_v25 = vpop.f32.mrb[8].mxu0 }
 0x115   : >> { %v669_v21 = vpop.f32.mrb[8].mxu1  ;;  %v597_v26 = vadd.f32 %v591_v25, %v505_v19  ;;  %v1236_v27 = vpop.f32.mrb[9].mxu0 }
 0x116   : >> { %v1248_v22 = vpop.f32.mrb[9].mxu1  ;;  %v594_v28 = vpop.f32.mrb[10].mxu0 }
 0x117   : >> { %v672_v23 = vpop.f32.mrb[10].mxu1  ;;  %v675_v29 = vadd.f32 %v669_v21, %v597_v26  ;;  %v1237_v30 = vpop.f32.mrb[11].mxu0 }
 0x118   : >> { %v1249_v24 = vpop.f32.mrb[11].mxu1 }
 0x124   : >> { %v750_v35 = vpop.f32.mrb[12].mxu0 }
 0x125   : >> { %v842_v31 = vpop.f32.mrb[12].mxu1  ;;  %v756_v36 = vadd.f32 %v750_v35, %v675_v29  ;;  %v1260_v37 = vpop.f32.mrb[13].mxu0 }
 0x126   : >> { %v1272_v32 = vpop.f32.mrb[13].mxu1  ;;  %v753_v38 = vpop.f32.mrb[14].mxu0 }
 0x127   : >> { %v845_v33 = vpop.f32.mrb[14].mxu1  ;;  %v848_v39 = vadd.f32 %v842_v31, %v756_v36  ;;  %v1261_v40 = vpop.f32.mrb[15].mxu0 }
 0x128   : >> { %v1273_v34 = vpop.f32.mrb[15].mxu1 }
 0x134   : >> { %v920_v41 = vpop.f32.mrb[16].mxu0 }
 0x135   : >> { %v926_v42 = vadd.f32 %v920_v41, %v848_v39  ;;  %v1284_v43 = vpop.f32.mrb[17].mxu0 }
 0x136   : >> { %v923_v44 = vpop.f32.mrb[18].mxu0 }
 0x137   : >> { %v933_v45 = vadd.f32 %v1391_v0, %v926_v42  ;;  %v1285_v46 = vpop.f32.mrb[19].mxu0 }
 0x138   : > { %175 = sbr.rel (!%p173_p4) target bundleno = 16 (0x10), region = 81 }
 0x139   : >> { %vm934_vm2 = vcmp.ge.f32.partialorder %v933_v45, 0.0  ;;  %v935_v47 = vmul.f32 0.2, %v933_v45 }
 0x13b   : >> { %v936_v48 = vsel %vm934_vm2, %v933_v45, %v935_v47 }
 0x13c   : >> { %v937_v49 = vpack.c.bf16 %v936_v48, %v936_v48 }
 0x13e   : >> { %939 = vst [vmem:[%s938_s4] sm:$0x1] %v937_v49 }
 0x13f PF: > { %s13_s12 = sadd.s32 1, %s1351_s12  }
 0x140   : > { %p10_p5 = scmp.ge.s32.totalorder %s13_s12, 4  }
 0x142   :  { %12 = sbr.rel (!%p10_p5) target bundleno = 1 (0x1), region = 92 }

// kernel: _lambda_.11
= control target key start
LH: loop header
LB: loop body
LE: loop exit
PB: predicated region body
PF: predicated region fallthrough
CT: control target
= control target key end

     0   :  { %vm28_vm0 = vcmask 1041408   ;;  %v89_v0 = vmov 0.0   ;;  %vm90_vm1 = vmmov 0   ;;  %vm24_vm2 = vcmask 31744   ;;  %s123_s1 = inlined_call_operand.vmem [shape: bf16[4,128], index: 1, kind: input, shape index: {}]   ;;  %s124_s0 = inlined_call_operand.vmem [shape: bf16[2,4], index: 0, kind: input, shape index: {}]   ;;  %s125_s2 = inlined_call_operand.vmem [shape: f32[1,128], index: 2, kind: input, shape index: {}]   ;;  %s126_s3 = inlined_call_operand.vmem [shape: f32[2,128], index: 3, kind: output, shape index: {}]  }
   0x1   :  { %81 = vmatprep.subr.bf16.mxu0 %v89_v0  ;;  %v16_v1 = vld [vmem:[%s123_s1] sm:$0x3]  ;;  %83 = vmatprep.mubr.msk.bf16.mxu0 %vm90_vm1, %v89_v0 }
   0x2   :  { %v30_v2 = vsel %vm28_vm0, %v16_v1, 0  ;;  %v15_v3 = vld [vmem:[%s124_s0] sm:$0x1] }
   0x3   :  { %82 = vmatpush3.bf16.msra.mxu0 %v30_v2  ;;  %v77_v4 = vld [vmem:[%s125_s2] ss:$0 sm:$0xff] }
   0x6   :  { %84 = vmatmul.mubr.msk.bf16.vlgmr.msra.gmra.mrb[0].mxu0 %vm24_vm2, %v15_v3 }
  0xd9   :  { %v66_v5 = vpop.f32.mrb[0].mxu0 }
  0xda   :  { %v67_v6 = vadd.f32 %v77_v4, %v66_v5  ;;  %v85_v7 = vpop.f32.mrb[1].mxu0 }
  0xdb   :  { %v69_v8 = vpop.f32.mrb[2].mxu0 }
  0xdc   :  { %72 = vst [vmem:[%s126_s3] sm:$0x3] %v67_v6  ;;  %v86_v9 = vpop.f32.mrb[3].mxu0 }

// kernel: _lambda_.9
= control target key start
LH: loop header
LB: loop body
LE: loop exit
PB: predicated region body
PF: predicated region fallthrough
CT: control target
= control target key end

     0   :  { %s2462_s12 = smov 0   ;;  %s2795_s0 = inlined_call_operand.vmem [shape: bf16[2,6,6,32], index: 0, kind: input, shape index: {}]   ;;  %s2796_s1 = inlined_call_operand.vmem [shape: bf16[25,32,128], index: 1, kind: input, shape index: {}]   ;;  %s2797_s2 = inlined_call_operand.vmem [shape: f32[1,128], index: 2, kind: input, shape index: {}]   ;;  %s2798_s3 = inlined_call_operand.vmem [shape: bf16[2,2,2,128], index: 3, kind: output, shape index: {}]  }
   0x1 LB: > { %s1880_s13 = sadd.s32 4294967295, %s2434_s12   ;;  %p1884_p0 = scmp.ge.s32.totalorder %s2434_s12, 1  ;;  %s2434_s12 = sphi %s2462_s12, %s13_s12  }
   0x2   : > { %p137_p1 = scmp.lt.s32.totalorder %s2434_s12, 3 }
   0x4   : > { %p138_p2 = pnand %p1884_p0, %p137_p1 }
   0x5   : > { %p160_p3 = scmp.lt.s32.totalorder (!%p138_p2), %s1880_s13, 1  ;;  %v2473_v0 = vld [vmem:[%s2797_s2] ss:$0 sm:$0xff] (!%p138_p2)  ;;  %s2485_s24 = smov (!%p138_p2), 0  }
   0x6   : > { %141 = sbr.rel (%p138_p2) target bundleno = 347 (0x15b), region = 32 }
   0xd   : > { %s2800_s13 = smov (!%p160_p3, %s1880_s13), 1 }
   0xe   : > { %s2350_s16 = smul.u32 24, %s2800_s13  ;;  %s1886_s17 = sshll.u32 %s2800_s13, 1 }
   0xf   : > { %s2478_s20 = scalar_lea.vmem %s2798_s3, %s1886_s17 }
  0x10   : > { %s2483_s23 = scalar_lea.vmem %s2795_s0, %s2350_s16 }
  0x11 LB: >> { %v2369_v1 = vld [vmem:[%s2796_s1 + $0x10] sm:$0xff]   ;;  %v2440_v2 = vmov 0.0   ;;  %v2370_v3 = vld [vmem:[%s2796_s1] sm:$0xff]   ;;  %v2371_v4 = vld [vmem:[%s2796_s1 + $0x18] sm:$0xff]   ;;  %vm2441_vm0 = vmmov 0   ;;  %s1887_s4 = sshll.u32 %s2438_s24, 2  ;;  %s1805_s11 = scalar_lea.vmem %s2478_s20, %s2438_s24  ;;  %s2438_s24 = sphi %s2485_s24, %s176_s24  }
  0x12   : >> { %2150 = vmatprep.subr.bf16.mxu0 %v2440_v2  ;;  %2158 = vmatprep.subr.bf16.mxu1 %v2440_v2  ;;  %v2372_v5 = vld [vmem:[%s2796_s1 + $0x8] sm:$0xff]   ;;  %s2509_s7 = scalar_lea.vmem %s2483_s23, %s1887_s4  ;;  %vm211_vm1 = vcmask 261120   ;;  %v2375_v10 = vld [vmem:[%s2796_s1 + $0x30] sm:$0xff]   ;;  %v2374_v14 = vld [vmem:[%s2796_s1 + $0x20] sm:$0xff]   ;;  %s176_s24 = sadd.s32 1, %s2438_s24  }
  0x13   : >> { %2151 = vmatpush3.bf16.msra.mxu0 %v2369_v1  ;;  %2154 = vmatprep.mubr.msk.bf16.mxu0 %vm2441_vm0, %v2440_v2  ;;  %v179_v6 = vld [vmem:[%s2509_s7] sm:$0x7]  ;;  %v2377_v16 = vld [vmem:[%s2796_s1 + $0x38] sm:$0xff]   ;;  %v2376_v17 = vld [vmem:[%s2796_s1 + $0x28] sm:$0xff]   ;;  %p173_p4 = scmp.ge.s32.totalorder %s176_s24, 2  }
  0x14   : >> { %2159 = vmatpush3.bf16.msra.mxu1 %v2370_v3  ;;  %2152 = vmatprep.subr.bf16.mxu0 %v2440_v2  ;;  %v1892_v7 = vcombine.low %v179_v6, %v179_v6  ;;  %v2379_v19 = vld [vmem:[%s2796_s1 + $0x50] sm:$0xff]   ;;  %v2378_v21 = vld [vmem:[%s2796_s1 + $0x40] sm:$0xff]   ;;  %v2381_v23 = vld [vmem:[%s2796_s1 + $0x58] sm:$0xff]  }
  0x15   : >> { %2160 = vmatprep.subr.bf16.mxu1 %v2440_v2  ;;  %2162 = vmatprep.mubr.msk.bf16.mxu1 %vm2441_vm0, %v2440_v2  ;;  %v1921_v22 = vld [vmem:[%s2509_s7 + $0x4] sm:$0x7]  ;;  %v2380_v25 = vld [vmem:[%s2796_s1 + $0x48] sm:$0xff]   ;;  %v2384_v26 = vld [vmem:[%s2796_s1 + $0x70] sm:$0xff]  }
  0x16   : >> { %v193_v8 = vshrl.u32 %v1892_v7, 16  ;;  %v195_v9 = vshll.u32 %v1892_v7, 16  ;;  %v315_v20 = vrot.slane %v1892_v7, 1  ;;  %v1933_v24 = vcombine.low %v1921_v22, %v1921_v22  ;;  %v2382_v29 = vld [vmem:[%s2796_s1 + $0x60] sm:$0xff]   ;;  %v2386_v30 = vld [vmem:[%s2796_s1 + $0x78] sm:$0xff]   ;;  %v2385_v31 = vld [vmem:[%s2796_s1 + $0x68] sm:$0xff]  }
  0x17   : >> { %2153 = vmatpush3.bf16.msra.mxu0 %v2371_v4  ;;  %v441_v27 = vrot.slane %v1892_v7, 2  ;;  %v2388_v35 = vld [vmem:[%s2796_s1 + $0x90] sm:$0xff]   ;;  %v1959_v36 = vld [vmem:[%s2509_s7 + $0x8] sm:$0x7]  ;;  %v2387_v38 = vld [vmem:[%s2796_s1 + $0x80] sm:$0xff]  }
  0x18   : >> { %2161 = vmatpush3.bf16.msra.mxu1 %v2372_v5  ;;  %2166 = vmatprep.subr.bf16.mxu0 %v2440_v2  ;;  %v197_v11 = vrot.slane %v195_v9, 1  ;;  %v377_v12 = vrot.slane %v193_v8, 1  ;;  %v378_v13 = vrot.slane %v195_v9, 2  ;;  %v574_v28 = vshll.u32 %v1933_v24, 16  ;;  %v2390_v40 = vld [vmem:[%s2796_s1 + $0x98] sm:$0xff]   ;;  %v2389_v43 = vld [vmem:[%s2796_s1 + $0x88] sm:$0xff]  }
  0x19   : >> { %2174 = vmatprep.subr.bf16.mxu1 %v2440_v2  ;;  %v572_v32 = vshrl.u32 %v1933_v24, 16  ;;  %v639_v34 = vrot.slane %v1933_v24, 1  ;;  %v2591_v39 = vcombine.low %v1959_v36, %v1959_v36  ;;  %v765_v44 = vrot.slane %v1933_v24, 2  ;;  %v2392_v46 = vld [vmem:[%s2796_s1 + $0xb0] sm:$0xff]   ;;  %v2391_v48 = vld [vmem:[%s2796_s1 + $0xa0] sm:$0xff]   ;;  %v2394_v51 = vld [vmem:[%s2796_s1 + $0xb8] sm:$0xff]  }
  0x1a   : >> { %v198_v15 = vor.u32 %v197_v11, %v193_v8  ;;  %v379_v18 = vor.u32 %v378_v13, %v377_v12  ;;  %v576_v33 = vrot.slane %v574_v28, 1  ;;  %v702_v42 = vrot.slane %v574_v28, 2  ;;  %v2393_v52 = vld [vmem:[%s2796_s1 + $0xa8] sm:$0xff]   ;;  %v2397_v54 = vld [vmem:[%s2796_s1 + $0xd0] sm:$0xff]   ;;  %v2396_v55 = vld [vmem:[%s2796_s1 + $0xc0] sm:$0xff]  }
  0x1b   : >> { %2163 = vmatmul.mubr.msk.bf16.vlgmr.msra.gmra.mrb[0].mxu1 %vm211_vm1, %v179_v6  ;;  %v701_v41 = vrot.slane %v572_v32, 1  ;;  %v898_v45 = vshll.u32 %v2591_v39, 16  ;;  %v896_v49 = vshrl.u32 %v2591_v39, 16  ;;  %v2399_v58 = vld [vmem:[%s2796_s1 + $0xd8] sm:$0xff]   ;;  %v2398_v59 = vld [vmem:[%s2796_s1 + $0xc8] sm:$0xff]   ;;  %v2401_v61 = vld [vmem:[%s2796_s1 + $0xf0] sm:$0xff]  }
  0x1c   : >> { %2175 = vmatpush3.bf16.msra.mxu1 %v2375_v10  ;;  %2178 = vmatprep.mubr.msk.bf16.mxu1 %vm2441_vm0, %v2440_v2  ;;  %v577_v37 = vor.u32 %v576_v33, %v572_v32  ;;  %v963_v62 = vrot.slane %v2591_v39, 1  ;;  %v2400_v63 = vld [vmem:[%s2796_s1 + $0xe0] sm:$0xff]   ;;  %v1997_v1 = vld [vmem:[%s2509_s7 + $0xc] sm:$0x7]  ;;  %v2403_v3 = vld [vmem:[%s2796_s1 + $0xf8] sm:$0xff]   ;;  %v1089_v7 = vrot.slane %v2591_v39, 2 }
  0x1d   : >> { %2176 = vmatprep.subr.bf16.mxu1 %v2440_v2  ;;  %2155 = vmatmul.mubr.msk.bf16.vlgmr.msra.gmra.mrb[0].mxu0 %vm211_vm1, %v198_v15  ;;  %v703_v47 = vor.u32 %v702_v42, %v701_v41  ;;  %v900_v50 = vrot.slane %v898_v45, 1  ;;  %v1025_v56 = vrot.slane %v896_v49, 1  ;;  %v1026_v57 = vrot.slane %v898_v45, 2  ;;  %v2402_v5 = vld [vmem:[%s2796_s1 + $0xe8] sm:$0xff]   ;;  %v2406_v6 = vld [vmem:[%s2796_s1 + $0x110] sm:$0xff]   ;;  %v2404_v9 = vld [vmem:[%s2796_s1 + $0x100] sm:$0xff]  }
  0x1e   : >> { %2167 = vmatpush3.bf16.msra.mxu0 %v2374_v14  ;;  %2170 = vmatprep.mubr.msk.bf16.mxu0 %vm2441_vm0, %v2440_v2  ;;  %v2009_v4 = vcombine.low %v1997_v1, %v1997_v1  ;;  %v2408_v10 = vld [vmem:[%s2796_s1 + $0x118] sm:$0xff]   ;;  %v2407_v13 = vld [vmem:[%s2796_s1 + $0x108] sm:$0xff]   ;;  %v2410_v15 = vld [vmem:[%s2796_s1 + $0x130] sm:$0xff]  }
  0x1f   : >> { %2168 = vmatprep.subr.bf16.mxu0 %v2440_v2  ;;  %v901_v53 = vor.u32 %v900_v50, %v896_v49  ;;  %v1027_v60 = vor.u32 %v1026_v57, %v1025_v56  ;;  %v2413_v28 = vld [vmem:[%s2796_s1 + $0x140] sm:$0xff]   ;;  %v2415_v32 = vld [vmem:[%s2796_s1 + $0x148] sm:$0xff]  }
  0x20   : >> { %2177 = vmatpush3.bf16.msra.mxu1 %v2377_v16  ;;  %v1222_v8 = vshll.u32 %v2009_v4, 16  ;;  %v1220_v11 = vshrl.u32 %v2009_v4, 16  ;;  %v1287_v14 = vrot.slane %v2009_v4, 1  ;;  %v2035_v16 = vld [vmem:[%s2509_s7 + $0x10] sm:$0x7]  ;;  %v1413_v24 = vrot.slane %v2009_v4, 2 }
  0x21   : >> { %2190 = vmatprep.subr.bf16.mxu1 %v2440_v2  ;;  %v2420_v39 = vld [vmem:[%s2796_s1 + $0x168] sm:$0xff]   ;;  %v2422_v42 = vld [vmem:[%s2796_s1 + $0x180] sm:$0xff]  }
  0x22   : >> { %2169 = vmatpush3.bf16.msra.mxu0 %v2376_v17  ;;  %v1224_v12 = vrot.slane %v1222_v8, 1 }
  0x23   : >> { %2179 = vmatmul.mubr.msk.bf16.vlgmr.msra.gmra.mrb[4].mxu1 %vm211_vm1, %v379_v18  ;;  %2182 = vmatprep.subr.bf16.mxu0 %v2440_v2  ;;  %v2409_v18 = vld [vmem:[%s2796_s1 + $0x120] sm:$0xff]  }
  0x24   : >> { %2191 = vmatpush3.bf16.msra.mxu1 %v2379_v19  ;;  %2194 = vmatprep.mubr.msk.bf16.mxu1 %vm2441_vm0, %v2440_v2  ;;  %v1225_v17 = vor.u32 %v1224_v12, %v1220_v11  ;;  %v2709_v19 = vcombine.low %v2035_v16, %v2035_v16 }
  0x25   : >> { %2192 = vmatprep.subr.bf16.mxu1 %v2440_v2  ;;  %2171 = vmatmul.mubr.msk.bf16.vlgmr.msra.gmra.mrb[4].mxu0 %vm211_vm1, %v315_v20  ;;  %v2412_v20 = vld [vmem:[%s2796_s1 + $0x138] sm:$0xff]  }
  0x26   : >> { %2183 = vmatpush3.bf16.msra.mxu0 %v2378_v21  ;;  %2186 = vmatprep.mubr.msk.bf16.mxu0 %vm2441_vm0, %v2440_v2  ;;  %v1349_v21 = vrot.slane %v1220_v11, 1  ;;  %v1611_v41 = vrot.slane %v2709_v19, 1 }
  0x27   : >> { %2184 = vmatprep.subr.bf16.mxu0 %v2440_v2 }
  0x28   : >> { %2193 = vmatpush3.bf16.msra.mxu1 %v2381_v23  ;;  %v2411_v23 = vld [vmem:[%s2796_s1 + $0x128] sm:$0xff]  }
  0x29   : >> { %2206 = vmatprep.subr.bf16.mxu1 %v2440_v2 }
  0x2a   : >> { %2185 = vmatpush3.bf16.msra.mxu0 %v2380_v25  ;;  %v1546_v25 = vshll.u32 %v2709_v19, 16 }
  0x2b   : >> { %2195 = vmatmul.mubr.msk.bf16.vlgmr.msra.gmra.mrb[8].mxu1 %vm211_vm1, %v1921_v22  ;;  %2198 = vmatprep.subr.bf16.mxu0 %v2440_v2  ;;  %v1350_v22 = vrot.slane %v1222_v8, 2 }
  0x2c   : >> { %2207 = vmatpush3.bf16.msra.mxu1 %v2384_v26  ;;  %2210 = vmatprep.mubr.msk.bf16.mxu1 %vm2441_vm0, %v2440_v2  ;;  %v2414_v26 = vld [vmem:[%s2796_s1 + $0x150] sm:$0xff]  }
  0x2d   : >> { %2208 = vmatprep.subr.bf16.mxu1 %v2440_v2  ;;  %2187 = vmatmul.mubr.msk.bf16.vlgmr.msra.gmra.mrb[8].mxu0 %vm211_vm1, %v441_v27  ;;  %v1351_v27 = vor.u32 %v1350_v22, %v1349_v21 }
  0x2e   : >> { %2199 = vmatpush3.bf16.msra.mxu0 %v2382_v29  ;;  %2202 = vmatprep.mubr.msk.bf16.mxu0 %vm2441_vm0, %v2440_v2  ;;  %v1544_v29 = vshrl.u32 %v2709_v19, 16 }
  0x2f   : >> { %2200 = vmatprep.subr.bf16.mxu0 %v2440_v2 }
  0x30   : >> { %2209 = vmatpush3.bf16.msra.mxu1 %v2386_v30  ;;  %v1548_v30 = vrot.slane %v1546_v25, 1 }
  0x31   : >> { %2222 = vmatprep.subr.bf16.mxu1 %v2440_v2 }
  0x32   : >> { %2201 = vmatpush3.bf16.msra.mxu0 %v2385_v31  ;;  %v2416_v31 = vld [vmem:[%s2796_s1 + $0x158] sm:$0xff]   ;;  %v1549_v33 = vor.u32 %v1548_v30, %v1544_v29 }
  0x33   : >> { %2211 = vmatmul.mubr.msk.bf16.vlgmr.msra.gmra.mrb[12].mxu1 %vm211_vm1, %v639_v34  ;;  %2214 = vmatprep.subr.bf16.mxu0 %v2440_v2  ;;  %v2419_v34 = vld [vmem:[%s2796_s1 + $0x170] sm:$0xff]  }
  0x34   : >> { %2223 = vmatpush3.bf16.msra.mxu1 %v2388_v35  ;;  %2226 = vmatprep.mubr.msk.bf16.mxu1 %vm2441_vm0, %v2440_v2  ;;  %v2418_v35 = vld [vmem:[%s2796_s1 + $0x160] sm:$0xff]  }
  0x35   : >> { %2224 = vmatprep.subr.bf16.mxu1 %v2440_v2  ;;  %2203 = vmatmul.mubr.msk.bf16.vlgmr.msra.gmra.mrb[12].mxu0 %vm211_vm1, %v577_v37  ;;  %v1674_v37 = vrot.slane %v1546_v25, 2 }
  0x36   : >> { %2215 = vmatpush3.bf16.msra.mxu0 %v2387_v38  ;;  %2218 = vmatprep.mubr.msk.bf16.mxu0 %vm2441_vm0, %v2440_v2  ;;  %v2421_v38 = vld [vmem:[%s2796_s1 + $0x178] sm:$0xff]  }
  0x37   : >> { %2216 = vmatprep.subr.bf16.mxu0 %v2440_v2 }
  0x38   : >> { %2225 = vmatpush3.bf16.msra.mxu1 %v2390_v40 }
  0x39   : >> { %2238 = vmatprep.subr.bf16.mxu1 %v2440_v2 }
  0x3a   : >> { %2217 = vmatpush3.bf16.msra.mxu0 %v2389_v43  ;;  %v2423_v43 = vld [vmem:[%s2796_s1 + $0x188] sm:$0xff]  }
  0x3b   : >> { %2227 = vmatmul.mubr.msk.bf16.vlgmr.msra.gmra.mrb[16].mxu1 %vm211_vm1, %v765_v44  ;;  %2230 = vmatprep.subr.bf16.mxu0 %v2440_v2  ;;  %v1737_v44 = vrot.slane %v2709_v19, 2 }
  0x3c   : >> { %2239 = vmatpush3.bf16.msra.mxu1 %v2392_v46  ;;  %2242 = vmatprep.mubr.msk.bf16.mxu1 %vm2441_vm0, %v2440_v2 }
  0x3d   : >> { %2240 = vmatprep.subr.bf16.mxu1 %v2440_v2  ;;  %2219 = vmatmul.mubr.msk.bf16.vlgmr.msra.gmra.mrb[16].mxu0 %vm211_vm1, %v703_v47 }
  0x3e   : >> { %2231 = vmatpush3.bf16.msra.mxu0 %v2391_v48  ;;  %2234 = vmatprep.mubr.msk.bf16.mxu0 %vm2441_vm0, %v2440_v2 }
  0x3f   : >> { %2232 = vmatprep.subr.bf16.mxu0 %v2440_v2 }
  0x40   : >> { %2241 = vmatpush3.bf16.msra.mxu1 %v2394_v51 }
  0x41   : >> { %2254 = vmatprep.subr.bf16.mxu1 %v2440_v2 }
  0x42   : >> { %2233 = vmatpush3.bf16.msra.mxu0 %v2393_v52 }
  0x43   : >> { %2243 = vmatmul.mubr.msk.bf16.vlgmr.msra.gmra.mrb[20].mxu1 %vm211_vm1, %v901_v53  ;;  %2246 = vmatprep.subr.bf16.mxu0 %v2440_v2 }
  0x44   : >> { %2255 = vmatpush3.bf16.msra.mxu1 %v2397_v54  ;;  %2258 = vmatprep.mubr.msk.bf16.mxu1 %vm2441_vm0, %v2440_v2 }
  0x45   : >> { %2256 = vmatprep.subr.bf16.mxu1 %v2440_v2  ;;  %2235 = vmatmul.mubr.msk.bf16.vlgmr.msra.gmra.mrb[20].mxu0 %vm211_vm1, %v1959_v36  ;;  %v1673_v36 = vrot.slane %v1544_v29, 1 }
  0x46   : >> { %2247 = vmatpush3.bf16.msra.mxu0 %v2396_v55  ;;  %2250 = vmatprep.mubr.msk.bf16.mxu0 %vm2441_vm0, %v2440_v2 }
  0x47   : >> { %2248 = vmatprep.subr.bf16.mxu0 %v2440_v2  ;;  %v1675_v40 = vor.u32 %v1674_v37, %v1673_v36 }
  0x48   : >> { %2257 = vmatpush3.bf16.msra.mxu1 %v2399_v58 }
  0x49   : >> { %2270 = vmatprep.subr.bf16.mxu1 %v2440_v2 }
  0x4a   : >> { %2249 = vmatpush3.bf16.msra.mxu0 %v2398_v59 }
  0x4b   : >> { %2259 = vmatmul.mubr.msk.bf16.vlgmr.msra.gmra.mrb[24].mxu1 %vm211_vm1, %v1027_v60  ;;  %2262 = vmatprep.subr.bf16.mxu0 %v2440_v2 }
  0x4c   : >> { %2271 = vmatpush3.bf16.msra.mxu1 %v2401_v61  ;;  %2274 = vmatprep.mubr.msk.bf16.mxu1 %vm2441_vm0, %v2440_v2 }
  0x4d   : >> { %2272 = vmatprep.subr.bf16.mxu1 %v2440_v2  ;;  %2251 = vmatmul.mubr.msk.bf16.vlgmr.msra.gmra.mrb[24].mxu0 %vm211_vm1, %v963_v62 }
  0x4e   : >> { %2263 = vmatpush3.bf16.msra.mxu0 %v2400_v63  ;;  %2266 = vmatprep.mubr.msk.bf16.mxu0 %vm2441_vm0, %v2440_v2 }
  0x4f   : >> { %2264 = vmatprep.subr.bf16.mxu0 %v2440_v2 }
  0x50   : >> { %2273 = vmatpush3.bf16.msra.mxu1 %v2403_v3 }
  0x51   : >> { %2286 = vmatprep.subr.bf16.mxu1 %v2440_v2 }
  0x52   : >> { %2265 = vmatpush3.bf16.msra.mxu0 %v2402_v5 }
  0x53   : >> { %2275 = vmatmul.mubr.msk.bf16.vlgmr.msra.gmra.mrb[28].mxu1 %vm211_vm1, %v1997_v1  ;;  %2278 = vmatprep.subr.bf16.mxu0 %v2440_v2 }
  0x54   : >> { %2287 = vmatpush3.bf16.msra.mxu1 %v2406_v6  ;;  %2290 = vmatprep.mubr.msk.bf16.mxu1 %vm2441_vm0, %v2440_v2 }
  0x55   : >> { %2288 = vmatprep.subr.bf16.mxu1 %v2440_v2  ;;  %2267 = vmatmul.mubr.msk.bf16.vlgmr.msra.gmra.mrb[28].mxu0 %vm211_vm1, %v1089_v7 }
  0x56   : >> { %2279 = vmatpush3.bf16.msra.mxu0 %v2404_v9  ;;  %2282 = vmatprep.mubr.msk.bf16.mxu0 %vm2441_vm0, %v2440_v2 }
  0x57   : >> { %2280 = vmatprep.subr.bf16.mxu0 %v2440_v2 }
  0x58   : >> { %2289 = vmatpush3.bf16.msra.mxu1 %v2408_v10 }
  0x59   : >> { %2302 = vmatprep.subr.bf16.mxu1 %v2440_v2 }
  0x5a   : >> { %2281 = vmatpush3.bf16.msra.mxu0 %v2407_v13 }
  0x5b   : >> { %2291 = vmatmul.mubr.msk.bf16.vlgmr.msra.gmra.mrb[32].mxu1 %vm211_vm1, %v1287_v14  ;;  %2294 = vmatprep.subr.bf16.mxu0 %v2440_v2 }
  0x5c   : >> { %2303 = vmatpush3.bf16.msra.mxu1 %v2410_v15  ;;  %2306 = vmatprep.mubr.msk.bf16.mxu1 %vm2441_vm0, %v2440_v2 }
  0x5d   : >> { %2304 = vmatprep.subr.bf16.mxu1 %v2440_v2  ;;  %2283 = vmatmul.mubr.msk.bf16.vlgmr.msra.gmra.mrb[32].mxu0 %vm211_vm1, %v1225_v17 }
  0x5e   : >> { %2295 = vmatpush3.bf16.msra.mxu0 %v2409_v18  ;;  %2298 = vmatprep.mubr.msk.bf16.mxu0 %vm2441_vm0, %v2440_v2 }
  0x5f   : >> { %2296 = vmatprep.subr.bf16.mxu0 %v2440_v2 }
  0x60   : >> { %2305 = vmatpush3.bf16.msra.mxu1 %v2412_v20 }
  0x61   : >> { %2318 = vmatprep.subr.bf16.mxu1 %v2440_v2 }
  0x62   : >> { %2297 = vmatpush3.bf16.msra.mxu0 %v2411_v23 }
  0x63   : >> { %2307 = vmatmul.mubr.msk.bf16.vlgmr.msra.gmra.mrb[36].mxu1 %vm211_vm1, %v1413_v24  ;;  %2310 = vmatprep.subr.bf16.mxu0 %v2440_v2 }
  0x64   : >> { %2319 = vmatpush3.bf16.msra.mxu1 %v2414_v26  ;;  %2322 = vmatprep.mubr.msk.bf16.mxu1 %vm2441_vm0, %v2440_v2 }
  0x65   : >> { %2320 = vmatprep.subr.bf16.mxu1 %v2440_v2  ;;  %2299 = vmatmul.mubr.msk.bf16.vlgmr.msra.gmra.mrb[36].mxu0 %vm211_vm1, %v1351_v27 }
  0x66   : >> { %2311 = vmatpush3.bf16.msra.mxu0 %v2413_v28  ;;  %2314 = vmatprep.mubr.msk.bf16.mxu0 %vm2441_vm0, %v2440_v2 }
  0x67   : >> { %2312 = vmatprep.subr.bf16.mxu0 %v2440_v2 }
  0x68   : >> { %2321 = vmatpush3.bf16.msra.mxu1 %v2416_v31 }
  0x69   : >> { %2334 = vmatprep.subr.bf16.mxu1 %v2440_v2 }
  0x6a   : >> { %2313 = vmatpush3.bf16.msra.mxu0 %v2415_v32 }
  0x6b   : >> { %2323 = vmatmul.mubr.msk.bf16.vlgmr.msra.gmra.mrb[40].mxu1 %vm211_vm1, %v1549_v33  ;;  %2326 = vmatprep.subr.bf16.mxu0 %v2440_v2 }
  0x6c   : >> { %2335 = vmatpush3.bf16.msra.mxu1 %v2419_v34  ;;  %2338 = vmatprep.mubr.msk.bf16.mxu1 %vm2441_vm0, %v2440_v2 }
  0x6d   : >> { %2336 = vmatprep.subr.bf16.mxu1 %v2440_v2  ;;  %2315 = vmatmul.mubr.msk.bf16.vlgmr.msra.gmra.mrb[40].mxu0 %vm211_vm1, %v2035_v16 }
  0x6e   : >> { %2327 = vmatpush3.bf16.msra.mxu0 %v2418_v35  ;;  %2330 = vmatprep.mubr.msk.bf16.mxu0 %vm2441_vm0, %v2440_v2 }
  0x6f   : >> { %2328 = vmatprep.subr.bf16.mxu0 %v2440_v2 }
  0x70   : >> { %2337 = vmatpush3.bf16.msra.mxu1 %v2421_v38 }
  0x72   : >> { %2329 = vmatpush3.bf16.msra.mxu0 %v2420_v39 }
  0x73   : >> { %2339 = vmatmul.mubr.msk.bf16.vlgmr.msra.gmra.mrb[44].mxu1 %vm211_vm1, %v1675_v40  ;;  %2342 = vmatprep.subr.bf16.mxu0 %v2440_v2 }
  0x75   : >> { %2331 = vmatmul.mubr.msk.bf16.vlgmr.msra.gmra.mrb[44].mxu0 %vm211_vm1, %v1611_v41 }
  0x76   : >> { %2343 = vmatpush3.bf16.msra.mxu0 %v2422_v42  ;;  %2346 = vmatprep.mubr.msk.bf16.mxu0 %vm2441_vm0, %v2440_v2 }
  0x77   : >> { %2344 = vmatprep.subr.bf16.mxu0 %v2440_v2 }
  0x7a   : >> { %2345 = vmatpush3.bf16.msra.mxu0 %v2423_v43 }
  0x7d   : >> { %2347 = vmatmul.mubr.msk.bf16.vlgmr.msra.gmra.mrb[48].mxu0 %vm211_vm1, %v1737_v44 }
  0xee   : >> { %v304_v45 = vpop.f32.mrb[0].mxu1 }
  0xef   : >> { %v2164_v46 = vpop.f32.mrb[1].mxu1 }
  0xf0   : >> { %v307_v47 = vpop.f32.mrb[2].mxu1  ;;  %v249_v48 = vpop.f32.mrb[0].mxu0 }
  0xf1   : >> { %v2165_v49 = vpop.f32.mrb[3].mxu1  ;;  %v305_v50 = vadd.f32 %v304_v45, %v249_v48  ;;  %v2156_v51 = vpop.f32.mrb[1].mxu0 }
  0xf2   : >> { %v252_v52 = vpop.f32.mrb[2].mxu0 }
  0xf3   : >> { %v2157_v53 = vpop.f32.mrb[3].mxu0 }
  0xf6   : >> { %v429_v54 = vpop.f32.mrb[4].mxu1 }
  0xf7   : >> { %v2180_v55 = vpop.f32.mrb[5].mxu1 }
  0xf8   : >> { %v432_v56 = vpop.f32.mrb[6].mxu1  ;;  %v365_v57 = vpop.f32.mrb[4].mxu0 }
  0xf9   : >> { %v2181_v58 = vpop.f32.mrb[7].mxu1  ;;  %v371_v2 = vadd.f32 %v365_v57, %v305_v50  ;;  %v2172_v59 = vpop.f32.mrb[5].mxu0 }
  0xfa   : >> { %v368_v60 = vpop.f32.mrb[6].mxu0 }
  0xfb   : >> { %v435_v61 = vadd.f32 %v429_v54, %v371_v2  ;;  %v2173_v62 = vpop.f32.mrb[7].mxu0 }
  0xfe   : >> { %v556_v63 = vpop.f32.mrb[8].mxu1 }
  0xff   : >> { %v2196_v1 = vpop.f32.mrb[9].mxu1 }
 0x100   : >> { %v559_v3 = vpop.f32.mrb[10].mxu1  ;;  %v491_v4 = vpop.f32.mrb[8].mxu0 }
 0x101   : >> { %v2197_v5 = vpop.f32.mrb[11].mxu1  ;;  %v497_v6 = vadd.f32 %v491_v4, %v435_v61  ;;  %v2188_v7 = vpop.f32.mrb[9].mxu0 }
 0x102   : >> { %v494_v8 = vpop.f32.mrb[10].mxu0 }
 0x103   : >> { %v562_v9 = vadd.f32 %v556_v63, %v497_v6  ;;  %v2189_v10 = vpop.f32.mrb[11].mxu0 }
 0x106   : >> { %v689_v11 = vpop.f32.mrb[12].mxu1 }
 0x107   : >> { %v2212_v12 = vpop.f32.mrb[13].mxu1 }
 0x108   : >> { %v692_v13 = vpop.f32.mrb[14].mxu1  ;;  %v627_v14 = vpop.f32.mrb[12].mxu0 }
 0x109   : >> { %v2213_v15 = vpop.f32.mrb[15].mxu1  ;;  %v633_v16 = vadd.f32 %v627_v14, %v562_v9  ;;  %v2204_v17 = vpop.f32.mrb[13].mxu0 }
 0x10a   : >> { %v630_v18 = vpop.f32.mrb[14].mxu0 }
 0x10b   : >> { %v695_v19 = vadd.f32 %v689_v11, %v633_v16  ;;  %v2205_v20 = vpop.f32.mrb[15].mxu0 }
 0x10e   : >> { %v815_v21 = vpop.f32.mrb[16].mxu1 }
 0x10f   : >> { %v2228_v22 = vpop.f32.mrb[17].mxu1 }
 0x110   : >> { %v818_v23 = vpop.f32.mrb[18].mxu1  ;;  %v753_v24 = vpop.f32.mrb[16].mxu0 }
 0x111   : >> { %v2229_v25 = vpop.f32.mrb[19].mxu1  ;;  %v759_v26 = vadd.f32 %v753_v24, %v695_v19  ;;  %v2220_v27 = vpop.f32.mrb[17].mxu0 }
 0x112   : >> { %v756_v28 = vpop.f32.mrb[18].mxu0 }
 0x113   : >> { %v821_v29 = vadd.f32 %v815_v21, %v759_v26  ;;  %v2221_v30 = vpop.f32.mrb[19].mxu0 }
 0x116   : >> { %v951_v31 = vpop.f32.mrb[20].mxu1 }
 0x117   : >> { %v2244_v32 = vpop.f32.mrb[21].mxu1 }
 0x118   : >> { %v954_v33 = vpop.f32.mrb[22].mxu1  ;;  %v880_v34 = vpop.f32.mrb[20].mxu0 }
 0x119   : >> { %v2245_v35 = vpop.f32.mrb[23].mxu1  ;;  %v886_v36 = vadd.f32 %v880_v34, %v821_v29  ;;  %v2236_v37 = vpop.f32.mrb[21].mxu0 }
 0x11a   : >> { %v883_v38 = vpop.f32.mrb[22].mxu0 }
 0x11b   : >> { %v957_v39 = vadd.f32 %v951_v31, %v886_v36  ;;  %v2237_v40 = vpop.f32.mrb[23].mxu0 }
 0x11e   : >> { %v1077_v41 = vpop.f32.mrb[24].mxu1 }
 0x11f   : >> { %v2260_v42 = vpop.f32.mrb[25].mxu1 }
 0x120   : >> { %v1080_v43 = vpop.f32.mrb[26].mxu1  ;;  %v1013_v44 = vpop.f32.mrb[24].mxu0 }
 0x121   : >> { %v2261_v45 = vpop.f32.mrb[27].mxu1  ;;  %v1019_v46 = vadd.f32 %v1013_v44, %v957_v39  ;;  %v2252_v47 = vpop.f32.mrb[25].mxu0 }
 0x122   : >> { %v1016_v48 = vpop.f32.mrb[26].mxu0 }
 0x123   : >> { %v1083_v49 = vadd.f32 %v1077_v41, %v1019_v46  ;;  %v2253_v50 = vpop.f32.mrb[27].mxu0 }
 0x126   : >> { %v1204_v51 = vpop.f32.mrb[28].mxu1 }
 0x127   : >> { %v2276_v52 = vpop.f32.mrb[29].mxu1 }
 0x128   : >> { %v1207_v53 = vpop.f32.mrb[30].mxu1  ;;  %v1139_v54 = vpop.f32.mrb[28].mxu0 }
 0x129   : >> { %v2277_v55 = vpop.f32.mrb[31].mxu1  ;;  %v1145_v56 = vadd.f32 %v1139_v54, %v1083_v49  ;;  %v2268_v57 = vpop.f32.mrb[29].mxu0 }
 0x12a   : >> { %v1142_v58 = vpop.f32.mrb[30].mxu0 }
 0x12b   : >> { %v1210_v2 = vadd.f32 %v1204_v51, %v1145_v56  ;;  %v2269_v59 = vpop.f32.mrb[31].mxu0 }
 0x12e   : >> { %v1337_v60 = vpop.f32.mrb[32].mxu1 }
 0x12f   : >> { %v2292_v61 = vpop.f32.mrb[33].mxu1 }
 0x130   : >> { %v1340_v62 = vpop.f32.mrb[34].mxu1  ;;  %v1275_v63 = vpop.f32.mrb[32].mxu0 }
 0x131   : >> { %v2293_v1 = vpop.f32.mrb[35].mxu1  ;;  %v1281_v3 = vadd.f32 %v1275_v63, %v1210_v2  ;;  %v2284_v4 = vpop.f32.mrb[33].mxu0 }
 0x132   : >> { %v1278_v5 = vpop.f32.mrb[34].mxu0 }
 0x133   : >> { %v1343_v6 = vadd.f32 %v1337_v60, %v1281_v3  ;;  %v2285_v7 = vpop.f32.mrb[35].mxu0 }
 0x136   : >> { %v1463_v8 = vpop.f32.mrb[36].mxu1 }
 0x137   : >> { %v2308_v9 = vpop.f32.mrb[37].mxu1 }
 0x138   : >> { %v1466_v10 = vpop.f32.mrb[38].mxu1  ;;  %v1401_v11 = vpop.f32.mrb[36].mxu0 }
 0x139   : >> { %v2309_v12 = vpop.f32.mrb[39].mxu1  ;;  %v1407_v13 = vadd.f32 %v1401_v11, %v1343_v6  ;;  %v2300_v14 = vpop.f32.mrb[37].mxu0 }
 0x13a   : >> { %v1404_v15 = vpop.f32.mrb[38].mxu0 }
 0x13b   : >> { %v1469_v16 = vadd.f32 %v1463_v8, %v1407_v13  ;;  %v2301_v17 = vpop.f32.mrb[39].mxu0 }
 0x13e   : >> { %v1599_v18 = vpop.f32.mrb[40].mxu1 }
 0x13f   : >> { %v2324_v19 = vpop.f32.mrb[41].mxu1 }
 0x140   : >> { %v1602_v20 = vpop.f32.mrb[42].mxu1  ;;  %v1528_v21 = vpop.f32.mrb[40].mxu0 }
 0x141   : >> { %v2325_v22 = vpop.f32.mrb[43].mxu1  ;;  %v1534_v23 = vadd.f32 %v1528_v21, %v1469_v16  ;;  %v2316_v24 = vpop.f32.mrb[41].mxu0 }
 0x142   : >> { %v1531_v25 = vpop.f32.mrb[42].mxu0 }
 0x143   : >> { %v1605_v26 = vadd.f32 %v1599_v18, %v1534_v23  ;;  %v2317_v27 = vpop.f32.mrb[43].mxu0 }
 0x146   : >> { %v1725_v28 = vpop.f32.mrb[44].mxu1 }
 0x147   : >> { %v2340_v29 = vpop.f32.mrb[45].mxu1 }
 0x148   : >> { %v1728_v30 = vpop.f32.mrb[46].mxu1  ;;  %v1661_v31 = vpop.f32.mrb[44].mxu0 }
 0x149   : >> { %v2341_v32 = vpop.f32.mrb[47].mxu1  ;;  %v1667_v33 = vadd.f32 %v1661_v31, %v1605_v26  ;;  %v2332_v34 = vpop.f32.mrb[45].mxu0 }
 0x14a   : >> { %v1664_v35 = vpop.f32.mrb[46].mxu0 }
 0x14b   : >> { %v1731_v36 = vadd.f32 %v1725_v28, %v1667_v33  ;;  %v2333_v37 = vpop.f32.mrb[47].mxu0 }
 0x150   : >> { %v1787_v38 = vpop.f32.mrb[48].mxu0 }
 0x151   : >> { %v1793_v39 = vadd.f32 %v1787_v38, %v1731_v36  ;;  %v2348_v40 = vpop.f32.mrb[49].mxu0 }
 0x152   : >> { %v1790_v41 = vpop.f32.mrb[50].mxu0 }
 0x153   : >> { %v1800_v42 = vadd.f32 %v2473_v0, %v1793_v39  ;;  %v2349_v43 = vpop.f32.mrb[51].mxu0 }
 0x154   : > { %175 = sbr.rel (!%p173_p4) target bundleno = 17 (0x11), region = 99 }
 0x155   : >> { %vm1801_vm2 = vcmp.ge.f32.partialorder %v1800_v42, 0.0  ;;  %v1802_v44 = vmul.f32 0.2, %v1800_v42 }
 0x157   : >> { %v1803_v45 = vsel %vm1801_vm2, %v1800_v42, %v1802_v44 }
 0x158   : >> { %v1804_v46 = vpack.c.bf16 %v1803_v45, %v1803_v45 }
 0x15a   : >> { %1806 = vst [vmem:[%s1805_s11] sm:$0x1] %v1804_v46 }
 0x15b PF: > { %s13_s12 = sadd.s32 1, %s2434_s12  }
 0x15c   : > { %p10_p5 = scmp.ge.s32.totalorder %s13_s12, 4  }
 0x15e   :  { %12 = sbr.rel (!%p10_p5) target bundleno = 1 (0x1), region = 110 }

// kernel: _lambda_.10
= control target key start
LH: loop header
LB: loop body
LE: loop exit
PB: predicated region body
PF: predicated region fallthrough
CT: control target
= control target key end

     0   :  { %s3205_s12 = smov 0   ;;  %s3756_s0 = inlined_call_operand.vmem [shape: bf16[2,6,6,64], index: 0, kind: input, shape index: {}]   ;;  %s3757_s1 = inlined_call_operand.vmem [shape: bf16[25,64,128], index: 1, kind: input, shape index: {}]   ;;  %s3758_s2 = inlined_call_operand.vmem [shape: f32[1,128], index: 2, kind: input, shape index: {}]   ;;  %s3759_s3 = inlined_call_operand.vmem [shape: bf16[2,2,2,128], index: 3, kind: output, shape index: {}]  }
   0x1 LB: > { %s2277_s13 = sadd.s32 4294967295, %s3177_s12   ;;  %p2281_p0 = scmp.ge.s32.totalorder %s3177_s12, 1  ;;  %s3177_s12 = sphi %s3205_s12, %s13_s12  }
   0x2   : > { %p137_p1 = scmp.lt.s32.totalorder %s3177_s12, 3 }
   0x4   : > { %p138_p2 = pnand %p2281_p0, %p137_p1 }
   0x5   : > { %p160_p3 = scmp.lt.s32.totalorder (!%p138_p2), %s2277_s13, 1  ;;  %v3216_v0 = vld [vmem:[%s3758_s2] ss:$0 sm:$0xff] (!%p138_p2)  ;;  %s3228_s24 = smov (!%p138_p2), 0  }
   0x6   : > { %141 = sbr.rel (%p138_p2) target bundleno = 445 (0x1bd), region = 32 }
   0xd   : > { %s3761_s13 = smov (!%p160_p3, %s2277_s13), 1 }
   0xe   : > { %s3043_s16 = smul.u32 24, %s3761_s13  ;;  %s2283_s17 = sshll.u32 %s3761_s13, 1 }
   0xf   : > { %s3221_s20 = scalar_lea.vmem %s3759_s3, %s2283_s17 }
  0x10   : > { %s3226_s23 = scalar_lea.vmem %s3756_s0, %s3043_s16 }
  0x11 LB: >> { %v3062_v1 = vld [vmem:[%s3757_s1 + $0x20] sm:$0xff]   ;;  %v3183_v2 = vmov 0.0   ;;  %v3064_v4 = vld [vmem:[%s3757_s1 + $0x28] sm:$0xff]   ;;  %vm3184_vm0 = vmmov 0   ;;  %s2284_s4 = sshll.u32 %s3181_s24, 2  ;;  %v3066_v6 = vld [vmem:[%s3757_s1 + $0x30] sm:$0xff]   ;;  %s2202_s26 = scalar_lea.vmem %s3221_s20, %s3181_s24  ;;  %s3181_s24 = sphi %s3228_s24, %s176_s24  }
  0x12   : >> { %2743 = vmatprep.subr.bf16.mxu0 %v3183_v2  ;;  %2755 = vmatprep.subr.bf16.mxu1 %v3183_v2  ;;  %v3063_v3 = vld [vmem:[%s3757_s1] sm:$0xff]   ;;  %v3065_v5 = vld [vmem:[%s3757_s1 + $0x8] sm:$0xff]   ;;  %s3255_s7 = scalar_lea.vmem %s3226_s23, %s2284_s4  ;;  %v3067_v7 = vld [vmem:[%s3757_s1 + $0x10] sm:$0xff]   ;;  %vm231_vm1 = vcmask 523264   ;;  %s176_s24 = sadd.s32 1, %s3181_s24  }
  0x13   : >> { %2744 = vmatpush3.bf16.msra.mxu0 %v3062_v1  ;;  %2751 = vmatprep.mubr.msk.bf16.mxu0 %vm3184_vm0, %v3183_v2  ;;  %v179_v8 = vld [vmem:[%s3255_s7] sm:$0x7]  ;;  %v3068_v10 = vld [vmem:[%s3757_s1 + $0x38] sm:$0xff]   ;;  %v3073_v18 = vld [vmem:[%s3757_s1 + $0x48] sm:$0xff]   ;;  %p173_p4 = scmp.ge.s32.totalorder %s176_s24, 2  }
  0x14   : >> { %2756 = vmatpush3.bf16.msra.mxu1 %v3063_v3  ;;  %2745 = vmatprep.subr.bf16.mxu0 %v3183_v2  ;;  %v3266_v9 = vcombine.low %v179_v8, %v179_v8  ;;  %v3069_v11 = vld [vmem:[%s3757_s1 + $0x18] sm:$0xff]   ;;  %v3071_v15 = vld [vmem:[%s3757_s1 + $0x40] sm:$0xff]   ;;  %v3074_v19 = vld [vmem:[%s3757_s1 + $0x68] sm:$0xff]  }
  0x15   : >> { %2757 = vmatprep.subr.bf16.mxu1 %v3183_v2  ;;  %2763 = vmatprep.mubr.msk.bf16.mxu1 %vm3184_vm0, %v3183_v2  ;;  %v3072_v17 = vld [vmem:[%s3757_s1 + $0x60] sm:$0xff]   ;;  %v3075_v20 = vld [vmem:[%s3757_s1 + $0x50] sm:$0xff]   ;;  %v3077_v24 = vld [vmem:[%s3757_s1 + $0x58] sm:$0xff]  }
  0x16   : >> { %v201_v12 = vshrl.u32 %v3266_v9, 16  ;;  %v203_v13 = vshll.u32 %v3266_v9, 16  ;;  %v3076_v21 = vld [vmem:[%s3757_s1 + $0x70] sm:$0xff]   ;;  %v3078_v25 = vld [vmem:[%s3757_s1 + $0x78] sm:$0xff]   ;;  %v351_v26 = vrot.slane %v3266_v9, 1  ;;  %v3079_v27 = vld [vmem:[%s3757_s1 + $0x80] sm:$0xff]  }
  0x17   : >> { %2746 = vmatpush3.bf16.msra.mxu0 %v3064_v4  ;;  %v3080_v29 = vld [vmem:[%s3757_s1 + $0xa0] sm:$0xff]   ;;  %v3081_v30 = vld [vmem:[%s3757_s1 + $0x88] sm:$0xff]   ;;  %v3083_v32 = vld [vmem:[%s3757_s1 + $0x90] sm:$0xff]   ;;  %v509_v36 = vrot.slane %v3266_v9, 2 }
  0x18   : >> { %2758 = vmatpush3.bf16.msra.mxu1 %v3065_v5  ;;  %2747 = vmatprep.subr.bf16.mxu0 %v3183_v2  ;;  %v205_v14 = vrot.slane %v203_v13, 1  ;;  %v429_v22 = vrot.slane %v201_v12, 1  ;;  %v430_v23 = vrot.slane %v203_v13, 2  ;;  %v3082_v31 = vld [vmem:[%s3757_s1 + $0xa8] sm:$0xff]   ;;  %v3084_v33 = vld [vmem:[%s3757_s1 + $0xb0] sm:$0xff]   ;;  %v3085_v34 = vld [vmem:[%s3757_s1 + $0x98] sm:$0xff]  }
  0x19   : >> { %2759 = vmatprep.subr.bf16.mxu1 %v3183_v2  ;;  %v3086_v35 = vld [vmem:[%s3757_s1 + $0xb8] sm:$0xff]   ;;  %v3087_v37 = vld [vmem:[%s3757_s1 + $0xc0] sm:$0xff]   ;;  %v3090_v41 = vld [vmem:[%s3757_s1 + $0xc8] sm:$0xff]  }
  0x1a   : >> { %v206_v16 = vor.u32 %v205_v14, %v201_v12  ;;  %v431_v28 = vor.u32 %v430_v23, %v429_v22  ;;  %v2344_v38 = vld [vmem:[%s3255_s7 + $0x4] sm:$0x7]  ;;  %v3091_v42 = vld [vmem:[%s3757_s1 + $0xe8] sm:$0xff]   ;;  %v3092_v44 = vld [vmem:[%s3757_s1 + $0xd0] sm:$0xff]  }
  0x1b   : >> { %2748 = vmatpush3.bf16.msra.mxu0 %v3066_v6  ;;  %v3089_v39 = vld [vmem:[%s3757_s1 + $0xe0] sm:$0xff]   ;;  %v3364_v40 = vcombine.low %v2344_v38, %v2344_v38  ;;  %v3093_v45 = vld [vmem:[%s3757_s1 + $0xf0] sm:$0xff]   ;;  %v3094_v48 = vld [vmem:[%s3757_s1 + $0xd8] sm:$0xff]  }
  0x1c   : >> { %2760 = vmatpush3.bf16.msra.mxu1 %v3067_v7  ;;  %2749 = vmatprep.subr.bf16.mxu0 %v3183_v2  ;;  %v3095_v49 = vld [vmem:[%s3757_s1 + $0xf8] sm:$0xff]   ;;  %v3096_v51 = vld [vmem:[%s3757_s1 + $0x100] sm:$0xff]   ;;  %v3098_v54 = vld [vmem:[%s3757_s1 + $0x108] sm:$0xff]  }
  0x1d   : >> { %2761 = vmatprep.subr.bf16.mxu1 %v3183_v2  ;;  %v674_v43 = vshll.u32 %v3364_v40, 16  ;;  %v672_v46 = vshrl.u32 %v3364_v40, 16  ;;  %v755_v52 = vrot.slane %v3364_v40, 1  ;;  %v3097_v53 = vld [vmem:[%s3757_s1 + $0x120] sm:$0xff]   ;;  %v3099_v55 = vld [vmem:[%s3757_s1 + $0x128] sm:$0xff]   ;;  %v3100_v56 = vld [vmem:[%s3757_s1 + $0x110] sm:$0xff]  }
  0x1e   : >> { %v3101_v57 = vld [vmem:[%s3757_s1 + $0x130] sm:$0xff]   ;;  %v3102_v60 = vld [vmem:[%s3757_s1 + $0x118] sm:$0xff]   ;;  %v3104_v63 = vld [vmem:[%s3757_s1 + $0x140] sm:$0xff]   ;;  %v913_v1 = vrot.slane %v3364_v40, 2 }
  0x1f   : >> { %2750 = vmatpush3.bf16.msra.mxu0 %v3068_v10  ;;  %v676_v47 = vrot.slane %v674_v43, 1  ;;  %v833_v58 = vrot.slane %v672_v46, 1  ;;  %v834_v59 = vrot.slane %v674_v43, 2  ;;  %v3103_v61 = vld [vmem:[%s3757_s1 + $0x138] sm:$0xff]   ;;  %v3105_v3 = vld [vmem:[%s3757_s1 + $0x160] sm:$0xff]   ;;  %v3106_v5 = vld [vmem:[%s3757_s1 + $0x148] sm:$0xff]  }
  0x20   : >> { %2762 = vmatpush3.bf16.msra.mxu1 %v3069_v11  ;;  %2767 = vmatprep.subr.bf16.mxu0 %v3183_v2  ;;  %v2412_v4 = vld [vmem:[%s3255_s7 + $0x8] sm:$0x7]  ;;  %v3109_v10 = vld [vmem:[%s3757_s1 + $0x170] sm:$0xff]   ;;  %v3110_v11 = vld [vmem:[%s3757_s1 + $0x158] sm:$0xff]  }
  0x21   : >> { %2779 = vmatprep.subr.bf16.mxu1 %v3183_v2  ;;  %v677_v50 = vor.u32 %v676_v47, %v672_v46  ;;  %v835_v62 = vor.u32 %v834_v59, %v833_v58  ;;  %v3453_v6 = vcombine.low %v2412_v4, %v2412_v4  ;;  %v3107_v7 = vld [vmem:[%s3757_s1 + $0x168] sm:$0xff]   ;;  %v3111_v14 = vld [vmem:[%s3757_s1 + $0x178] sm:$0xff]  }
  0x22   : >> { %2752 = vmatmul.mubr.msk.bf16.vlgmr.msra.gmra.mrb[0].mxu0 %vm231_vm1, %v206_v16  ;;  %v3119_v22 = vld [vmem:[%s3757_s1 + $0x198] sm:$0xff]  }
  0x23   : >> { %2764 = vmatmul.mubr.msk.bf16.vlgmr.msra.gmra.mrb[0].mxu1 %vm231_vm1, %v179_v8  ;;  %2768 = vmatpush3.bf16.msra.mxu0 %v3071_v15  ;;  %v3108_v8 = vld [vmem:[%s3757_s1 + $0x150] sm:$0xff]   ;;  %v1078_v9 = vshll.u32 %v3453_v6, 16  ;;  %v1076_v12 = vshrl.u32 %v3453_v6, 16  ;;  %v3113_v15 = vld [vmem:[%s3757_s1 + $0x180] sm:$0xff]  }
  0x24   : >> { %2780 = vmatpush3.bf16.msra.mxu1 %v3072_v17  ;;  %2769 = vmatprep.subr.bf16.mxu0 %v3183_v2  ;;  %v3114_v17 = vld [vmem:[%s3757_s1 + $0x1a0] sm:$0xff]  }
  0x25   : >> { %2781 = vmatprep.subr.bf16.mxu1 %v3183_v2  ;;  %2775 = vmatprep.mubr.msk.bf16.mxu0 %vm3184_vm0, %v3183_v2  ;;  %v1080_v13 = vrot.slane %v1078_v9, 1  ;;  %v1237_v23 = vrot.slane %v1076_v12, 1 }
  0x26   : >> { %2787 = vmatprep.mubr.msk.bf16.mxu1 %vm3184_vm0, %v3183_v2 }
  0x27   : >> { %2770 = vmatpush3.bf16.msra.mxu0 %v3073_v18  ;;  %v1081_v16 = vor.u32 %v1080_v13, %v1076_v12  ;;  %v3115_v18 = vld [vmem:[%s3757_s1 + $0x188] sm:$0xff]  }
  0x28   : >> { %2782 = vmatpush3.bf16.msra.mxu1 %v3074_v19  ;;  %2771 = vmatprep.subr.bf16.mxu0 %v3183_v2  ;;  %v3116_v19 = vld [vmem:[%s3757_s1 + $0x1a8] sm:$0xff]  }
  0x29   : >> { %2783 = vmatprep.subr.bf16.mxu1 %v3183_v2 }
  0x2b   : >> { %2772 = vmatpush3.bf16.msra.mxu0 %v3075_v20  ;;  %v3117_v20 = vld [vmem:[%s3757_s1 + $0x190] sm:$0xff]  }
  0x2c   : >> { %2784 = vmatpush3.bf16.msra.mxu1 %v3076_v21  ;;  %2773 = vmatprep.subr.bf16.mxu0 %v3183_v2  ;;  %v3118_v21 = vld [vmem:[%s3757_s1 + $0x1b0] sm:$0xff]  }
  0x2d   : >> { %2785 = vmatprep.subr.bf16.mxu1 %v3183_v2 }
  0x2f   : >> { %2774 = vmatpush3.bf16.msra.mxu0 %v3077_v24  ;;  %v1238_v24 = vrot.slane %v1078_v9, 2 }
  0x30   : >> { %2786 = vmatpush3.bf16.msra.mxu1 %v3078_v25  ;;  %2791 = vmatprep.subr.bf16.mxu0 %v3183_v2  ;;  %v3120_v25 = vld [vmem:[%s3757_s1 + $0x1b8] sm:$0xff]  }
  0x31   : >> { %2803 = vmatprep.subr.bf16.mxu1 %v3183_v2 }
  0x32   : >> { %2776 = vmatmul.mubr.msk.bf16.vlgmr.msra.gmra.mrb[4].mxu0 %vm231_vm1, %v351_v26  ;;  %v1159_v26 = vrot.slane %v3453_v6, 1 }
  0x33   : >> { %2792 = vmatpush3.bf16.msra.mxu0 %v3079_v27  ;;  %2788 = vmatmul.mubr.msk.bf16.vlgmr.msra.gmra.mrb[4].mxu1 %vm231_vm1, %v431_v28  ;;  %v3121_v27 = vld [vmem:[%s3757_s1 + $0x1c0] sm:$0xff]   ;;  %v1239_v28 = vor.u32 %v1238_v24, %v1237_v23 }
  0x34   : >> { %2804 = vmatpush3.bf16.msra.mxu1 %v3080_v29  ;;  %2793 = vmatprep.subr.bf16.mxu0 %v3183_v2  ;;  %v3122_v29 = vld [vmem:[%s3757_s1 + $0x1e0] sm:$0xff]  }
  0x35   : >> { %2805 = vmatprep.subr.bf16.mxu1 %v3183_v2  ;;  %2799 = vmatprep.mubr.msk.bf16.mxu0 %vm3184_vm0, %v3183_v2 }
  0x36   : >> { %2811 = vmatprep.mubr.msk.bf16.mxu1 %vm3184_vm0, %v3183_v2 }
  0x37   : >> { %2794 = vmatpush3.bf16.msra.mxu0 %v3081_v30  ;;  %v3123_v30 = vld [vmem:[%s3757_s1 + $0x1c8] sm:$0xff]  }
  0x38   : >> { %2806 = vmatpush3.bf16.msra.mxu1 %v3082_v31  ;;  %2795 = vmatprep.subr.bf16.mxu0 %v3183_v2  ;;  %v3124_v31 = vld [vmem:[%s3757_s1 + $0x1e8] sm:$0xff]  }
  0x39   : >> { %2807 = vmatprep.subr.bf16.mxu1 %v3183_v2 }
  0x3b   : >> { %2796 = vmatpush3.bf16.msra.mxu0 %v3083_v32  ;;  %v3125_v32 = vld [vmem:[%s3757_s1 + $0x1d0] sm:$0xff]  }
  0x3c   : >> { %2808 = vmatpush3.bf16.msra.mxu1 %v3084_v33  ;;  %2797 = vmatprep.subr.bf16.mxu0 %v3183_v2  ;;  %v3126_v33 = vld [vmem:[%s3757_s1 + $0x1f0] sm:$0xff]  }
  0x3d   : >> { %2809 = vmatprep.subr.bf16.mxu1 %v3183_v2 }
  0x3f   : >> { %2798 = vmatpush3.bf16.msra.mxu0 %v3085_v34  ;;  %v3127_v34 = vld [vmem:[%s3757_s1 + $0x1d8] sm:$0xff]  }
  0x40   : >> { %2810 = vmatpush3.bf16.msra.mxu1 %v3086_v35  ;;  %2815 = vmatprep.subr.bf16.mxu0 %v3183_v2  ;;  %v3128_v35 = vld [vmem:[%s3757_s1 + $0x1f8] sm:$0xff]  }
  0x41   : >> { %2827 = vmatprep.subr.bf16.mxu1 %v3183_v2 }
  0x42   : >> { %2800 = vmatmul.mubr.msk.bf16.vlgmr.msra.gmra.mrb[8].mxu0 %vm231_vm1, %v509_v36  ;;  %v1317_v36 = vrot.slane %v3453_v6, 2 }
  0x43   : >> { %2816 = vmatpush3.bf16.msra.mxu0 %v3087_v37  ;;  %2812 = vmatmul.mubr.msk.bf16.vlgmr.msra.gmra.mrb[8].mxu1 %vm231_vm1, %v2344_v38  ;;  %v3129_v37 = vld [vmem:[%s3757_s1 + $0x200] sm:$0xff]   ;;  %v2480_v38 = vld [vmem:[%s3255_s7 + $0xc] sm:$0x7] }
  0x44   : >> { %2828 = vmatpush3.bf16.msra.mxu1 %v3089_v39  ;;  %2817 = vmatprep.subr.bf16.mxu0 %v3183_v2  ;;  %v3131_v39 = vld [vmem:[%s3757_s1 + $0x220] sm:$0xff]   ;;  %v3570_v40 = vcombine.low %v2480_v38, %v2480_v38 }
  0x45   : >> { %2829 = vmatprep.subr.bf16.mxu1 %v3183_v2  ;;  %2823 = vmatprep.mubr.msk.bf16.mxu0 %vm3184_vm0, %v3183_v2 }
  0x46   : >> { %2835 = vmatprep.mubr.msk.bf16.mxu1 %vm3184_vm0, %v3183_v2  ;;  %v1482_v43 = vshll.u32 %v3570_v40, 16  ;;  %v1480_v46 = vshrl.u32 %v3570_v40, 16 }
  0x47   : >> { %2818 = vmatpush3.bf16.msra.mxu0 %v3090_v41  ;;  %v3132_v41 = vld [vmem:[%s3757_s1 + $0x208] sm:$0xff]  }
  0x48   : >> { %2830 = vmatpush3.bf16.msra.mxu1 %v3091_v42  ;;  %2819 = vmatprep.subr.bf16.mxu0 %v3183_v2  ;;  %v3133_v42 = vld [vmem:[%s3757_s1 + $0x228] sm:$0xff]   ;;  %v1484_v47 = vrot.slane %v1482_v43, 1  ;;  %v1641_v58 = vrot.slane %v1480_v46, 1  ;;  %v1642_v59 = vrot.slane %v1482_v43, 2 }
  0x49   : >> { %2831 = vmatprep.subr.bf16.mxu1 %v3183_v2 }
  0x4b   : >> { %2820 = vmatpush3.bf16.msra.mxu0 %v3092_v44  ;;  %v3134_v44 = vld [vmem:[%s3757_s1 + $0x210] sm:$0xff]  }
  0x4c   : >> { %2832 = vmatpush3.bf16.msra.mxu1 %v3093_v45  ;;  %2821 = vmatprep.subr.bf16.mxu0 %v3183_v2  ;;  %v3135_v45 = vld [vmem:[%s3757_s1 + $0x230] sm:$0xff]  }
  0x4d   : >> { %2833 = vmatprep.subr.bf16.mxu1 %v3183_v2 }
  0x4f   : >> { %2822 = vmatpush3.bf16.msra.mxu0 %v3094_v48  ;;  %v3136_v48 = vld [vmem:[%s3757_s1 + $0x218] sm:$0xff]  }
  0x50   : >> { %2834 = vmatpush3.bf16.msra.mxu1 %v3095_v49  ;;  %2839 = vmatprep.subr.bf16.mxu0 %v3183_v2  ;;  %v3137_v49 = vld [vmem:[%s3757_s1 + $0x238] sm:$0xff]  }
  0x51   : >> { %2851 = vmatprep.subr.bf16.mxu1 %v3183_v2 }
  0x52   : >> { %2824 = vmatmul.mubr.msk.bf16.vlgmr.msra.gmra.mrb[12].mxu0 %vm231_vm1, %v677_v50  ;;  %v1485_v50 = vor.u32 %v1484_v47, %v1480_v46 }
  0x53   : >> { %2840 = vmatpush3.bf16.msra.mxu0 %v3096_v51  ;;  %2836 = vmatmul.mubr.msk.bf16.vlgmr.msra.gmra.mrb[12].mxu1 %vm231_vm1, %v755_v52  ;;  %v3138_v51 = vld [vmem:[%s3757_s1 + $0x240] sm:$0xff]   ;;  %v1563_v52 = vrot.slane %v3570_v40, 1 }
  0x54   : >> { %2852 = vmatpush3.bf16.msra.mxu1 %v3097_v53  ;;  %2841 = vmatprep.subr.bf16.mxu0 %v3183_v2  ;;  %v3139_v53 = vld [vmem:[%s3757_s1 + $0x260] sm:$0xff]  }
  0x55   : >> { %2853 = vmatprep.subr.bf16.mxu1 %v3183_v2  ;;  %2847 = vmatprep.mubr.msk.bf16.mxu0 %vm3184_vm0, %v3183_v2 }
  0x56   : >> { %2859 = vmatprep.mubr.msk.bf16.mxu1 %vm3184_vm0, %v3183_v2 }
  0x57   : >> { %2842 = vmatpush3.bf16.msra.mxu0 %v3098_v54  ;;  %v3140_v54 = vld [vmem:[%s3757_s1 + $0x248] sm:$0xff]  }
  0x58   : >> { %2854 = vmatpush3.bf16.msra.mxu1 %v3099_v55  ;;  %2843 = vmatprep.subr.bf16.mxu0 %v3183_v2  ;;  %v3141_v55 = vld [vmem:[%s3757_s1 + $0x268] sm:$0xff]  }
  0x59   : >> { %2855 = vmatprep.subr.bf16.mxu1 %v3183_v2 }
  0x5b   : >> { %2844 = vmatpush3.bf16.msra.mxu0 %v3100_v56  ;;  %v3142_v56 = vld [vmem:[%s3757_s1 + $0x250] sm:$0xff]  }
  0x5c   : >> { %2856 = vmatpush3.bf16.msra.mxu1 %v3101_v57  ;;  %2845 = vmatprep.subr.bf16.mxu0 %v3183_v2  ;;  %v3143_v57 = vld [vmem:[%s3757_s1 + $0x270] sm:$0xff]  }
  0x5d   : >> { %2857 = vmatprep.subr.bf16.mxu1 %v3183_v2 }
  0x5f   : >> { %2846 = vmatpush3.bf16.msra.mxu0 %v3102_v60  ;;  %v3144_v60 = vld [vmem:[%s3757_s1 + $0x258] sm:$0xff]  }
  0x60   : >> { %2858 = vmatpush3.bf16.msra.mxu1 %v3103_v61  ;;  %2863 = vmatprep.subr.bf16.mxu0 %v3183_v2  ;;  %v3145_v61 = vld [vmem:[%s3757_s1 + $0x278] sm:$0xff]  }
  0x61   : >> { %2875 = vmatprep.subr.bf16.mxu1 %v3183_v2 }
  0x62   : >> { %2848 = vmatmul.mubr.msk.bf16.vlgmr.msra.gmra.mrb[16].mxu0 %vm231_vm1, %v835_v62  ;;  %v1643_v62 = vor.u32 %v1642_v59, %v1641_v58 }
  0x63   : >> { %2864 = vmatpush3.bf16.msra.mxu0 %v3104_v63  ;;  %2860 = vmatmul.mubr.msk.bf16.vlgmr.msra.gmra.mrb[16].mxu1 %vm231_vm1, %v913_v1  ;;  %v3146_v63 = vld [vmem:[%s3757_s1 + $0x280] sm:$0xff]   ;;  %v1721_v1 = vrot.slane %v3570_v40, 2 }
  0x64   : >> { %2876 = vmatpush3.bf16.msra.mxu1 %v3105_v3  ;;  %2865 = vmatprep.subr.bf16.mxu0 %v3183_v2  ;;  %v3147_v3 = vld [vmem:[%s3757_s1 + $0x2a0] sm:$0xff]  }
  0x65   : >> { %2877 = vmatprep.subr.bf16.mxu1 %v3183_v2  ;;  %2871 = vmatprep.mubr.msk.bf16.mxu0 %vm3184_vm0, %v3183_v2 }
  0x66   : >> { %2883 = vmatprep.mubr.msk.bf16.mxu1 %vm3184_vm0, %v3183_v2 }
  0x67   : >> { %2866 = vmatpush3.bf16.msra.mxu0 %v3106_v5  ;;  %v3148_v5 = vld [vmem:[%s3757_s1 + $0x288] sm:$0xff]  }
  0x68   : >> { %2878 = vmatpush3.bf16.msra.mxu1 %v3107_v7  ;;  %2867 = vmatprep.subr.bf16.mxu0 %v3183_v2  ;;  %v3149_v7 = vld [vmem:[%s3757_s1 + $0x2a8] sm:$0xff]  }
  0x69   : >> { %2879 = vmatprep.subr.bf16.mxu1 %v3183_v2 }
  0x6b   : >> { %2868 = vmatpush3.bf16.msra.mxu0 %v3108_v8  ;;  %v3150_v8 = vld [vmem:[%s3757_s1 + $0x290] sm:$0xff]  }
  0x6c   : >> { %2880 = vmatpush3.bf16.msra.mxu1 %v3109_v10  ;;  %2869 = vmatprep.subr.bf16.mxu0 %v3183_v2  ;;  %v3151_v10 = vld [vmem:[%s3757_s1 + $0x2b0] sm:$0xff]  }
  0x6d   : >> { %2881 = vmatprep.subr.bf16.mxu1 %v3183_v2 }
  0x6f   : >> { %2870 = vmatpush3.bf16.msra.mxu0 %v3110_v11  ;;  %v3152_v11 = vld [vmem:[%s3757_s1 + $0x298] sm:$0xff]  }
  0x70   : >> { %2882 = vmatpush3.bf16.msra.mxu1 %v3111_v14  ;;  %2887 = vmatprep.subr.bf16.mxu0 %v3183_v2  ;;  %v3153_v14 = vld [vmem:[%s3757_s1 + $0x2b8] sm:$0xff]  }
  0x71   : >> { %2899 = vmatprep.subr.bf16.mxu1 %v3183_v2 }
  0x72   : >> { %2872 = vmatmul.mubr.msk.bf16.vlgmr.msra.gmra.mrb[20].mxu0 %vm231_vm1, %v2412_v4  ;;  %v2548_v4 = vld [vmem:[%s3255_s7 + $0x10] sm:$0x7] }
  0x73   : >> { %2888 = vmatpush3.bf16.msra.mxu0 %v3113_v15  ;;  %2884 = vmatmul.mubr.msk.bf16.vlgmr.msra.gmra.mrb[20].mxu1 %vm231_vm1, %v1081_v16  ;;  %v3657_v6 = vcombine.low %v2548_v4, %v2548_v4  ;;  %v3155_v15 = vld [vmem:[%s3757_s1 + $0x2c0] sm:$0xff]  }
  0x74   : >> { %2900 = vmatpush3.bf16.msra.mxu1 %v3114_v17  ;;  %2889 = vmatprep.subr.bf16.mxu0 %v3183_v2  ;;  %v3156_v17 = vld [vmem:[%s3757_s1 + $0x2e0] sm:$0xff]  }
  0x75   : >> { %2901 = vmatprep.subr.bf16.mxu1 %v3183_v2  ;;  %2895 = vmatprep.mubr.msk.bf16.mxu0 %vm3184_vm0, %v3183_v2  ;;  %v1886_v9 = vshll.u32 %v3657_v6, 16  ;;  %v1884_v12 = vshrl.u32 %v3657_v6, 16 }
  0x76   : >> { %2907 = vmatprep.mubr.msk.bf16.mxu1 %vm3184_vm0, %v3183_v2 }
  0x77   : >> { %2890 = vmatpush3.bf16.msra.mxu0 %v3115_v18  ;;  %v1888_v13 = vrot.slane %v1886_v9, 1  ;;  %v3157_v18 = vld [vmem:[%s3757_s1 + $0x2c8] sm:$0xff]   ;;  %v2045_v23 = vrot.slane %v1884_v12, 1  ;;  %v2046_v24 = vrot.slane %v1886_v9, 2 }
  0x78   : >> { %2902 = vmatpush3.bf16.msra.mxu1 %v3116_v19  ;;  %2891 = vmatprep.subr.bf16.mxu0 %v3183_v2  ;;  %v3158_v19 = vld [vmem:[%s3757_s1 + $0x2e8] sm:$0xff]  }
  0x79   : >> { %2903 = vmatprep.subr.bf16.mxu1 %v3183_v2  ;;  %v1889_v16 = vor.u32 %v1888_v13, %v1884_v12 }
  0x7b   : >> { %2892 = vmatpush3.bf16.msra.mxu0 %v3117_v20  ;;  %v3159_v20 = vld [vmem:[%s3757_s1 + $0x2d0] sm:$0xff]  }
  0x7c   : >> { %2904 = vmatpush3.bf16.msra.mxu1 %v3118_v21  ;;  %2893 = vmatprep.subr.bf16.mxu0 %v3183_v2  ;;  %v3160_v21 = vld [vmem:[%s3757_s1 + $0x2f0] sm:$0xff]  }
  0x7d   : >> { %2905 = vmatprep.subr.bf16.mxu1 %v3183_v2 }
  0x7f   : >> { %2894 = vmatpush3.bf16.msra.mxu0 %v3119_v22  ;;  %v3161_v22 = vld [vmem:[%s3757_s1 + $0x2d8] sm:$0xff]  }
  0x80   : >> { %2906 = vmatpush3.bf16.msra.mxu1 %v3120_v25  ;;  %2911 = vmatprep.subr.bf16.mxu0 %v3183_v2  ;;  %v3162_v25 = vld [vmem:[%s3757_s1 + $0x2f8] sm:$0xff]  }
  0x81   : >> { %2923 = vmatprep.subr.bf16.mxu1 %v3183_v2 }
  0x82   : >> { %2896 = vmatmul.mubr.msk.bf16.vlgmr.msra.gmra.mrb[24].mxu0 %vm231_vm1, %v1159_v26  ;;  %v1967_v26 = vrot.slane %v3657_v6, 1 }
  0x83   : >> { %2912 = vmatpush3.bf16.msra.mxu0 %v3121_v27  ;;  %2908 = vmatmul.mubr.msk.bf16.vlgmr.msra.gmra.mrb[24].mxu1 %vm231_vm1, %v1239_v28  ;;  %v3163_v27 = vld [vmem:[%s3757_s1 + $0x300] sm:$0xff]   ;;  %v2047_v28 = vor.u32 %v2046_v24, %v2045_v23 }
  0x84   : >> { %2924 = vmatpush3.bf16.msra.mxu1 %v3122_v29  ;;  %2913 = vmatprep.subr.bf16.mxu0 %v3183_v2  ;;  %v3164_v29 = vld [vmem:[%s3757_s1 + $0x308] sm:$0xff]  }
  0x85   : >> { %2925 = vmatprep.subr.bf16.mxu1 %v3183_v2  ;;  %2919 = vmatprep.mubr.msk.bf16.mxu0 %vm3184_vm0, %v3183_v2 }
  0x86   : >> { %2931 = vmatprep.mubr.msk.bf16.mxu1 %vm3184_vm0, %v3183_v2 }
  0x87   : >> { %2914 = vmatpush3.bf16.msra.mxu0 %v3123_v30  ;;  %v3165_v30 = vld [vmem:[%s3757_s1 + $0x310] sm:$0xff]  }
  0x88   : >> { %2926 = vmatpush3.bf16.msra.mxu1 %v3124_v31  ;;  %2915 = vmatprep.subr.bf16.mxu0 %v3183_v2  ;;  %v3166_v31 = vld [vmem:[%s3757_s1 + $0x318] sm:$0xff]  }
  0x89   : >> { %2927 = vmatprep.subr.bf16.mxu1 %v3183_v2 }
  0x8b   : >> { %2916 = vmatpush3.bf16.msra.mxu0 %v3125_v32  ;;  %v2125_v32 = vrot.slane %v3657_v6, 2 }
  0x8c   : >> { %2928 = vmatpush3.bf16.msra.mxu1 %v3126_v33  ;;  %2917 = vmatprep.subr.bf16.mxu0 %v3183_v2 }
  0x8d   : >> { %2929 = vmatprep.subr.bf16.mxu1 %v3183_v2 }
  0x8f   : >> { %2918 = vmatpush3.bf16.msra.mxu0 %v3127_v34 }
  0x90   : >> { %2930 = vmatpush3.bf16.msra.mxu1 %v3128_v35  ;;  %2935 = vmatprep.subr.bf16.mxu0 %v3183_v2 }
  0x91   : >> { %2947 = vmatprep.subr.bf16.mxu1 %v3183_v2 }
  0x92   : >> { %2920 = vmatmul.mubr.msk.bf16.vlgmr.msra.gmra.mrb[28].mxu0 %vm231_vm1, %v1317_v36 }
  0x93   : >> { %2936 = vmatpush3.bf16.msra.mxu0 %v3129_v37  ;;  %2932 = vmatmul.mubr.msk.bf16.vlgmr.msra.gmra.mrb[28].mxu1 %vm231_vm1, %v2480_v38 }
  0x94   : >> { %2948 = vmatpush3.bf16.msra.mxu1 %v3131_v39  ;;  %2937 = vmatprep.subr.bf16.mxu0 %v3183_v2 }
  0x95   : >> { %2949 = vmatprep.subr.bf16.mxu1 %v3183_v2  ;;  %2943 = vmatprep.mubr.msk.bf16.mxu0 %vm3184_vm0, %v3183_v2 }
  0x96   : >> { %2955 = vmatprep.mubr.msk.bf16.mxu1 %vm3184_vm0, %v3183_v2 }
  0x97   : >> { %2938 = vmatpush3.bf16.msra.mxu0 %v3132_v41 }
  0x98   : >> { %2950 = vmatpush3.bf16.msra.mxu1 %v3133_v42  ;;  %2939 = vmatprep.subr.bf16.mxu0 %v3183_v2 }
  0x99   : >> { %2951 = vmatprep.subr.bf16.mxu1 %v3183_v2 }
  0x9b   : >> { %2940 = vmatpush3.bf16.msra.mxu0 %v3134_v44 }
  0x9c   : >> { %2952 = vmatpush3.bf16.msra.mxu1 %v3135_v45  ;;  %2941 = vmatprep.subr.bf16.mxu0 %v3183_v2 }
  0x9d   : >> { %2953 = vmatprep.subr.bf16.mxu1 %v3183_v2 }
  0x9f   : >> { %2942 = vmatpush3.bf16.msra.mxu0 %v3136_v48 }
  0xa0   : >> { %2954 = vmatpush3.bf16.msra.mxu1 %v3137_v49  ;;  %2959 = vmatprep.subr.bf16.mxu0 %v3183_v2 }
  0xa1   : >> { %2971 = vmatprep.subr.bf16.mxu1 %v3183_v2 }
  0xa2   : >> { %2944 = vmatmul.mubr.msk.bf16.vlgmr.msra.gmra.mrb[32].mxu0 %vm231_vm1, %v1485_v50 }
  0xa3   : >> { %2960 = vmatpush3.bf16.msra.mxu0 %v3138_v51  ;;  %2956 = vmatmul.mubr.msk.bf16.vlgmr.msra.gmra.mrb[32].mxu1 %vm231_vm1, %v1563_v52 }
  0xa4   : >> { %2972 = vmatpush3.bf16.msra.mxu1 %v3139_v53  ;;  %2961 = vmatprep.subr.bf16.mxu0 %v3183_v2 }
  0xa5   : >> { %2973 = vmatprep.subr.bf16.mxu1 %v3183_v2  ;;  %2967 = vmatprep.mubr.msk.bf16.mxu0 %vm3184_vm0, %v3183_v2 }
  0xa6   : >> { %2979 = vmatprep.mubr.msk.bf16.mxu1 %vm3184_vm0, %v3183_v2 }
  0xa7   : >> { %2962 = vmatpush3.bf16.msra.mxu0 %v3140_v54 }
  0xa8   : >> { %2974 = vmatpush3.bf16.msra.mxu1 %v3141_v55  ;;  %2963 = vmatprep.subr.bf16.mxu0 %v3183_v2 }
  0xa9   : >> { %2975 = vmatprep.subr.bf16.mxu1 %v3183_v2 }
  0xab   : >> { %2964 = vmatpush3.bf16.msra.mxu0 %v3142_v56 }
  0xac   : >> { %2976 = vmatpush3.bf16.msra.mxu1 %v3143_v57  ;;  %2965 = vmatprep.subr.bf16.mxu0 %v3183_v2 }
  0xad   : >> { %2977 = vmatprep.subr.bf16.mxu1 %v3183_v2 }
  0xaf   : >> { %2966 = vmatpush3.bf16.msra.mxu0 %v3144_v60 }
  0xb0   : >> { %2978 = vmatpush3.bf16.msra.mxu1 %v3145_v61  ;;  %2983 = vmatprep.subr.bf16.mxu0 %v3183_v2 }
  0xb1   : >> { %2995 = vmatprep.subr.bf16.mxu1 %v3183_v2 }
  0xb2   : >> { %2968 = vmatmul.mubr.msk.bf16.vlgmr.msra.gmra.mrb[36].mxu0 %vm231_vm1, %v1643_v62 }
  0xb3   : >> { %2984 = vmatpush3.bf16.msra.mxu0 %v3146_v63  ;;  %2980 = vmatmul.mubr.msk.bf16.vlgmr.msra.gmra.mrb[36].mxu1 %vm231_vm1, %v1721_v1 }
  0xb4   : >> { %2996 = vmatpush3.bf16.msra.mxu1 %v3147_v3  ;;  %2985 = vmatprep.subr.bf16.mxu0 %v3183_v2 }
  0xb5   : >> { %2997 = vmatprep.subr.bf16.mxu1 %v3183_v2  ;;  %2991 = vmatprep.mubr.msk.bf16.mxu0 %vm3184_vm0, %v3183_v2 }
  0xb6   : >> { %3003 = vmatprep.mubr.msk.bf16.mxu1 %vm3184_vm0, %v3183_v2 }
  0xb7   : >> { %2986 = vmatpush3.bf16.msra.mxu0 %v3148_v5 }
  0xb8   : >> { %2998 = vmatpush3.bf16.msra.mxu1 %v3149_v7  ;;  %2987 = vmatprep.subr.bf16.mxu0 %v3183_v2 }
  0xb9   : >> { %2999 = vmatprep.subr.bf16.mxu1 %v3183_v2 }
  0xbb   : >> { %2988 = vmatpush3.bf16.msra.mxu0 %v3150_v8 }
  0xbc   : >> { %3000 = vmatpush3.bf16.msra.mxu1 %v3151_v10  ;;  %2989 = vmatprep.subr.bf16.mxu0 %v3183_v2 }
  0xbd   : >> { %3001 = vmatprep.subr.bf16.mxu1 %v3183_v2 }
  0xbf   : >> { %2990 = vmatpush3.bf16.msra.mxu0 %v3152_v11 }
  0xc0   : >> { %3002 = vmatpush3.bf16.msra.mxu1 %v3153_v14  ;;  %3007 = vmatprep.subr.bf16.mxu0 %v3183_v2 }
  0xc1   : >> { %3019 = vmatprep.subr.bf16.mxu1 %v3183_v2 }
  0xc2   : >> { %2992 = vmatmul.mubr.msk.bf16.vlgmr.msra.gmra.mrb[40].mxu0 %vm231_vm1, %v2548_v4 }
  0xc3   : >> { %3008 = vmatpush3.bf16.msra.mxu0 %v3155_v15  ;;  %3004 = vmatmul.mubr.msk.bf16.vlgmr.msra.gmra.mrb[40].mxu1 %vm231_vm1, %v1889_v16 }
  0xc4   : >> { %3020 = vmatpush3.bf16.msra.mxu1 %v3156_v17  ;;  %3009 = vmatprep.subr.bf16.mxu0 %v3183_v2 }
  0xc5   : >> { %3021 = vmatprep.subr.bf16.mxu1 %v3183_v2  ;;  %3015 = vmatprep.mubr.msk.bf16.mxu0 %vm3184_vm0, %v3183_v2 }
  0xc6   : >> { %3027 = vmatprep.mubr.msk.bf16.mxu1 %vm3184_vm0, %v3183_v2 }
  0xc7   : >> { %3010 = vmatpush3.bf16.msra.mxu0 %v3157_v18 }
  0xc8   : >> { %3022 = vmatpush3.bf16.msra.mxu1 %v3158_v19  ;;  %3011 = vmatprep.subr.bf16.mxu0 %v3183_v2 }
  0xc9   : >> { %3023 = vmatprep.subr.bf16.mxu1 %v3183_v2 }
  0xcb   : >> { %3012 = vmatpush3.bf16.msra.mxu0 %v3159_v20 }
  0xcc   : >> { %3024 = vmatpush3.bf16.msra.mxu1 %v3160_v21  ;;  %3013 = vmatprep.subr.bf16.mxu0 %v3183_v2 }
  0xcd   : >> { %3025 = vmatprep.subr.bf16.mxu1 %v3183_v2 }
  0xcf   : >> { %3014 = vmatpush3.bf16.msra.mxu0 %v3161_v22 }
  0xd0   : >> { %3026 = vmatpush3.bf16.msra.mxu1 %v3162_v25  ;;  %3031 = vmatprep.subr.bf16.mxu0 %v3183_v2 }
  0xd2   : >> { %3016 = vmatmul.mubr.msk.bf16.vlgmr.msra.gmra.mrb[44].mxu0 %vm231_vm1, %v1967_v26 }
  0xd3   : >> { %3032 = vmatpush3.bf16.msra.mxu0 %v3163_v27  ;;  %3028 = vmatmul.mubr.msk.bf16.vlgmr.msra.gmra.mrb[44].mxu1 %vm231_vm1, %v2047_v28 }
  0xd4   : >> { %3033 = vmatprep.subr.bf16.mxu0 %v3183_v2  ;;  %3039 = vmatprep.mubr.msk.bf16.mxu0 %vm3184_vm0, %v3183_v2 }
  0xd7   : >> { %3034 = vmatpush3.bf16.msra.mxu0 %v3164_v29 }
  0xd8   : >> { %3035 = vmatprep.subr.bf16.mxu0 %v3183_v2 }
  0xdb   : >> { %3036 = vmatpush3.bf16.msra.mxu0 %v3165_v30 }
  0xdc   : >> { %3037 = vmatprep.subr.bf16.mxu0 %v3183_v2 }
  0xdf   : >> { %3038 = vmatpush3.bf16.msra.mxu0 %v3166_v31 }
  0xe2   : >> { %3040 = vmatmul.mubr.msk.bf16.vlgmr.msra.gmra.mrb[48].mxu0 %vm231_vm1, %v2125_v32 }
  0xf5   : >> { %v269_v33 = vpop.f32.mrb[0].mxu0 }
  0xf6   : >> { %v2753_v34 = vpop.f32.mrb[1].mxu0  ;;  %v336_v35 = vpop.f32.mrb[0].mxu1 }
  0xf7   : >> { %v337_v36 = vadd.f32 %v336_v35, %v269_v33  ;;  %v272_v37 = vpop.f32.mrb[2].mxu0  ;;  %v2765_v38 = vpop.f32.mrb[1].mxu1 }
  0xf8   : >> { %v2754_v39 = vpop.f32.mrb[3].mxu0  ;;  %v339_v40 = vpop.f32.mrb[2].mxu1 }
  0xf9   : >> { %v2766_v41 = vpop.f32.mrb[3].mxu1 }
 0x105   : >> { %v413_v42 = vpop.f32.mrb[4].mxu0 }
 0x106   : >> { %v419_v43 = vadd.f32 %v413_v42, %v337_v36  ;;  %v2777_v44 = vpop.f32.mrb[5].mxu0  ;;  %v493_v45 = vpop.f32.mrb[4].mxu1 }
 0x107   : >> { %v416_v46 = vpop.f32.mrb[6].mxu0  ;;  %v2789_v2 = vpop.f32.mrb[5].mxu1 }
 0x108   : >> { %v499_v47 = vadd.f32 %v493_v45, %v419_v43  ;;  %v2778_v48 = vpop.f32.mrb[7].mxu0  ;;  %v496_v49 = vpop.f32.mrb[6].mxu1 }
 0x109   : >> { %v2790_v50 = vpop.f32.mrb[7].mxu1 }
 0x115   : >> { %v571_v51 = vpop.f32.mrb[8].mxu0 }
 0x116   : >> { %v577_v52 = vadd.f32 %v571_v51, %v499_v47  ;;  %v2801_v53 = vpop.f32.mrb[9].mxu0  ;;  %v652_v54 = vpop.f32.mrb[8].mxu1 }
 0x117   : >> { %v574_v55 = vpop.f32.mrb[10].mxu0  ;;  %v2813_v56 = vpop.f32.mrb[9].mxu1 }
 0x118   : >> { %v658_v57 = vadd.f32 %v652_v54, %v577_v52  ;;  %v2802_v58 = vpop.f32.mrb[11].mxu0  ;;  %v655_v59 = vpop.f32.mrb[10].mxu1 }
 0x119   : >> { %v2814_v60 = vpop.f32.mrb[11].mxu1 }
 0x125   : >> { %v739_v61 = vpop.f32.mrb[12].mxu0 }
 0x126   : >> { %v745_v62 = vadd.f32 %v739_v61, %v658_v57  ;;  %v2825_v63 = vpop.f32.mrb[13].mxu0  ;;  %v817_v1 = vpop.f32.mrb[12].mxu1 }
 0x127   : >> { %v742_v3 = vpop.f32.mrb[14].mxu0  ;;  %v2837_v4 = vpop.f32.mrb[13].mxu1 }
 0x128   : >> { %v823_v5 = vadd.f32 %v817_v1, %v745_v62  ;;  %v2826_v6 = vpop.f32.mrb[15].mxu0  ;;  %v820_v7 = vpop.f32.mrb[14].mxu1 }
 0x129   : >> { %v2838_v8 = vpop.f32.mrb[15].mxu1 }
 0x135   : >> { %v897_v9 = vpop.f32.mrb[16].mxu0 }
 0x136   : >> { %v903_v10 = vadd.f32 %v897_v9, %v823_v5  ;;  %v2849_v11 = vpop.f32.mrb[17].mxu0  ;;  %v975_v12 = vpop.f32.mrb[16].mxu1 }
 0x137   : >> { %v900_v13 = vpop.f32.mrb[18].mxu0  ;;  %v2861_v14 = vpop.f32.mrb[17].mxu1 }
 0x138   : >> { %v981_v15 = vadd.f32 %v975_v12, %v903_v10  ;;  %v2850_v16 = vpop.f32.mrb[19].mxu0  ;;  %v978_v17 = vpop.f32.mrb[18].mxu1 }
 0x139   : >> { %v2862_v18 = vpop.f32.mrb[19].mxu1 }
 0x145   : >> { %v1056_v19 = vpop.f32.mrb[20].mxu0 }
 0x146   : >> { %v1062_v20 = vadd.f32 %v1056_v19, %v981_v15  ;;  %v2873_v21 = vpop.f32.mrb[21].mxu0  ;;  %v1143_v22 = vpop.f32.mrb[20].mxu1 }
 0x147   : >> { %v1059_v23 = vpop.f32.mrb[22].mxu0  ;;  %v2885_v24 = vpop.f32.mrb[21].mxu1 }
 0x148   : >> { %v1149_v25 = vadd.f32 %v1143_v22, %v1062_v20  ;;  %v2874_v26 = vpop.f32.mrb[23].mxu0  ;;  %v1146_v27 = vpop.f32.mrb[22].mxu1 }
 0x149   : >> { %v2886_v28 = vpop.f32.mrb[23].mxu1 }
 0x155   : >> { %v1221_v29 = vpop.f32.mrb[24].mxu0 }
 0x156   : >> { %v1227_v30 = vadd.f32 %v1221_v29, %v1149_v25  ;;  %v2897_v31 = vpop.f32.mrb[25].mxu0  ;;  %v1301_v32 = vpop.f32.mrb[24].mxu1 }
 0x157   : >> { %v1224_v33 = vpop.f32.mrb[26].mxu0  ;;  %v2909_v34 = vpop.f32.mrb[25].mxu1 }
 0x158   : >> { %v1307_v35 = vadd.f32 %v1301_v32, %v1227_v30  ;;  %v2898_v36 = vpop.f32.mrb[27].mxu0  ;;  %v1304_v37 = vpop.f32.mrb[26].mxu1 }
 0x159   : >> { %v2910_v38 = vpop.f32.mrb[27].mxu1 }
 0x165   : >> { %v1379_v39 = vpop.f32.mrb[28].mxu0 }
 0x166   : >> { %v1385_v40 = vadd.f32 %v1379_v39, %v1307_v35  ;;  %v2921_v41 = vpop.f32.mrb[29].mxu0  ;;  %v1460_v42 = vpop.f32.mrb[28].mxu1 }
 0x167   : >> { %v1382_v43 = vpop.f32.mrb[30].mxu0  ;;  %v2933_v44 = vpop.f32.mrb[29].mxu1 }
 0x168   : >> { %v1466_v45 = vadd.f32 %v1460_v42, %v1385_v40  ;;  %v2922_v46 = vpop.f32.mrb[31].mxu0  ;;  %v1463_v2 = vpop.f32.mrb[30].mxu1 }
 0x169   : >> { %v2934_v47 = vpop.f32.mrb[31].mxu1 }
 0x175   : >> { %v1547_v48 = vpop.f32.mrb[32].mxu0 }
 0x176   : >> { %v1553_v49 = vadd.f32 %v1547_v48, %v1466_v45  ;;  %v2945_v50 = vpop.f32.mrb[33].mxu0  ;;  %v1625_v51 = vpop.f32.mrb[32].mxu1 }
 0x177   : >> { %v1550_v52 = vpop.f32.mrb[34].mxu0  ;;  %v2957_v53 = vpop.f32.mrb[33].mxu1 }
 0x178   : >> { %v1631_v54 = vadd.f32 %v1625_v51, %v1553_v49  ;;  %v2946_v55 = vpop.f32.mrb[35].mxu0  ;;  %v1628_v56 = vpop.f32.mrb[34].mxu1 }
 0x179   : >> { %v2958_v57 = vpop.f32.mrb[35].mxu1 }
 0x185   : >> { %v1705_v58 = vpop.f32.mrb[36].mxu0 }
 0x186   : >> { %v1711_v59 = vadd.f32 %v1705_v58, %v1631_v54  ;;  %v2969_v60 = vpop.f32.mrb[37].mxu0  ;;  %v1783_v61 = vpop.f32.mrb[36].mxu1 }
 0x187   : >> { %v1708_v62 = vpop.f32.mrb[38].mxu0  ;;  %v2981_v63 = vpop.f32.mrb[37].mxu1 }
 0x188   : >> { %v1789_v1 = vadd.f32 %v1783_v61, %v1711_v59  ;;  %v2970_v3 = vpop.f32.mrb[39].mxu0  ;;  %v1786_v4 = vpop.f32.mrb[38].mxu1 }
 0x189   : >> { %v2982_v5 = vpop.f32.mrb[39].mxu1 }
 0x195   : >> { %v1864_v6 = vpop.f32.mrb[40].mxu0 }
 0x196   : >> { %v1870_v7 = vadd.f32 %v1864_v6, %v1789_v1  ;;  %v2993_v8 = vpop.f32.mrb[41].mxu0  ;;  %v1951_v9 = vpop.f32.mrb[40].mxu1 }
 0x197   : >> { %v1867_v10 = vpop.f32.mrb[42].mxu0  ;;  %v3005_v11 = vpop.f32.mrb[41].mxu1 }
 0x198   : >> { %v1957_v12 = vadd.f32 %v1951_v9, %v1870_v7  ;;  %v2994_v13 = vpop.f32.mrb[43].mxu0  ;;  %v1954_v14 = vpop.f32.mrb[42].mxu1 }
 0x199   : >> { %v3006_v15 = vpop.f32.mrb[43].mxu1 }
 0x1a5   : >> { %v2029_v16 = vpop.f32.mrb[44].mxu0 }
 0x1a6   : >> { %v2035_v17 = vadd.f32 %v2029_v16, %v1957_v12  ;;  %v3017_v18 = vpop.f32.mrb[45].mxu0  ;;  %v2109_v19 = vpop.f32.mrb[44].mxu1 }
 0x1a7   : >> { %v2032_v20 = vpop.f32.mrb[46].mxu0  ;;  %v3029_v21 = vpop.f32.mrb[45].mxu1 }
 0x1a8   : >> { %v2115_v22 = vadd.f32 %v2109_v19, %v2035_v17  ;;  %v3018_v23 = vpop.f32.mrb[47].mxu0  ;;  %v2112_v24 = vpop.f32.mrb[46].mxu1 }
 0x1a9   : >> { %v3030_v25 = vpop.f32.mrb[47].mxu1 }
 0x1b5   : >> { %v2187_v26 = vpop.f32.mrb[48].mxu0 }
 0x1b6   : >> { %v2193_v27 = vadd.f32 %v2187_v26, %v2115_v22  ;;  %v3041_v28 = vpop.f32.mrb[49].mxu0  ;;  %175 = sbr.rel (!%p173_p4) target bundleno = 17 (0x11), region = 99 }
 0x1b7   : >> { %v2190_v29 = vpop.f32.mrb[50].mxu0 }
 0x1b8   : >> { %v2200_v30 = vadd.f32 %v3216_v0, %v2193_v27  ;;  %v3042_v31 = vpop.f32.mrb[51].mxu0 }
 0x1ba   : >> { %v2201_v32 = vpack.c.bf16 %v2200_v30, %v2200_v30 }
 0x1bc   : >> { %2203 = vst [vmem:[%s2202_s26] sm:$0x1] %v2201_v32 }
 0x1bd PF: > { %s13_s12 = sadd.s32 1, %s3177_s12  }
 0x1be   : > { %p10_p5 = scmp.ge.s32.totalorder %s13_s12, 4  }
 0x1c0   :  { %12 = sbr.rel (!%p10_p5) target bundleno = 1 (0x1), region = 110 }

</bundles_post_ra>
